<compile_context>
chip_gen: v7x
topology: tpu7x:2x2x1
jax: 0.10.0
libtpu: 0.0.40
codegen_flags: <defaults>
</compile_context>

<pallas_src>
import math
import functools

import jax
import jax.numpy as jnp
from jax.experimental import pallas as pl
from jax.experimental.pallas import tpu as pltpu


# ------------------------------------------------------------------ kernel --

def _fused_forward_kernel(
    # per-batch activations + shared positional embedding
    src_ref, tgt_ref, pe_ref,
    # token embeddings (conv taps stacked to (3*C, D)) + bias (1, D)
    enc_emb_w_ref, enc_emb_b_ref, dec_emb_w_ref, dec_emb_b_ref,
    # encoder layers, stacked on a leading layer axis
    e_qkv_w_ref, e_qkv_b_ref, e_ao_w_ref, e_ao_b_ref,
    e_ln1_g_ref, e_ln1_b_ref,
    e_ff1_w_ref, e_ff1_b_ref, e_ff2_w_ref, e_ff2_b_ref,
    e_ln2_g_ref, e_ln2_b_ref,
    enc_norm_g_ref, enc_norm_b_ref,
    # decoder layers, stacked on a leading layer axis
    d_qkv_w_ref, d_qkv_b_ref, d_sao_w_ref, d_sao_b_ref,
    d_ln1_g_ref, d_ln1_b_ref,
    d_q_w_ref, d_q_b_ref, d_kv_w_ref, d_kv_b_ref,
    d_cao_w_ref, d_cao_b_ref,
    d_ln2_g_ref, d_ln2_b_ref,
    d_ff1_w_ref, d_ff1_b_ref, d_ff2_w_ref, d_ff2_b_ref,
    d_ln3_g_ref, d_ln3_b_ref,
    dec_norm_g_ref, dec_norm_b_ref,
    # output head
    out_w_ref, out_b_ref,
    # output
    o_ref,
    *, n_heads, n_enc, n_dec, d_model, eps):

    D = d_model
    Dh = D // n_heads
    scale = 1.0 / math.sqrt(Dh)
    f32 = jnp.float32

    def layer_norm(x, g, b):
        # residual already added by caller; stats in f32
        xc = x - jnp.mean(x, axis=-1, keepdims=True)
        var = jnp.mean(xc * xc, axis=-1, keepdims=True)
        return xc * jax.lax.rsqrt(var + eps) * g + b

    def mha(q, k, v):
        # q: (Sq, D), k/v: (Sk, D).  Head split via static lane slices.
        nt = (((1,), (1,)), ((), ()))   # contract last dims: q @ k^T
        outs = []
        for h in range(n_heads):
            lo = h * Dh
            qh = q[:, lo:lo + Dh]
            kh = k[:, lo:lo + Dh]
            vh = v[:, lo:lo + Dh]
            s = jax.lax.dot_general(qh, kh, nt,
                                    preferred_element_type=f32) * scale
            s = s - jnp.max(s, axis=-1, keepdims=True)
            p = jnp.exp(s)
            p = p / jnp.sum(p, axis=-1, keepdims=True)
            outs.append(jnp.dot(p, vh, preferred_element_type=f32))
        return jnp.concatenate(outs, axis=-1)          # (Sq, D)

    def embed(x, w, b, pe):
        # Circular Conv1d(kernel=3, padding=1) as a single (L,3C)@(3C,D) matmul.
        L = x.shape[0]
        x_prev = jnp.concatenate([x[L - 1:L, :], x[:L - 1, :]], axis=0)
        x_next = jnp.concatenate([x[1:, :], x[0:1, :]], axis=0)
        xc = jnp.concatenate([x_prev, x, x_next], axis=1)   # (L, 3C)
        return jnp.dot(xc, w, preferred_element_type=f32) + b + pe

    # ----------------------------- encoder -----------------------------
    src = src_ref[0].astype(f32)                       # (Ls, C)
    Ls = src.shape[0]
    x = embed(src, enc_emb_w_ref[...], enc_emb_b_ref[...], pe_ref[0:Ls, :])

    for i in range(n_enc):
        qkv = (jnp.dot(x, e_qkv_w_ref[i], preferred_element_type=f32)
               + e_qkv_b_ref[i])                       # (Ls, 3D)
        a = mha(qkv[:, 0:D], qkv[:, D:2 * D], qkv[:, 2 * D:3 * D])
        a = jnp.dot(a, e_ao_w_ref[i], preferred_element_type=f32) + e_ao_b_ref[i]
        x = layer_norm(x + a, e_ln1_g_ref[i], e_ln1_b_ref[i])
        h = jnp.maximum(
            jnp.dot(x, e_ff1_w_ref[i], preferred_element_type=f32) + e_ff1_b_ref[i],
            0.0)
        f = jnp.dot(h, e_ff2_w_ref[i], preferred_element_type=f32) + e_ff2_b_ref[i]
        x = layer_norm(x + f, e_ln2_g_ref[i], e_ln2_b_ref[i])

    mem = layer_norm(x, enc_norm_g_ref[...], enc_norm_b_ref[...])

    # ----------------------------- decoder -----------------------------
    tgt = tgt_ref[0].astype(f32)                       # (Lt, C)
    Lt = tgt.shape[0]
    y = embed(tgt, dec_emb_w_ref[...], dec_emb_b_ref[...], pe_ref[0:Lt, :])

    for i in range(n_dec):
        # self-attention (no causal mask: reference passes no tgt_mask)
        qkv = (jnp.dot(y, d_qkv_w_ref[i], preferred_element_type=f32)
               + d_qkv_b_ref[i])
        a = mha(qkv[:, 0:D], qkv[:, D:2 * D], qkv[:, 2 * D:3 * D])
        a = jnp.dot(a, d_sao_w_ref[i], preferred_element_type=f32) + d_sao_b_ref[i]
        y = layer_norm(y + a, d_ln1_g_ref[i], d_ln1_b_ref[i])
        # cross-attention (fused KV projection of encoder memory)
        q = jnp.dot(y, d_q_w_ref[i], preferred_element_type=f32) + d_q_b_ref[i]
        kv = jnp.dot(mem, d_kv_w_ref[i], preferred_element_type=f32) + d_kv_b_ref[i]
        c = mha(q, kv[:, 0:D], kv[:, D:2 * D])
        c = jnp.dot(c, d_cao_w_ref[i], preferred_element_type=f32) + d_cao_b_ref[i]
        y = layer_norm(y + c, d_ln2_g_ref[i], d_ln2_b_ref[i])
        # feed-forward
        h = jnp.maximum(
            jnp.dot(y, d_ff1_w_ref[i], preferred_element_type=f32) + d_ff1_b_ref[i],
            0.0)
        f = jnp.dot(h, d_ff2_w_ref[i], preferred_element_type=f32) + d_ff2_b_ref[i]
        y = layer_norm(y + f, d_ln3_g_ref[i], d_ln3_b_ref[i])

    y = layer_norm(y, dec_norm_g_ref[...], dec_norm_b_ref[...])

    out = jnp.dot(y, out_w_ref[...], preferred_element_type=f32) + out_b_ref[...]
    o_ref[0] = out.astype(o_ref.dtype)


# ----------------------------------------------------------------- wrapper --

def _full_spec(arr):
    """Whole-array VMEM block, constant block index across the batch grid."""
    zeros = (0,) * arr.ndim
    return pl.BlockSpec(arr.shape, lambda b, _z=zeros: _z)


def model_forward(params, src, placeholder1, tgt, placeholder2, *, n_heads):
    # placeholders are ignored, as in the PyTorch module
    del placeholder1, placeholder2
    B, Ls, C = src.shape
    Lt = tgt.shape[1]
    D = params["out_w"].shape[0]
    enc, dec = params["enc"], params["dec"]
    n_enc = enc["qkv_w"].shape[0]
    n_dec = dec["qkv_w"].shape[0]

    weight_inputs = [
        params["pe"],
        params["enc_emb_w"], params["enc_emb_b"],
        params["dec_emb_w"], params["dec_emb_b"],
        enc["qkv_w"], enc["qkv_b"], enc["ao_w"], enc["ao_b"],
        enc["ln1_g"], enc["ln1_b"],
        enc["ff1_w"], enc["ff1_b"], enc["ff2_w"], enc["ff2_b"],
        enc["ln2_g"], enc["ln2_b"],
        params["enc_norm_g"], params["enc_norm_b"],
        dec["qkv_w"], dec["qkv_b"], dec["sao_w"], dec["sao_b"],
        dec["ln1_g"], dec["ln1_b"],
        dec["q_w"], dec["q_b"], dec["kv_w"], dec["kv_b"],
        dec["cao_w"], dec["cao_b"],
        dec["ln2_g"], dec["ln2_b"],
        dec["ff1_w"], dec["ff1_b"], dec["ff2_w"], dec["ff2_b"],
        dec["ln3_g"], dec["ln3_b"],
        params["dec_norm_g"], params["dec_norm_b"],
        params["out_w"], params["out_b"],
    ]

    in_specs = (
        [pl.BlockSpec((1, Ls, C), lambda b: (b, 0, 0)),
         pl.BlockSpec((1, Lt, C), lambda b: (b, 0, 0))]
        + [_full_spec(w) for w in weight_inputs]
    )

    kernel = functools.partial(
        _fused_forward_kernel,
        n_heads=n_heads, n_enc=n_enc, n_dec=n_dec, d_model=D, eps=1e-5)

    return pl.pallas_call(
        kernel,
        out_shape=jax.ShapeDtypeStruct((B, Lt, C), jnp.float32),
        grid=(B,),
        in_specs=in_specs,
        out_specs=pl.BlockSpec((1, Lt, C), lambda b: (b, 0, 0)),
        compiler_params=pltpu.CompilerParams(
            dimension_semantics=("parallel",)),
    )(src, tgt, *weight_inputs)


# ------------------------------------------------------------- param setup --

def _w(key, shape, scale=0.05):
    return (scale * jax.random.normal(key, shape)).astype(jnp.float32)


def make_positional_embedding(max_len, d_model):
    pos = jnp.arange(max_len, dtype=jnp.float32)[:, None]
    div = jnp.exp(jnp.arange(0, d_model, 2, dtype=jnp.float32)
                  * (-math.log(10000.0) / d_model))
    pe = jnp.zeros((max_len, d_model), jnp.float32)
    pe = pe.at[:, 0::2].set(jnp.sin(pos * div))
    pe = pe.at[:, 1::2].set(jnp.cos(pos * div))
    return pe


def init_params(key, input_size, d_model, n_enc, n_dec, d_ff, max_len=64):
    D, C, F = d_model, input_size, d_ff
    ones = lambda n: jnp.ones((1, n), jnp.float32)
    zeros = lambda n: jnp.zeros((1, n), jnp.float32)
    k_eemb, k_demb, k_out, k_enc, k_dec = jax.random.split(key, 5)

    def enc_layer(k):
        k1, k2, k3, k4 = jax.random.split(k, 4)
        return {
            "qkv_w": _w(k1, (D, 3 * D)), "qkv_b": zeros(3 * D),
            "ao_w": _w(k2, (D, D)), "ao_b": zeros(D),
            "ln1_g": ones(D), "ln1_b": zeros(D),
            "ff1_w": _w(k3, (D, F)), "ff1_b": zeros(F),
            "ff2_w": _w(k4, (F, D)), "ff2_b": zeros(D),
            "ln2_g": ones(D), "ln2_b": zeros(D),
        }

    def dec_layer(k):
        k1, k2, k3, k4, k5, k6, k7 = jax.random.split(k, 7)
        return {
            "qkv_w": _w(k1, (D, 3 * D)), "qkv_b": zeros(3 * D),
            "sao_w": _w(k2, (D, D)), "sao_b": zeros(D),
            "ln1_g": ones(D), "ln1_b": zeros(D),
            "q_w": _w(k3, (D, D)), "q_b": zeros(D),
            "kv_w": _w(k4, (D, 2 * D)), "kv_b": zeros(2 * D),
            "cao_w": _w(k5, (D, D)), "cao_b": zeros(D),
            "ln2_g": ones(D), "ln2_b": zeros(D),
            "ff1_w": _w(k6, (D, F)), "ff1_b": zeros(F),
            "ff2_w": _w(k7, (F, D)), "ff2_b": zeros(D),
            "ln3_g": ones(D), "ln3_b": zeros(D),
        }

    def stack_layers(layer_dicts):
        return {k: jnp.stack([ld[k] for ld in layer_dicts])
                for k in layer_dicts[0].keys()}

    enc_layers = [enc_layer(k) for k in jax.random.split(k_enc, n_enc)]
    dec_layers = [dec_layer(k) for k in jax.random.split(k_dec, n_dec)]

    return {
        "pe": make_positional_embedding(max_len, D),
        # conv taps stacked as rows [tap(-1); tap(0); tap(+1)] -> (3C, D)
        "enc_emb_w": _w(k_eemb, (3 * C, D)), "enc_emb_b": zeros(D),
        "dec_emb_w": _w(k_demb, (3 * C, D)), "dec_emb_b": zeros(D),
        "enc": stack_layers(enc_layers),
        "dec": stack_layers(dec_layers),
        "enc_norm_g": ones(D), "enc_norm_b": zeros(D),
        "dec_norm_g": ones(D), "dec_norm_b": zeros(D),
        "out_w": _w(k_out, (D, C)), "out_b": zeros(C),
    }


# --------------------------------------------------------------------- main --

if __name__ == "__main__":
    batch = 2
    src_len = 8
    tgt_len = 8
    input_size = 4      # c_in
    d_model = 32
    n_heads = 4
    num_enc_layers = 2
    num_dec_layers = 2
    d_ff = 64

    key = jax.random.PRNGKey(0)
    k_param, k_src, k_tgt = jax.random.split(key, 3)

    params = init_params(k_param, input_size, d_model,
                         num_enc_layers, num_dec_layers, d_ff)

    src = jax.random.normal(k_src, (batch, src_len, input_size), jnp.float32)
    tgt = jax.random.normal(k_tgt, (batch, tgt_len, input_size), jnp.float32)
    placeholder1 = jnp.zeros((batch, src_len, input_size), jnp.float32)  # unused
    placeholder2 = jnp.zeros((batch, tgt_len, input_size), jnp.float32)  # unused

    fwd = jax.jit(functools.partial(model_forward, n_heads=n_heads))
    out = fwd(params, src, placeholder1, tgt, placeholder2)
    out = jax.block_until_ready(out)

    assert out.shape == (batch, tgt_len, input_size), out.shape
    assert bool(jnp.all(jnp.isfinite(out)))
    print("KERNEL_OK")
</pallas_src>

<mosaic_0001>
module attributes {stable_mosaic.version = 11 : i64} {
  func.func @_fused_forward_kernel(%arg0: i32, %arg1: memref<1x8x4xf32, #tpu.memory_space<vmem>>, %arg2: memref<1x8x4xf32, #tpu.memory_space<vmem>>, %arg3: memref<64x32xf32, #tpu.memory_space<vmem>>, %arg4: memref<12x32xf32, #tpu.memory_space<vmem>>, %arg5: memref<1x32xf32, #tpu.memory_space<vmem>>, %arg6: memref<12x32xf32, #tpu.memory_space<vmem>>, %arg7: memref<1x32xf32, #tpu.memory_space<vmem>>, %arg8: memref<2x32x96xf32, #tpu.memory_space<vmem>>, %arg9: memref<2x1x96xf32, #tpu.memory_space<vmem>>, %arg10: memref<2x32x32xf32, #tpu.memory_space<vmem>>, %arg11: memref<2x1x32xf32, #tpu.memory_space<vmem>>, %arg12: memref<2x1x32xf32, #tpu.memory_space<vmem>>, %arg13: memref<2x1x32xf32, #tpu.memory_space<vmem>>, %arg14: memref<2x32x64xf32, #tpu.memory_space<vmem>>, %arg15: memref<2x1x64xf32, #tpu.memory_space<vmem>>, %arg16: memref<2x64x32xf32, #tpu.memory_space<vmem>>, %arg17: memref<2x1x32xf32, #tpu.memory_space<vmem>>, %arg18: memref<2x1x32xf32, #tpu.memory_space<vmem>>, %arg19: memref<2x1x32xf32, #tpu.memory_space<vmem>>, %arg20: memref<1x32xf32, #tpu.memory_space<vmem>>, %arg21: memref<1x32xf32, #tpu.memory_space<vmem>>, %arg22: memref<2x32x96xf32, #tpu.memory_space<vmem>>, %arg23: memref<2x1x96xf32, #tpu.memory_space<vmem>>, %arg24: memref<2x32x32xf32, #tpu.memory_space<vmem>>, %arg25: memref<2x1x32xf32, #tpu.memory_space<vmem>>, %arg26: memref<2x1x32xf32, #tpu.memory_space<vmem>>, %arg27: memref<2x1x32xf32, #tpu.memory_space<vmem>>, %arg28: memref<2x32x32xf32, #tpu.memory_space<vmem>>, %arg29: memref<2x1x32xf32, #tpu.memory_space<vmem>>, %arg30: memref<2x32x64xf32, #tpu.memory_space<vmem>>, %arg31: memref<2x1x64xf32, #tpu.memory_space<vmem>>, %arg32: memref<2x32x32xf32, #tpu.memory_space<vmem>>, %arg33: memref<2x1x32xf32, #tpu.memory_space<vmem>>, %arg34: memref<2x1x32xf32, #tpu.memory_space<vmem>>, %arg35: memref<2x1x32xf32, #tpu.memory_space<vmem>>, %arg36: memref<2x32x64xf32, #tpu.memory_space<vmem>>, %arg37: memref<2x1x64xf32, #tpu.memory_space<vmem>>, %arg38: memref<2x64x32xf32, #tpu.memory_space<vmem>>, %arg39: memref<2x1x32xf32, #tpu.memory_space<vmem>>, %arg40: memref<2x1x32xf32, #tpu.memory_space<vmem>>, %arg41: memref<2x1x32xf32, #tpu.memory_space<vmem>>, %arg42: memref<1x32xf32, #tpu.memory_space<vmem>>, %arg43: memref<1x32xf32, #tpu.memory_space<vmem>>, %arg44: memref<32x4xf32, #tpu.memory_space<vmem>>, %arg45: memref<1x4xf32, #tpu.memory_space<vmem>>, %arg46: memref<1x8x4xf32, #tpu.memory_space<vmem>>) attributes {dimension_semantics = [#tpu.dimension_semantics<parallel>], iteration_bounds = array<i64: 2>, scalar_prefetch = 0 : i64, scratch_operands = 0 : i64, tpu.core_type = #tpu.core_type<tc>, window_params = [{transform_indices = @transform_0, window_bounds = array<i64: 1, 8, 4>}, {transform_indices = @transform_1, window_bounds = array<i64: 1, 8, 4>}, {pipeline_mode = #tpu.pipeline_mode<synchronous>, transform_indices = @transform_2, window_bounds = array<i64: 64, 32>}, {pipeline_mode = #tpu.pipeline_mode<synchronous>, transform_indices = @transform_3, window_bounds = array<i64: 12, 32>}, {pipeline_mode = #tpu.pipeline_mode<synchronous>, transform_indices = @transform_4, window_bounds = array<i64: 1, 32>}, {pipeline_mode = #tpu.pipeline_mode<synchronous>, transform_indices = @transform_5, window_bounds = array<i64: 12, 32>}, {pipeline_mode = #tpu.pipeline_mode<synchronous>, transform_indices = @transform_6, window_bounds = array<i64: 1, 32>}, {pipeline_mode = #tpu.pipeline_mode<synchronous>, transform_indices = @transform_7, window_bounds = array<i64: 2, 32, 96>}, {pipeline_mode = #tpu.pipeline_mode<synchronous>, transform_indices = @transform_8, window_bounds = array<i64: 2, 1, 96>}, {pipeline_mode = #tpu.pipeline_mode<synchronous>, transform_indices = @transform_9, window_bounds = array<i64: 2, 32, 32>}, {pipeline_mode = #tpu.pipeline_mode<synchronous>, transform_indices = @transform_10, window_bounds = array<i64: 2, 1, 32>}, {pipeline_mode = #tpu.pipeline_mode<synchronous>, transform_indices = @transform_11, window_bounds = array<i64: 2, 1, 32>}, {pipeline_mode = #tpu.pipeline_mode<synchronous>, transform_indices = @transform_12, window_bounds = array<i64: 2, 1, 32>}, {pipeline_mode = #tpu.pipeline_mode<synchronous>, transform_indices = @transform_13, window_bounds = array<i64: 2, 32, 64>}, {pipeline_mode = #tpu.pipeline_mode<synchronous>, transform_indices = @transform_14, window_bounds = array<i64: 2, 1, 64>}, {pipeline_mode = #tpu.pipeline_mode<synchronous>, transform_indices = @transform_15, window_bounds = array<i64: 2, 64, 32>}, {pipeline_mode = #tpu.pipeline_mode<synchronous>, transform_indices = @transform_16, window_bounds = array<i64: 2, 1, 32>}, {pipeline_mode = #tpu.pipeline_mode<synchronous>, transform_indices = @transform_17, window_bounds = array<i64: 2, 1, 32>}, {pipeline_mode = #tpu.pipeline_mode<synchronous>, transform_indices = @transform_18, window_bounds = array<i64: 2, 1, 32>}, {pipeline_mode = #tpu.pipeline_mode<synchronous>, transform_indices = @transform_19, window_bounds = array<i64: 1, 32>}, {pipeline_mode = #tpu.pipeline_mode<synchronous>, transform_indices = @transform_20, window_bounds = array<i64: 1, 32>}, {pipeline_mode = #tpu.pipeline_mode<synchronous>, transform_indices = @transform_21, window_bounds = array<i64: 2, 32, 96>}, {pipeline_mode = #tpu.pipeline_mode<synchronous>, transform_indices = @transform_22, window_bounds = array<i64: 2, 1, 96>}, {pipeline_mode = #tpu.pipeline_mode<synchronous>, transform_indices = @transform_23, window_bounds = array<i64: 2, 32, 32>}, {pipeline_mode = #tpu.pipeline_mode<synchronous>, transform_indices = @transform_24, window_bounds = array<i64: 2, 1, 32>}, {pipeline_mode = #tpu.pipeline_mode<synchronous>, transform_indices = @transform_25, window_bounds = array<i64: 2, 1, 32>}, {pipeline_mode = #tpu.pipeline_mode<synchronous>, transform_indices = @transform_26, window_bounds = array<i64: 2, 1, 32>}, {pipeline_mode = #tpu.pipeline_mode<synchronous>, transform_indices = @transform_27, window_bounds = array<i64: 2, 32, 32>}, {pipeline_mode = #tpu.pipeline_mode<synchronous>, transform_indices = @transform_28, window_bounds = array<i64: 2, 1, 32>}, {pipeline_mode = #tpu.pipeline_mode<synchronous>, transform_indices = @transform_29, window_bounds = array<i64: 2, 32, 64>}, {pipeline_mode = #tpu.pipeline_mode<synchronous>, transform_indices = @transform_30, window_bounds = array<i64: 2, 1, 64>}, {pipeline_mode = #tpu.pipeline_mode<synchronous>, transform_indices = @transform_31, window_bounds = array<i64: 2, 32, 32>}, {pipeline_mode = #tpu.pipeline_mode<synchronous>, transform_indices = @transform_32, window_bounds = array<i64: 2, 1, 32>}, {pipeline_mode = #tpu.pipeline_mode<synchronous>, transform_indices = @transform_33, window_bounds = array<i64: 2, 1, 32>}, {pipeline_mode = #tpu.pipeline_mode<synchronous>, transform_indices = @transform_34, window_bounds = array<i64: 2, 1, 32>}, {pipeline_mode = #tpu.pipeline_mode<synchronous>, transform_indices = @transform_35, window_bounds = array<i64: 2, 32, 64>}, {pipeline_mode = #tpu.pipeline_mode<synchronous>, transform_indices = @transform_36, window_bounds = array<i64: 2, 1, 64>}, {pipeline_mode = #tpu.pipeline_mode<synchronous>, transform_indices = @transform_37, window_bounds = array<i64: 2, 64, 32>}, {pipeline_mode = #tpu.pipeline_mode<synchronous>, transform_indices = @transform_38, window_bounds = array<i64: 2, 1, 32>}, {pipeline_mode = #tpu.pipeline_mode<synchronous>, transform_indices = @transform_39, window_bounds = array<i64: 2, 1, 32>}, {pipeline_mode = #tpu.pipeline_mode<synchronous>, transform_indices = @transform_40, window_bounds = array<i64: 2, 1, 32>}, {pipeline_mode = #tpu.pipeline_mode<synchronous>, transform_indices = @transform_41, window_bounds = array<i64: 1, 32>}, {pipeline_mode = #tpu.pipeline_mode<synchronous>, transform_indices = @transform_42, window_bounds = array<i64: 1, 32>}, {pipeline_mode = #tpu.pipeline_mode<synchronous>, transform_indices = @transform_43, window_bounds = array<i64: 32, 4>}, {pipeline_mode = #tpu.pipeline_mode<synchronous>, transform_indices = @transform_44, window_bounds = array<i64: 1, 4>}, {transform_indices = @transform_45, window_bounds = array<i64: 1, 8, 4>}]} {
    %c0 = arith.constant 0 : index
    %c0_0 = arith.constant 0 : index
    %c0_1 = arith.constant 0 : index
    %0 = vector.load %arg1[%c0, %c0_0, %c0_1] : memref<1x8x4xf32, #tpu.memory_space<vmem>>, vector<1x8x4xf32>
    %1 = vector.shape_cast %0 : vector<1x8x4xf32> to vector<8x4xf32>
    %c0_2 = arith.constant 0 : index
    %c0_3 = arith.constant 0 : index
    %2 = vector.load %arg4[%c0_2, %c0_3] : memref<12x32xf32, #tpu.memory_space<vmem>>, vector<12x32xf32>
    %c0_4 = arith.constant 0 : index
    %c0_5 = arith.constant 0 : index
    %3 = vector.load %arg5[%c0_4, %c0_5] : memref<1x32xf32, #tpu.memory_space<vmem>>, vector<1x32xf32>
    %c0_6 = arith.constant 0 : index
    %c0_7 = arith.constant 0 : index
    %4 = vector.load %arg3[%c0_6, %c0_7] : memref<64x32xf32, #tpu.memory_space<vmem>>, vector<8x32xf32>
    %5 = vector.extract_strided_slice %1 {offsets = [7, 0], sizes = [1, 4], strides = [1, 1]} : vector<8x4xf32> to vector<1x4xf32>
    %6 = vector.extract_strided_slice %1 {offsets = [0, 0], sizes = [7, 4], strides = [1, 1]} : vector<8x4xf32> to vector<7x4xf32>
    %7 = tpu.concatenate %5, %6 in 0 : vector<1x4xf32>, vector<7x4xf32> -> vector<8x4xf32>
    %8 = vector.extract_strided_slice %1 {offsets = [1, 0], sizes = [7, 4], strides = [1, 1]} : vector<8x4xf32> to vector<7x4xf32>
    %9 = vector.extract_strided_slice %1 {offsets = [0, 0], sizes = [1, 4], strides = [1, 1]} : vector<8x4xf32> to vector<1x4xf32>
    %10 = tpu.concatenate %8, %9 in 0 : vector<7x4xf32>, vector<1x4xf32> -> vector<8x4xf32>
    %11 = tpu.concatenate %7, %1, %10 in 1 : vector<8x4xf32>, vector<8x4xf32>, vector<8x4xf32> -> vector<8x12xf32>
    %cst = arith.constant dense<0.000000e+00> : vector<8x32xf32>
    %12 = tpu.matmul %11, %2, %cst {dimension_numbers = #tpu.dot_dimension_numbers<[1], [0], [0], [1], [0, 0, 1, 1], [], []>} : vector<8x12xf32>, vector<12x32xf32>, vector<8x32xf32> -> vector<8x32xf32>
    %13 = vector.broadcast %3 : vector<1x32xf32> to vector<8x32xf32>
    %14 = arith.addf %12, %13 : vector<8x32xf32>
    %15 = arith.addf %14, %4 : vector<8x32xf32>
    %c0_8 = arith.constant 0 : index
    %c0_9 = arith.constant 0 : index
    %c0_10 = arith.constant 0 : index
    %16 = vector.load %arg8[%c0_8, %c0_9, %c0_10] : memref<2x32x96xf32, #tpu.memory_space<vmem>>, vector<1x32x96xf32>
    %17 = vector.shape_cast %16 : vector<1x32x96xf32> to vector<32x96xf32>
    %cst_11 = arith.constant dense<0.000000e+00> : vector<8x96xf32>
    %18 = tpu.matmul %15, %17, %cst_11 {dimension_numbers = #tpu.dot_dimension_numbers<[1], [0], [0], [1], [0, 0, 1, 1], [], []>} : vector<8x32xf32>, vector<32x96xf32>, vector<8x96xf32> -> vector<8x96xf32>
    %c0_12 = arith.constant 0 : index
    %c0_13 = arith.constant 0 : index
    %c0_14 = arith.constant 0 : index
    %19 = vector.load %arg9[%c0_12, %c0_13, %c0_14] : memref<2x1x96xf32, #tpu.memory_space<vmem>>, vector<1x1x96xf32>
    %20 = vector.shape_cast %19 : vector<1x1x96xf32> to vector<1x96xf32>
    %21 = vector.broadcast %20 : vector<1x96xf32> to vector<8x96xf32>
    %22 = arith.addf %18, %21 : vector<8x96xf32>
    %23 = vector.extract_strided_slice %22 {offsets = [0, 0], sizes = [8, 32], strides = [1, 1]} : vector<8x96xf32> to vector<8x32xf32>
    %24 = vector.extract_strided_slice %22 {offsets = [0, 32], sizes = [8, 32], strides = [1, 1]} : vector<8x96xf32> to vector<8x32xf32>
    %25 = vector.extract_strided_slice %22 {offsets = [0, 64], sizes = [8, 32], strides = [1, 1]} : vector<8x96xf32> to vector<8x32xf32>
    %26 = vector.extract_strided_slice %23 {offsets = [0, 0], sizes = [8, 8], strides = [1, 1]} : vector<8x32xf32> to vector<8x8xf32>
    %27 = vector.extract_strided_slice %24 {offsets = [0, 0], sizes = [8, 8], strides = [1, 1]} : vector<8x32xf32> to vector<8x8xf32>
    %28 = vector.extract_strided_slice %25 {offsets = [0, 0], sizes = [8, 8], strides = [1, 1]} : vector<8x32xf32> to vector<8x8xf32>
    %cst_15 = arith.constant dense<0.000000e+00> : vector<8x8xf32>
    %29 = tpu.matmul %26, %27, %cst_15 {dimension_numbers = #tpu.dot_dimension_numbers<[1], [1], [0], [0], [0, 0, 1, 0], [], []>} : vector<8x8xf32>, vector<8x8xf32>, vector<8x8xf32> -> vector<8x8xf32>
    %cst_16 = arith.constant 0.353553385 : f32
    %30 = vector.broadcast %cst_16 : f32 to vector<8x8xf32>
    %31 = arith.mulf %29, %30 : vector<8x8xf32>
    %cst_17 = arith.constant dense<0xFF800000> : vector<8xf32>
    %32 = vector.multi_reduction <maximumf>, %31, %cst_17 [1] : vector<8x8xf32> to vector<8xf32>
    %33 = vector.shape_cast %32 : vector<8xf32> to vector<8x1xf32>
    %34 = vector.broadcast %33 : vector<8x1xf32> to vector<8x8xf32>
    %35 = arith.subf %31, %34 : vector<8x8xf32>
    %36 = math.exp %35 : vector<8x8xf32>
    %cst_18 = arith.constant dense<0.000000e+00> : vector<8xf32>
    %37 = vector.multi_reduction <add>, %36, %cst_18 [1] : vector<8x8xf32> to vector<8xf32>
    %38 = vector.shape_cast %37 : vector<8xf32> to vector<8x1xf32>
    %39 = vector.broadcast %38 : vector<8x1xf32> to vector<8x8xf32>
    %40 = arith.divf %36, %39 : vector<8x8xf32>
    %cst_19 = arith.constant dense<0.000000e+00> : vector<8x8xf32>
    %41 = tpu.matmul %40, %28, %cst_19 {dimension_numbers = #tpu.dot_dimension_numbers<[1], [0], [0], [1], [0, 0, 1, 1], [], []>} : vector<8x8xf32>, vector<8x8xf32>, vector<8x8xf32> -> vector<8x8xf32>
    %42 = vector.extract_strided_slice %23 {offsets = [0, 8], sizes = [8, 8], strides = [1, 1]} : vector<8x32xf32> to vector<8x8xf32>
    %43 = vector.extract_strided_slice %24 {offsets = [0, 8], sizes = [8, 8], strides = [1, 1]} : vector<8x32xf32> to vector<8x8xf32>
    %44 = vector.extract_strided_slice %25 {offsets = [0, 8], sizes = [8, 8], strides = [1, 1]} : vector<8x32xf32> to vector<8x8xf32>
    %cst_20 = arith.constant dense<0.000000e+00> : vector<8x8xf32>
    %45 = tpu.matmul %42, %43, %cst_20 {dimension_numbers = #tpu.dot_dimension_numbers<[1], [1], [0], [0], [0, 0, 1, 0], [], []>} : vector<8x8xf32>, vector<8x8xf32>, vector<8x8xf32> -> vector<8x8xf32>
    %cst_21 = arith.constant 0.353553385 : f32
    %46 = vector.broadcast %cst_21 : f32 to vector<8x8xf32>
    %47 = arith.mulf %45, %46 : vector<8x8xf32>
    %cst_22 = arith.constant dense<0xFF800000> : vector<8xf32>
    %48 = vector.multi_reduction <maximumf>, %47, %cst_22 [1] : vector<8x8xf32> to vector<8xf32>
    %49 = vector.shape_cast %48 : vector<8xf32> to vector<8x1xf32>
    %50 = vector.broadcast %49 : vector<8x1xf32> to vector<8x8xf32>
    %51 = arith.subf %47, %50 : vector<8x8xf32>
    %52 = math.exp %51 : vector<8x8xf32>
    %cst_23 = arith.constant dense<0.000000e+00> : vector<8xf32>
    %53 = vector.multi_reduction <add>, %52, %cst_23 [1] : vector<8x8xf32> to vector<8xf32>
    %54 = vector.shape_cast %53 : vector<8xf32> to vector<8x1xf32>
    %55 = vector.broadcast %54 : vector<8x1xf32> to vector<8x8xf32>
    %56 = arith.divf %52, %55 : vector<8x8xf32>
    %cst_24 = arith.constant dense<0.000000e+00> : vector<8x8xf32>
    %57 = tpu.matmul %56, %44, %cst_24 {dimension_numbers = #tpu.dot_dimension_numbers<[1], [0], [0], [1], [0, 0, 1, 1], [], []>} : vector<8x8xf32>, vector<8x8xf32>, vector<8x8xf32> -> vector<8x8xf32>
    %58 = vector.extract_strided_slice %23 {offsets = [0, 16], sizes = [8, 8], strides = [1, 1]} : vector<8x32xf32> to vector<8x8xf32>
    %59 = vector.extract_strided_slice %24 {offsets = [0, 16], sizes = [8, 8], strides = [1, 1]} : vector<8x32xf32> to vector<8x8xf32>
    %60 = vector.extract_strided_slice %25 {offsets = [0, 16], sizes = [8, 8], strides = [1, 1]} : vector<8x32xf32> to vector<8x8xf32>
    %cst_25 = arith.constant dense<0.000000e+00> : vector<8x8xf32>
    %61 = tpu.matmul %58, %59, %cst_25 {dimension_numbers = #tpu.dot_dimension_numbers<[1], [1], [0], [0], [0, 0, 1, 0], [], []>} : vector<8x8xf32>, vector<8x8xf32>, vector<8x8xf32> -> vector<8x8xf32>
    %cst_26 = arith.constant 0.353553385 : f32
    %62 = vector.broadcast %cst_26 : f32 to vector<8x8xf32>
    %63 = arith.mulf %61, %62 : vector<8x8xf32>
    %cst_27 = arith.constant dense<0xFF800000> : vector<8xf32>
    %64 = vector.multi_reduction <maximumf>, %63, %cst_27 [1] : vector<8x8xf32> to vector<8xf32>
    %65 = vector.shape_cast %64 : vector<8xf32> to vector<8x1xf32>
    %66 = vector.broadcast %65 : vector<8x1xf32> to vector<8x8xf32>
    %67 = arith.subf %63, %66 : vector<8x8xf32>
    %68 = math.exp %67 : vector<8x8xf32>
    %cst_28 = arith.constant dense<0.000000e+00> : vector<8xf32>
    %69 = vector.multi_reduction <add>, %68, %cst_28 [1] : vector<8x8xf32> to vector<8xf32>
    %70 = vector.shape_cast %69 : vector<8xf32> to vector<8x1xf32>
    %71 = vector.broadcast %70 : vector<8x1xf32> to vector<8x8xf32>
    %72 = arith.divf %68, %71 : vector<8x8xf32>
    %cst_29 = arith.constant dense<0.000000e+00> : vector<8x8xf32>
    %73 = tpu.matmul %72, %60, %cst_29 {dimension_numbers = #tpu.dot_dimension_numbers<[1], [0], [0], [1], [0, 0, 1, 1], [], []>} : vector<8x8xf32>, vector<8x8xf32>, vector<8x8xf32> -> vector<8x8xf32>
    %74 = vector.extract_strided_slice %23 {offsets = [0, 24], sizes = [8, 8], strides = [1, 1]} : vector<8x32xf32> to vector<8x8xf32>
    %75 = vector.extract_strided_slice %24 {offsets = [0, 24], sizes = [8, 8], strides = [1, 1]} : vector<8x32xf32> to vector<8x8xf32>
    %76 = vector.extract_strided_slice %25 {offsets = [0, 24], sizes = [8, 8], strides = [1, 1]} : vector<8x32xf32> to vector<8x8xf32>
    %cst_30 = arith.constant dense<0.000000e+00> : vector<8x8xf32>
    %77 = tpu.matmul %74, %75, %cst_30 {dimension_numbers = #tpu.dot_dimension_numbers<[1], [1], [0], [0], [0, 0, 1, 0], [], []>} : vector<8x8xf32>, vector<8x8xf32>, vector<8x8xf32> -> vector<8x8xf32>
    %cst_31 = arith.constant 0.353553385 : f32
    %78 = vector.broadcast %cst_31 : f32 to vector<8x8xf32>
    %79 = arith.mulf %77, %78 : vector<8x8xf32>
    %cst_32 = arith.constant dense<0xFF800000> : vector<8xf32>
    %80 = vector.multi_reduction <maximumf>, %79, %cst_32 [1] : vector<8x8xf32> to vector<8xf32>
    %81 = vector.shape_cast %80 : vector<8xf32> to vector<8x1xf32>
    %82 = vector.broadcast %81 : vector<8x1xf32> to vector<8x8xf32>
    %83 = arith.subf %79, %82 : vector<8x8xf32>
    %84 = math.exp %83 : vector<8x8xf32>
    %cst_33 = arith.constant dense<0.000000e+00> : vector<8xf32>
    %85 = vector.multi_reduction <add>, %84, %cst_33 [1] : vector<8x8xf32> to vector<8xf32>
    %86 = vector.shape_cast %85 : vector<8xf32> to vector<8x1xf32>
    %87 = vector.broadcast %86 : vector<8x1xf32> to vector<8x8xf32>
    %88 = arith.divf %84, %87 : vector<8x8xf32>
    %cst_34 = arith.constant dense<0.000000e+00> : vector<8x8xf32>
    %89 = tpu.matmul %88, %76, %cst_34 {dimension_numbers = #tpu.dot_dimension_numbers<[1], [0], [0], [1], [0, 0, 1, 1], [], []>} : vector<8x8xf32>, vector<8x8xf32>, vector<8x8xf32> -> vector<8x8xf32>
    %90 = tpu.concatenate %41, %57, %73, %89 in 1 : vector<8x8xf32>, vector<8x8xf32>, vector<8x8xf32>, vector<8x8xf32> -> vector<8x32xf32>
    %c0_35 = arith.constant 0 : index
    %c0_36 = arith.constant 0 : index
    %c0_37 = arith.constant 0 : index
    %91 = vector.load %arg10[%c0_35, %c0_36, %c0_37] : memref<2x32x32xf32, #tpu.memory_space<vmem>>, vector<1x32x32xf32>
    %92 = vector.shape_cast %91 : vector<1x32x32xf32> to vector<32x32xf32>
    %cst_38 = arith.constant dense<0.000000e+00> : vector<8x32xf32>
    %93 = tpu.matmul %90, %92, %cst_38 {dimension_numbers = #tpu.dot_dimension_numbers<[1], [0], [0], [1], [0, 0, 1, 1], [], []>} : vector<8x32xf32>, vector<32x32xf32>, vector<8x32xf32> -> vector<8x32xf32>
    %c0_39 = arith.constant 0 : index
    %c0_40 = arith.constant 0 : index
    %c0_41 = arith.constant 0 : index
    %94 = vector.load %arg11[%c0_39, %c0_40, %c0_41] : memref<2x1x32xf32, #tpu.memory_space<vmem>>, vector<1x1x32xf32>
    %95 = vector.shape_cast %94 : vector<1x1x32xf32> to vector<1x32xf32>
    %96 = vector.broadcast %95 : vector<1x32xf32> to vector<8x32xf32>
    %97 = arith.addf %93, %96 : vector<8x32xf32>
    %98 = arith.addf %15, %97 : vector<8x32xf32>
    %c0_42 = arith.constant 0 : index
    %c0_43 = arith.constant 0 : index
    %c0_44 = arith.constant 0 : index
    %99 = vector.load %arg12[%c0_42, %c0_43, %c0_44] : memref<2x1x32xf32, #tpu.memory_space<vmem>>, vector<1x1x32xf32>
    %100 = vector.shape_cast %99 : vector<1x1x32xf32> to vector<1x32xf32>
    %c0_45 = arith.constant 0 : index
    %c0_46 = arith.constant 0 : index
    %c0_47 = arith.constant 0 : index
    %101 = vector.load %arg13[%c0_45, %c0_46, %c0_47] : memref<2x1x32xf32, #tpu.memory_space<vmem>>, vector<1x1x32xf32>
    %102 = vector.shape_cast %101 : vector<1x1x32xf32> to vector<1x32xf32>
    %cst_48 = arith.constant dense<0.000000e+00> : vector<8xf32>
    %103 = vector.multi_reduction <add>, %98, %cst_48 [1] : vector<8x32xf32> to vector<8xf32>
    %104 = vector.shape_cast %103 : vector<8xf32> to vector<8x1xf32>
    %cst_49 = arith.constant 3.200000e+01 : f32
    %105 = vector.broadcast %cst_49 : f32 to vector<8x1xf32>
    %106 = arith.divf %104, %105 : vector<8x1xf32>
    %107 = vector.broadcast %106 : vector<8x1xf32> to vector<8x32xf32>
    %108 = arith.subf %98, %107 : vector<8x32xf32>
    %109 = arith.mulf %108, %108 : vector<8x32xf32>
    %cst_50 = arith.constant dense<0.000000e+00> : vector<8xf32>
    %110 = vector.multi_reduction <add>, %109, %cst_50 [1] : vector<8x32xf32> to vector<8xf32>
    %111 = vector.shape_cast %110 : vector<8xf32> to vector<8x1xf32>
    %cst_51 = arith.constant 3.200000e+01 : f32
    %112 = vector.broadcast %cst_51 : f32 to vector<8x1xf32>
    %113 = arith.divf %111, %112 : vector<8x1xf32>
    %cst_52 = arith.constant 9.99999974E-6 : f32
    %114 = vector.broadcast %cst_52 : f32 to vector<8x1xf32>
    %115 = arith.addf %113, %114 : vector<8x1xf32>
    %116 = math.rsqrt %115 : vector<8x1xf32>
    %117 = vector.broadcast %116 : vector<8x1xf32> to vector<8x32xf32>
    %118 = arith.mulf %108, %117 : vector<8x32xf32>
    %119 = vector.broadcast %100 : vector<1x32xf32> to vector<8x32xf32>
    %120 = arith.mulf %118, %119 : vector<8x32xf32>
    %121 = vector.broadcast %102 : vector<1x32xf32> to vector<8x32xf32>
    %122 = arith.addf %120, %121 : vector<8x32xf32>
    %c0_53 = arith.constant 0 : index
    %c0_54 = arith.constant 0 : index
    %c0_55 = arith.constant 0 : index
    %123 = vector.load %arg14[%c0_53, %c0_54, %c0_55] : memref<2x32x64xf32, #tpu.memory_space<vmem>>, vector<1x32x64xf32>
    %124 = vector.shape_cast %123 : vector<1x32x64xf32> to vector<32x64xf32>
    %cst_56 = arith.constant dense<0.000000e+00> : vector<8x64xf32>
    %125 = tpu.matmul %122, %124, %cst_56 {dimension_numbers = #tpu.dot_dimension_numbers<[1], [0], [0], [1], [0, 0, 1, 1], [], []>} : vector<8x32xf32>, vector<32x64xf32>, vector<8x64xf32> -> vector<8x64xf32>
    %c0_57 = arith.constant 0 : index
    %c0_58 = arith.constant 0 : index
    %c0_59 = arith.constant 0 : index
    %126 = vector.load %arg15[%c0_57, %c0_58, %c0_59] : memref<2x1x64xf32, #tpu.memory_space<vmem>>, vector<1x1x64xf32>
    %127 = vector.shape_cast %126 : vector<1x1x64xf32> to vector<1x64xf32>
    %128 = vector.broadcast %127 : vector<1x64xf32> to vector<8x64xf32>
    %129 = arith.addf %125, %128 : vector<8x64xf32>
    %cst_60 = arith.constant 0.000000e+00 : f32
    %130 = vector.broadcast %cst_60 : f32 to vector<8x64xf32>
    %131 = arith.maximumf %129, %130 : vector<8x64xf32>
    %c0_61 = arith.constant 0 : index
    %c0_62 = arith.constant 0 : index
    %c0_63 = arith.constant 0 : index
    %132 = vector.load %arg16[%c0_61, %c0_62, %c0_63] : memref<2x64x32xf32, #tpu.memory_space<vmem>>, vector<1x64x32xf32>
    %133 = vector.shape_cast %132 : vector<1x64x32xf32> to vector<64x32xf32>
    %cst_64 = arith.constant dense<0.000000e+00> : vector<8x32xf32>
    %134 = tpu.matmul %131, %133, %cst_64 {dimension_numbers = #tpu.dot_dimension_numbers<[1], [0], [0], [1], [0, 0, 1, 1], [], []>} : vector<8x64xf32>, vector<64x32xf32>, vector<8x32xf32> -> vector<8x32xf32>
    %c0_65 = arith.constant 0 : index
    %c0_66 = arith.constant 0 : index
    %c0_67 = arith.constant 0 : index
    %135 = vector.load %arg17[%c0_65, %c0_66, %c0_67] : memref<2x1x32xf32, #tpu.memory_space<vmem>>, vector<1x1x32xf32>
    %136 = vector.shape_cast %135 : vector<1x1x32xf32> to vector<1x32xf32>
    %137 = vector.broadcast %136 : vector<1x32xf32> to vector<8x32xf32>
    %138 = arith.addf %134, %137 : vector<8x32xf32>
    %139 = arith.addf %122, %138 : vector<8x32xf32>
    %c0_68 = arith.constant 0 : index
    %c0_69 = arith.constant 0 : index
    %c0_70 = arith.constant 0 : index
    %140 = vector.load %arg18[%c0_68, %c0_69, %c0_70] : memref<2x1x32xf32, #tpu.memory_space<vmem>>, vector<1x1x32xf32>
    %141 = vector.shape_cast %140 : vector<1x1x32xf32> to vector<1x32xf32>
    %c0_71 = arith.constant 0 : index
    %c0_72 = arith.constant 0 : index
    %c0_73 = arith.constant 0 : index
    %142 = vector.load %arg19[%c0_71, %c0_72, %c0_73] : memref<2x1x32xf32, #tpu.memory_space<vmem>>, vector<1x1x32xf32>
    %143 = vector.shape_cast %142 : vector<1x1x32xf32> to vector<1x32xf32>
    %cst_74 = arith.constant dense<0.000000e+00> : vector<8xf32>
    %144 = vector.multi_reduction <add>, %139, %cst_74 [1] : vector<8x32xf32> to vector<8xf32>
    %145 = vector.shape_cast %144 : vector<8xf32> to vector<8x1xf32>
    %cst_75 = arith.constant 3.200000e+01 : f32
    %146 = vector.broadcast %cst_75 : f32 to vector<8x1xf32>
    %147 = arith.divf %145, %146 : vector<8x1xf32>
    %148 = vector.broadcast %147 : vector<8x1xf32> to vector<8x32xf32>
    %149 = arith.subf %139, %148 : vector<8x32xf32>
    %150 = arith.mulf %149, %149 : vector<8x32xf32>
    %cst_76 = arith.constant dense<0.000000e+00> : vector<8xf32>
    %151 = vector.multi_reduction <add>, %150, %cst_76 [1] : vector<8x32xf32> to vector<8xf32>
    %152 = vector.shape_cast %151 : vector<8xf32> to vector<8x1xf32>
    %cst_77 = arith.constant 3.200000e+01 : f32
    %153 = vector.broadcast %cst_77 : f32 to vector<8x1xf32>
    %154 = arith.divf %152, %153 : vector<8x1xf32>
    %cst_78 = arith.constant 9.99999974E-6 : f32
    %155 = vector.broadcast %cst_78 : f32 to vector<8x1xf32>
    %156 = arith.addf %154, %155 : vector<8x1xf32>
    %157 = math.rsqrt %156 : vector<8x1xf32>
    %158 = vector.broadcast %157 : vector<8x1xf32> to vector<8x32xf32>
    %159 = arith.mulf %149, %158 : vector<8x32xf32>
    %160 = vector.broadcast %141 : vector<1x32xf32> to vector<8x32xf32>
    %161 = arith.mulf %159, %160 : vector<8x32xf32>
    %162 = vector.broadcast %143 : vector<1x32xf32> to vector<8x32xf32>
    %163 = arith.addf %161, %162 : vector<8x32xf32>
    %c1 = arith.constant 1 : index
    %c0_79 = arith.constant 0 : index
    %c0_80 = arith.constant 0 : index
    %164 = vector.load %arg8[%c1, %c0_79, %c0_80] : memref<2x32x96xf32, #tpu.memory_space<vmem>>, vector<1x32x96xf32>
    %165 = vector.shape_cast %164 : vector<1x32x96xf32> to vector<32x96xf32>
    %cst_81 = arith.constant dense<0.000000e+00> : vector<8x96xf32>
    %166 = tpu.matmul %163, %165, %cst_81 {dimension_numbers = #tpu.dot_dimension_numbers<[1], [0], [0], [1], [0, 0, 1, 1], [], []>} : vector<8x32xf32>, vector<32x96xf32>, vector<8x96xf32> -> vector<8x96xf32>
    %c1_82 = arith.constant 1 : index
    %c0_83 = arith.constant 0 : index
    %c0_84 = arith.constant 0 : index
    %167 = vector.load %arg9[%c1_82, %c0_83, %c0_84] : memref<2x1x96xf32, #tpu.memory_space<vmem>>, vector<1x1x96xf32>
    %168 = vector.shape_cast %167 : vector<1x1x96xf32> to vector<1x96xf32>
    %169 = vector.broadcast %168 : vector<1x96xf32> to vector<8x96xf32>
    %170 = arith.addf %166, %169 : vector<8x96xf32>
    %171 = vector.extract_strided_slice %170 {offsets = [0, 0], sizes = [8, 32], strides = [1, 1]} : vector<8x96xf32> to vector<8x32xf32>
    %172 = vector.extract_strided_slice %170 {offsets = [0, 32], sizes = [8, 32], strides = [1, 1]} : vector<8x96xf32> to vector<8x32xf32>
    %173 = vector.extract_strided_slice %170 {offsets = [0, 64], sizes = [8, 32], strides = [1, 1]} : vector<8x96xf32> to vector<8x32xf32>
    %174 = vector.extract_strided_slice %171 {offsets = [0, 0], sizes = [8, 8], strides = [1, 1]} : vector<8x32xf32> to vector<8x8xf32>
    %175 = vector.extract_strided_slice %172 {offsets = [0, 0], sizes = [8, 8], strides = [1, 1]} : vector<8x32xf32> to vector<8x8xf32>
    %176 = vector.extract_strided_slice %173 {offsets = [0, 0], sizes = [8, 8], strides = [1, 1]} : vector<8x32xf32> to vector<8x8xf32>
    %cst_85 = arith.constant dense<0.000000e+00> : vector<8x8xf32>
    %177 = tpu.matmul %174, %175, %cst_85 {dimension_numbers = #tpu.dot_dimension_numbers<[1], [1], [0], [0], [0, 0, 1, 0], [], []>} : vector<8x8xf32>, vector<8x8xf32>, vector<8x8xf32> -> vector<8x8xf32>
    %cst_86 = arith.constant 0.353553385 : f32
    %178 = vector.broadcast %cst_86 : f32 to vector<8x8xf32>
    %179 = arith.mulf %177, %178 : vector<8x8xf32>
    %cst_87 = arith.constant dense<0xFF800000> : vector<8xf32>
    %180 = vector.multi_reduction <maximumf>, %179, %cst_87 [1] : vector<8x8xf32> to vector<8xf32>
    %181 = vector.shape_cast %180 : vector<8xf32> to vector<8x1xf32>
    %182 = vector.broadcast %181 : vector<8x1xf32> to vector<8x8xf32>
    %183 = arith.subf %179, %182 : vector<8x8xf32>
    %184 = math.exp %183 : vector<8x8xf32>
    %cst_88 = arith.constant dense<0.000000e+00> : vector<8xf32>
    %185 = vector.multi_reduction <add>, %184, %cst_88 [1] : vector<8x8xf32> to vector<8xf32>
    %186 = vector.shape_cast %185 : vector<8xf32> to vector<8x1xf32>
    %187 = vector.broadcast %186 : vector<8x1xf32> to vector<8x8xf32>
    %188 = arith.divf %184, %187 : vector<8x8xf32>
    %cst_89 = arith.constant dense<0.000000e+00> : vector<8x8xf32>
    %189 = tpu.matmul %188, %176, %cst_89 {dimension_numbers = #tpu.dot_dimension_numbers<[1], [0], [0], [1], [0, 0, 1, 1], [], []>} : vector<8x8xf32>, vector<8x8xf32>, vector<8x8xf32> -> vector<8x8xf32>
    %190 = vector.extract_strided_slice %171 {offsets = [0, 8], sizes = [8, 8], strides = [1, 1]} : vector<8x32xf32> to vector<8x8xf32>
    %191 = vector.extract_strided_slice %172 {offsets = [0, 8], sizes = [8, 8], strides = [1, 1]} : vector<8x32xf32> to vector<8x8xf32>
    %192 = vector.extract_strided_slice %173 {offsets = [0, 8], sizes = [8, 8], strides = [1, 1]} : vector<8x32xf32> to vector<8x8xf32>
    %cst_90 = arith.constant dense<0.000000e+00> : vector<8x8xf32>
    %193 = tpu.matmul %190, %191, %cst_90 {dimension_numbers = #tpu.dot_dimension_numbers<[1], [1], [0], [0], [0, 0, 1, 0], [], []>} : vector<8x8xf32>, vector<8x8xf32>, vector<8x8xf32> -> vector<8x8xf32>
    %cst_91 = arith.constant 0.353553385 : f32
    %194 = vector.broadcast %cst_91 : f32 to vector<8x8xf32>
    %195 = arith.mulf %193, %194 : vector<8x8xf32>
    %cst_92 = arith.constant dense<0xFF800000> : vector<8xf32>
    %196 = vector.multi_reduction <maximumf>, %195, %cst_92 [1] : vector<8x8xf32> to vector<8xf32>
    %197 = vector.shape_cast %196 : vector<8xf32> to vector<8x1xf32>
    %198 = vector.broadcast %197 : vector<8x1xf32> to vector<8x8xf32>
    %199 = arith.subf %195, %198 : vector<8x8xf32>
    %200 = math.exp %199 : vector<8x8xf32>
    %cst_93 = arith.constant dense<0.000000e+00> : vector<8xf32>
    %201 = vector.multi_reduction <add>, %200, %cst_93 [1] : vector<8x8xf32> to vector<8xf32>
    %202 = vector.shape_cast %201 : vector<8xf32> to vector<8x1xf32>
    %203 = vector.broadcast %202 : vector<8x1xf32> to vector<8x8xf32>
    %204 = arith.divf %200, %203 : vector<8x8xf32>
    %cst_94 = arith.constant dense<0.000000e+00> : vector<8x8xf32>
    %205 = tpu.matmul %204, %192, %cst_94 {dimension_numbers = #tpu.dot_dimension_numbers<[1], [0], [0], [1], [0, 0, 1, 1], [], []>} : vector<8x8xf32>, vector<8x8xf32>, vector<8x8xf32> -> vector<8x8xf32>
    %206 = vector.extract_strided_slice %171 {offsets = [0, 16], sizes = [8, 8], strides = [1, 1]} : vector<8x32xf32> to vector<8x8xf32>
    %207 = vector.extract_strided_slice %172 {offsets = [0, 16], sizes = [8, 8], strides = [1, 1]} : vector<8x32xf32> to vector<8x8xf32>
    %208 = vector.extract_strided_slice %173 {offsets = [0, 16], sizes = [8, 8], strides = [1, 1]} : vector<8x32xf32> to vector<8x8xf32>
    %cst_95 = arith.constant dense<0.000000e+00> : vector<8x8xf32>
    %209 = tpu.matmul %206, %207, %cst_95 {dimension_numbers = #tpu.dot_dimension_numbers<[1], [1], [0], [0], [0, 0, 1, 0], [], []>} : vector<8x8xf32>, vector<8x8xf32>, vector<8x8xf32> -> vector<8x8xf32>
    %cst_96 = arith.constant 0.353553385 : f32
    %210 = vector.broadcast %cst_96 : f32 to vector<8x8xf32>
    %211 = arith.mulf %209, %210 : vector<8x8xf32>
    %cst_97 = arith.constant dense<0xFF800000> : vector<8xf32>
    %212 = vector.multi_reduction <maximumf>, %211, %cst_97 [1] : vector<8x8xf32> to vector<8xf32>
    %213 = vector.shape_cast %212 : vector<8xf32> to vector<8x1xf32>
    %214 = vector.broadcast %213 : vector<8x1xf32> to vector<8x8xf32>
    %215 = arith.subf %211, %214 : vector<8x8xf32>
    %216 = math.exp %215 : vector<8x8xf32>
    %cst_98 = arith.constant dense<0.000000e+00> : vector<8xf32>
    %217 = vector.multi_reduction <add>, %216, %cst_98 [1] : vector<8x8xf32> to vector<8xf32>
    %218 = vector.shape_cast %217 : vector<8xf32> to vector<8x1xf32>
    %219 = vector.broadcast %218 : vector<8x1xf32> to vector<8x8xf32>
    %220 = arith.divf %216, %219 : vector<8x8xf32>
    %cst_99 = arith.constant dense<0.000000e+00> : vector<8x8xf32>
    %221 = tpu.matmul %220, %208, %cst_99 {dimension_numbers = #tpu.dot_dimension_numbers<[1], [0], [0], [1], [0, 0, 1, 1], [], []>} : vector<8x8xf32>, vector<8x8xf32>, vector<8x8xf32> -> vector<8x8xf32>
    %222 = vector.extract_strided_slice %171 {offsets = [0, 24], sizes = [8, 8], strides = [1, 1]} : vector<8x32xf32> to vector<8x8xf32>
    %223 = vector.extract_strided_slice %172 {offsets = [0, 24], sizes = [8, 8], strides = [1, 1]} : vector<8x32xf32> to vector<8x8xf32>
    %224 = vector.extract_strided_slice %173 {offsets = [0, 24], sizes = [8, 8], strides = [1, 1]} : vector<8x32xf32> to vector<8x8xf32>
    %cst_100 = arith.constant dense<0.000000e+00> : vector<8x8xf32>
    %225 = tpu.matmul %222, %223, %cst_100 {dimension_numbers = #tpu.dot_dimension_numbers<[1], [1], [0], [0], [0, 0, 1, 0], [], []>} : vector<8x8xf32>, vector<8x8xf32>, vector<8x8xf32> -> vector<8x8xf32>
    %cst_101 = arith.constant 0.353553385 : f32
    %226 = vector.broadcast %cst_101 : f32 to vector<8x8xf32>
    %227 = arith.mulf %225, %226 : vector<8x8xf32>
    %cst_102 = arith.constant dense<0xFF800000> : vector<8xf32>
    %228 = vector.multi_reduction <maximumf>, %227, %cst_102 [1] : vector<8x8xf32> to vector<8xf32>
    %229 = vector.shape_cast %228 : vector<8xf32> to vector<8x1xf32>
    %230 = vector.broadcast %229 : vector<8x1xf32> to vector<8x8xf32>
    %231 = arith.subf %227, %230 : vector<8x8xf32>
    %232 = math.exp %231 : vector<8x8xf32>
    %cst_103 = arith.constant dense<0.000000e+00> : vector<8xf32>
    %233 = vector.multi_reduction <add>, %232, %cst_103 [1] : vector<8x8xf32> to vector<8xf32>
    %234 = vector.shape_cast %233 : vector<8xf32> to vector<8x1xf32>
    %235 = vector.broadcast %234 : vector<8x1xf32> to vector<8x8xf32>
    %236 = arith.divf %232, %235 : vector<8x8xf32>
    %cst_104 = arith.constant dense<0.000000e+00> : vector<8x8xf32>
    %237 = tpu.matmul %236, %224, %cst_104 {dimension_numbers = #tpu.dot_dimension_numbers<[1], [0], [0], [1], [0, 0, 1, 1], [], []>} : vector<8x8xf32>, vector<8x8xf32>, vector<8x8xf32> -> vector<8x8xf32>
    %238 = tpu.concatenate %189, %205, %221, %237 in 1 : vector<8x8xf32>, vector<8x8xf32>, vector<8x8xf32>, vector<8x8xf32> -> vector<8x32xf32>
    %c1_105 = arith.constant 1 : index
    %c0_106 = arith.constant 0 : index
    %c0_107 = arith.constant 0 : index
    %239 = vector.load %arg10[%c1_105, %c0_106, %c0_107] : memref<2x32x32xf32, #tpu.memory_space<vmem>>, vector<1x32x32xf32>
    %240 = vector.shape_cast %239 : vector<1x32x32xf32> to vector<32x32xf32>
    %cst_108 = arith.constant dense<0.000000e+00> : vector<8x32xf32>
    %241 = tpu.matmul %238, %240, %cst_108 {dimension_numbers = #tpu.dot_dimension_numbers<[1], [0], [0], [1], [0, 0, 1, 1], [], []>} : vector<8x32xf32>, vector<32x32xf32>, vector<8x32xf32> -> vector<8x32xf32>
    %c1_109 = arith.constant 1 : index
    %c0_110 = arith.constant 0 : index
    %c0_111 = arith.constant 0 : index
    %242 = vector.load %arg11[%c1_109, %c0_110, %c0_111] : memref<2x1x32xf32, #tpu.memory_space<vmem>>, vector<1x1x32xf32>
    %243 = vector.shape_cast %242 : vector<1x1x32xf32> to vector<1x32xf32>
    %244 = vector.broadcast %243 : vector<1x32xf32> to vector<8x32xf32>
    %245 = arith.addf %241, %244 : vector<8x32xf32>
    %246 = arith.addf %163, %245 : vector<8x32xf32>
    %c1_112 = arith.constant 1 : index
    %c0_113 = arith.constant 0 : index
    %c0_114 = arith.constant 0 : index
    %247 = vector.load %arg12[%c1_112, %c0_113, %c0_114] : memref<2x1x32xf32, #tpu.memory_space<vmem>>, vector<1x1x32xf32>
    %248 = vector.shape_cast %247 : vector<1x1x32xf32> to vector<1x32xf32>
    %c1_115 = arith.constant 1 : index
    %c0_116 = arith.constant 0 : index
    %c0_117 = arith.constant 0 : index
    %249 = vector.load %arg13[%c1_115, %c0_116, %c0_117] : memref<2x1x32xf32, #tpu.memory_space<vmem>>, vector<1x1x32xf32>
    %250 = vector.shape_cast %249 : vector<1x1x32xf32> to vector<1x32xf32>
    %cst_118 = arith.constant dense<0.000000e+00> : vector<8xf32>
    %251 = vector.multi_reduction <add>, %246, %cst_118 [1] : vector<8x32xf32> to vector<8xf32>
    %252 = vector.shape_cast %251 : vector<8xf32> to vector<8x1xf32>
    %cst_119 = arith.constant 3.200000e+01 : f32
    %253 = vector.broadcast %cst_119 : f32 to vector<8x1xf32>
    %254 = arith.divf %252, %253 : vector<8x1xf32>
    %255 = vector.broadcast %254 : vector<8x1xf32> to vector<8x32xf32>
    %256 = arith.subf %246, %255 : vector<8x32xf32>
    %257 = arith.mulf %256, %256 : vector<8x32xf32>
    %cst_120 = arith.constant dense<0.000000e+00> : vector<8xf32>
    %258 = vector.multi_reduction <add>, %257, %cst_120 [1] : vector<8x32xf32> to vector<8xf32>
    %259 = vector.shape_cast %258 : vector<8xf32> to vector<8x1xf32>
    %cst_121 = arith.constant 3.200000e+01 : f32
    %260 = vector.broadcast %cst_121 : f32 to vector<8x1xf32>
    %261 = arith.divf %259, %260 : vector<8x1xf32>
    %cst_122 = arith.constant 9.99999974E-6 : f32
    %262 = vector.broadcast %cst_122 : f32 to vector<8x1xf32>
    %263 = arith.addf %261, %262 : vector<8x1xf32>
    %264 = math.rsqrt %263 : vector<8x1xf32>
    %265 = vector.broadcast %264 : vector<8x1xf32> to vector<8x32xf32>
    %266 = arith.mulf %256, %265 : vector<8x32xf32>
    %267 = vector.broadcast %248 : vector<1x32xf32> to vector<8x32xf32>
    %268 = arith.mulf %266, %267 : vector<8x32xf32>
    %269 = vector.broadcast %250 : vector<1x32xf32> to vector<8x32xf32>
    %270 = arith.addf %268, %269 : vector<8x32xf32>
    %c1_123 = arith.constant 1 : index
    %c0_124 = arith.constant 0 : index
    %c0_125 = arith.constant 0 : index
    %271 = vector.load %arg14[%c1_123, %c0_124, %c0_125] : memref<2x32x64xf32, #tpu.memory_space<vmem>>, vector<1x32x64xf32>
    %272 = vector.shape_cast %271 : vector<1x32x64xf32> to vector<32x64xf32>
    %cst_126 = arith.constant dense<0.000000e+00> : vector<8x64xf32>
    %273 = tpu.matmul %270, %272, %cst_126 {dimension_numbers = #tpu.dot_dimension_numbers<[1], [0], [0], [1], [0, 0, 1, 1], [], []>} : vector<8x32xf32>, vector<32x64xf32>, vector<8x64xf32> -> vector<8x64xf32>
    %c1_127 = arith.constant 1 : index
    %c0_128 = arith.constant 0 : index
    %c0_129 = arith.constant 0 : index
    %274 = vector.load %arg15[%c1_127, %c0_128, %c0_129] : memref<2x1x64xf32, #tpu.memory_space<vmem>>, vector<1x1x64xf32>
    %275 = vector.shape_cast %274 : vector<1x1x64xf32> to vector<1x64xf32>
    %276 = vector.broadcast %275 : vector<1x64xf32> to vector<8x64xf32>
    %277 = arith.addf %273, %276 : vector<8x64xf32>
    %cst_130 = arith.constant 0.000000e+00 : f32
    %278 = vector.broadcast %cst_130 : f32 to vector<8x64xf32>
    %279 = arith.maximumf %277, %278 : vector<8x64xf32>
    %c1_131 = arith.constant 1 : index
    %c0_132 = arith.constant 0 : index
    %c0_133 = arith.constant 0 : index
    %280 = vector.load %arg16[%c1_131, %c0_132, %c0_133] : memref<2x64x32xf32, #tpu.memory_space<vmem>>, vector<1x64x32xf32>
    %281 = vector.shape_cast %280 : vector<1x64x32xf32> to vector<64x32xf32>
    %cst_134 = arith.constant dense<0.000000e+00> : vector<8x32xf32>
    %282 = tpu.matmul %279, %281, %cst_134 {dimension_numbers = #tpu.dot_dimension_numbers<[1], [0], [0], [1], [0, 0, 1, 1], [], []>} : vector<8x64xf32>, vector<64x32xf32>, vector<8x32xf32> -> vector<8x32xf32>
    %c1_135 = arith.constant 1 : index
    %c0_136 = arith.constant 0 : index
    %c0_137 = arith.constant 0 : index
    %283 = vector.load %arg17[%c1_135, %c0_136, %c0_137] : memref<2x1x32xf32, #tpu.memory_space<vmem>>, vector<1x1x32xf32>
    %284 = vector.shape_cast %283 : vector<1x1x32xf32> to vector<1x32xf32>
    %285 = vector.broadcast %284 : vector<1x32xf32> to vector<8x32xf32>
    %286 = arith.addf %282, %285 : vector<8x32xf32>
    %287 = arith.addf %270, %286 : vector<8x32xf32>
    %c1_138 = arith.constant 1 : index
    %c0_139 = arith.constant 0 : index
    %c0_140 = arith.constant 0 : index
    %288 = vector.load %arg18[%c1_138, %c0_139, %c0_140] : memref<2x1x32xf32, #tpu.memory_space<vmem>>, vector<1x1x32xf32>
    %289 = vector.shape_cast %288 : vector<1x1x32xf32> to vector<1x32xf32>
    %c1_141 = arith.constant 1 : index
    %c0_142 = arith.constant 0 : index
    %c0_143 = arith.constant 0 : index
    %290 = vector.load %arg19[%c1_141, %c0_142, %c0_143] : memref<2x1x32xf32, #tpu.memory_space<vmem>>, vector<1x1x32xf32>
    %291 = vector.shape_cast %290 : vector<1x1x32xf32> to vector<1x32xf32>
    %cst_144 = arith.constant dense<0.000000e+00> : vector<8xf32>
    %292 = vector.multi_reduction <add>, %287, %cst_144 [1] : vector<8x32xf32> to vector<8xf32>
    %293 = vector.shape_cast %292 : vector<8xf32> to vector<8x1xf32>
    %cst_145 = arith.constant 3.200000e+01 : f32
    %294 = vector.broadcast %cst_145 : f32 to vector<8x1xf32>
    %295 = arith.divf %293, %294 : vector<8x1xf32>
    %296 = vector.broadcast %295 : vector<8x1xf32> to vector<8x32xf32>
    %297 = arith.subf %287, %296 : vector<8x32xf32>
    %298 = arith.mulf %297, %297 : vector<8x32xf32>
    %cst_146 = arith.constant dense<0.000000e+00> : vector<8xf32>
    %299 = vector.multi_reduction <add>, %298, %cst_146 [1] : vector<8x32xf32> to vector<8xf32>
    %300 = vector.shape_cast %299 : vector<8xf32> to vector<8x1xf32>
    %cst_147 = arith.constant 3.200000e+01 : f32
    %301 = vector.broadcast %cst_147 : f32 to vector<8x1xf32>
    %302 = arith.divf %300, %301 : vector<8x1xf32>
    %cst_148 = arith.constant 9.99999974E-6 : f32
    %303 = vector.broadcast %cst_148 : f32 to vector<8x1xf32>
    %304 = arith.addf %302, %303 : vector<8x1xf32>
    %305 = math.rsqrt %304 : vector<8x1xf32>
    %306 = vector.broadcast %305 : vector<8x1xf32> to vector<8x32xf32>
    %307 = arith.mulf %297, %306 : vector<8x32xf32>
    %308 = vector.broadcast %289 : vector<1x32xf32> to vector<8x32xf32>
    %309 = arith.mulf %307, %308 : vector<8x32xf32>
    %310 = vector.broadcast %291 : vector<1x32xf32> to vector<8x32xf32>
    %311 = arith.addf %309, %310 : vector<8x32xf32>
    %c0_149 = arith.constant 0 : index
    %c0_150 = arith.constant 0 : index
    %312 = vector.load %arg20[%c0_149, %c0_150] : memref<1x32xf32, #tpu.memory_space<vmem>>, vector<1x32xf32>
    %c0_151 = arith.constant 0 : index
    %c0_152 = arith.constant 0 : index
    %313 = vector.load %arg21[%c0_151, %c0_152] : memref<1x32xf32, #tpu.memory_space<vmem>>, vector<1x32xf32>
    %cst_153 = arith.constant dense<0.000000e+00> : vector<8xf32>
    %314 = vector.multi_reduction <add>, %311, %cst_153 [1] : vector<8x32xf32> to vector<8xf32>
    %315 = vector.shape_cast %314 : vector<8xf32> to vector<8x1xf32>
    %cst_154 = arith.constant 3.200000e+01 : f32
    %316 = vector.broadcast %cst_154 : f32 to vector<8x1xf32>
    %317 = arith.divf %315, %316 : vector<8x1xf32>
    %318 = vector.broadcast %317 : vector<8x1xf32> to vector<8x32xf32>
    %319 = arith.subf %311, %318 : vector<8x32xf32>
    %320 = arith.mulf %319, %319 : vector<8x32xf32>
    %cst_155 = arith.constant dense<0.000000e+00> : vector<8xf32>
    %321 = vector.multi_reduction <add>, %320, %cst_155 [1] : vector<8x32xf32> to vector<8xf32>
    %322 = vector.shape_cast %321 : vector<8xf32> to vector<8x1xf32>
    %cst_156 = arith.constant 3.200000e+01 : f32
    %323 = vector.broadcast %cst_156 : f32 to vector<8x1xf32>
    %324 = arith.divf %322, %323 : vector<8x1xf32>
    %cst_157 = arith.constant 9.99999974E-6 : f32
    %325 = vector.broadcast %cst_157 : f32 to vector<8x1xf32>
    %326 = arith.addf %324, %325 : vector<8x1xf32>
    %327 = math.rsqrt %326 : vector<8x1xf32>
    %328 = vector.broadcast %327 : vector<8x1xf32> to vector<8x32xf32>
    %329 = arith.mulf %319, %328 : vector<8x32xf32>
    %330 = vector.broadcast %312 : vector<1x32xf32> to vector<8x32xf32>
    %331 = arith.mulf %329, %330 : vector<8x32xf32>
    %332 = vector.broadcast %313 : vector<1x32xf32> to vector<8x32xf32>
    %333 = arith.addf %331, %332 : vector<8x32xf32>
    %c0_158 = arith.constant 0 : index
    %c0_159 = arith.constant 0 : index
    %c0_160 = arith.constant 0 : index
    %334 = vector.load %arg2[%c0_158, %c0_159, %c0_160] : memref<1x8x4xf32, #tpu.memory_space<vmem>>, vector<1x8x4xf32>
    %335 = vector.shape_cast %334 : vector<1x8x4xf32> to vector<8x4xf32>
    %c0_161 = arith.constant 0 : index
    %c0_162 = arith.constant 0 : index
    %336 = vector.load %arg6[%c0_161, %c0_162] : memref<12x32xf32, #tpu.memory_space<vmem>>, vector<12x32xf32>
    %c0_163 = arith.constant 0 : index
    %c0_164 = arith.constant 0 : index
    %337 = vector.load %arg7[%c0_163, %c0_164] : memref<1x32xf32, #tpu.memory_space<vmem>>, vector<1x32xf32>
    %c0_165 = arith.constant 0 : index
    %c0_166 = arith.constant 0 : index
    %338 = vector.load %arg3[%c0_165, %c0_166] : memref<64x32xf32, #tpu.memory_space<vmem>>, vector<8x32xf32>
    %339 = vector.extract_strided_slice %335 {offsets = [7, 0], sizes = [1, 4], strides = [1, 1]} : vector<8x4xf32> to vector<1x4xf32>
    %340 = vector.extract_strided_slice %335 {offsets = [0, 0], sizes = [7, 4], strides = [1, 1]} : vector<8x4xf32> to vector<7x4xf32>
    %341 = tpu.concatenate %339, %340 in 0 : vector<1x4xf32>, vector<7x4xf32> -> vector<8x4xf32>
    %342 = vector.extract_strided_slice %335 {offsets = [1, 0], sizes = [7, 4], strides = [1, 1]} : vector<8x4xf32> to vector<7x4xf32>
    %343 = vector.extract_strided_slice %335 {offsets = [0, 0], sizes = [1, 4], strides = [1, 1]} : vector<8x4xf32> to vector<1x4xf32>
    %344 = tpu.concatenate %342, %343 in 0 : vector<7x4xf32>, vector<1x4xf32> -> vector<8x4xf32>
    %345 = tpu.concatenate %341, %335, %344 in 1 : vector<8x4xf32>, vector<8x4xf32>, vector<8x4xf32> -> vector<8x12xf32>
    %cst_167 = arith.constant dense<0.000000e+00> : vector<8x32xf32>
    %346 = tpu.matmul %345, %336, %cst_167 {dimension_numbers = #tpu.dot_dimension_numbers<[1], [0], [0], [1], [0, 0, 1, 1], [], []>} : vector<8x12xf32>, vector<12x32xf32>, vector<8x32xf32> -> vector<8x32xf32>
    %347 = vector.broadcast %337 : vector<1x32xf32> to vector<8x32xf32>
    %348 = arith.addf %346, %347 : vector<8x32xf32>
    %349 = arith.addf %348, %338 : vector<8x32xf32>
    %c0_168 = arith.constant 0 : index
    %c0_169 = arith.constant 0 : index
    %c0_170 = arith.constant 0 : index
    %350 = vector.load %arg22[%c0_168, %c0_169, %c0_170] : memref<2x32x96xf32, #tpu.memory_space<vmem>>, vector<1x32x96xf32>
    %351 = vector.shape_cast %350 : vector<1x32x96xf32> to vector<32x96xf32>
    %cst_171 = arith.constant dense<0.000000e+00> : vector<8x96xf32>
    %352 = tpu.matmul %349, %351, %cst_171 {dimension_numbers = #tpu.dot_dimension_numbers<[1], [0], [0], [1], [0, 0, 1, 1], [], []>} : vector<8x32xf32>, vector<32x96xf32>, vector<8x96xf32> -> vector<8x96xf32>
    %c0_172 = arith.constant 0 : index
    %c0_173 = arith.constant 0 : index
    %c0_174 = arith.constant 0 : index
    %353 = vector.load %arg23[%c0_172, %c0_173, %c0_174] : memref<2x1x96xf32, #tpu.memory_space<vmem>>, vector<1x1x96xf32>
    %354 = vector.shape_cast %353 : vector<1x1x96xf32> to vector<1x96xf32>
    %355 = vector.broadcast %354 : vector<1x96xf32> to vector<8x96xf32>
    %356 = arith.addf %352, %355 : vector<8x96xf32>
    %357 = vector.extract_strided_slice %356 {offsets = [0, 0], sizes = [8, 32], strides = [1, 1]} : vector<8x96xf32> to vector<8x32xf32>
    %358 = vector.extract_strided_slice %356 {offsets = [0, 32], sizes = [8, 32], strides = [1, 1]} : vector<8x96xf32> to vector<8x32xf32>
    %359 = vector.extract_strided_slice %356 {offsets = [0, 64], sizes = [8, 32], strides = [1, 1]} : vector<8x96xf32> to vector<8x32xf32>
    %360 = vector.extract_strided_slice %357 {offsets = [0, 0], sizes = [8, 8], strides = [1, 1]} : vector<8x32xf32> to vector<8x8xf32>
    %361 = vector.extract_strided_slice %358 {offsets = [0, 0], sizes = [8, 8], strides = [1, 1]} : vector<8x32xf32> to vector<8x8xf32>
    %362 = vector.extract_strided_slice %359 {offsets = [0, 0], sizes = [8, 8], strides = [1, 1]} : vector<8x32xf32> to vector<8x8xf32>
    %cst_175 = arith.constant dense<0.000000e+00> : vector<8x8xf32>
    %363 = tpu.matmul %360, %361, %cst_175 {dimension_numbers = #tpu.dot_dimension_numbers<[1], [1], [0], [0], [0, 0, 1, 0], [], []>} : vector<8x8xf32>, vector<8x8xf32>, vector<8x8xf32> -> vector<8x8xf32>
    %cst_176 = arith.constant 0.353553385 : f32
    %364 = vector.broadcast %cst_176 : f32 to vector<8x8xf32>
    %365 = arith.mulf %363, %364 : vector<8x8xf32>
    %cst_177 = arith.constant dense<0xFF800000> : vector<8xf32>
    %366 = vector.multi_reduction <maximumf>, %365, %cst_177 [1] : vector<8x8xf32> to vector<8xf32>
    %367 = vector.shape_cast %366 : vector<8xf32> to vector<8x1xf32>
    %368 = vector.broadcast %367 : vector<8x1xf32> to vector<8x8xf32>
    %369 = arith.subf %365, %368 : vector<8x8xf32>
    %370 = math.exp %369 : vector<8x8xf32>
    %cst_178 = arith.constant dense<0.000000e+00> : vector<8xf32>
    %371 = vector.multi_reduction <add>, %370, %cst_178 [1] : vector<8x8xf32> to vector<8xf32>
    %372 = vector.shape_cast %371 : vector<8xf32> to vector<8x1xf32>
    %373 = vector.broadcast %372 : vector<8x1xf32> to vector<8x8xf32>
    %374 = arith.divf %370, %373 : vector<8x8xf32>
    %cst_179 = arith.constant dense<0.000000e+00> : vector<8x8xf32>
    %375 = tpu.matmul %374, %362, %cst_179 {dimension_numbers = #tpu.dot_dimension_numbers<[1], [0], [0], [1], [0, 0, 1, 1], [], []>} : vector<8x8xf32>, vector<8x8xf32>, vector<8x8xf32> -> vector<8x8xf32>
    %376 = vector.extract_strided_slice %357 {offsets = [0, 8], sizes = [8, 8], strides = [1, 1]} : vector<8x32xf32> to vector<8x8xf32>
    %377 = vector.extract_strided_slice %358 {offsets = [0, 8], sizes = [8, 8], strides = [1, 1]} : vector<8x32xf32> to vector<8x8xf32>
    %378 = vector.extract_strided_slice %359 {offsets = [0, 8], sizes = [8, 8], strides = [1, 1]} : vector<8x32xf32> to vector<8x8xf32>
    %cst_180 = arith.constant dense<0.000000e+00> : vector<8x8xf32>
    %379 = tpu.matmul %376, %377, %cst_180 {dimension_numbers = #tpu.dot_dimension_numbers<[1], [1], [0], [0], [0, 0, 1, 0], [], []>} : vector<8x8xf32>, vector<8x8xf32>, vector<8x8xf32> -> vector<8x8xf32>
    %cst_181 = arith.constant 0.353553385 : f32
    %380 = vector.broadcast %cst_181 : f32 to vector<8x8xf32>
    %381 = arith.mulf %379, %380 : vector<8x8xf32>
    %cst_182 = arith.constant dense<0xFF800000> : vector<8xf32>
    %382 = vector.multi_reduction <maximumf>, %381, %cst_182 [1] : vector<8x8xf32> to vector<8xf32>
    %383 = vector.shape_cast %382 : vector<8xf32> to vector<8x1xf32>
    %384 = vector.broadcast %383 : vector<8x1xf32> to vector<8x8xf32>
    %385 = arith.subf %381, %384 : vector<8x8xf32>
    %386 = math.exp %385 : vector<8x8xf32>
    %cst_183 = arith.constant dense<0.000000e+00> : vector<8xf32>
    %387 = vector.multi_reduction <add>, %386, %cst_183 [1] : vector<8x8xf32> to vector<8xf32>
    %388 = vector.shape_cast %387 : vector<8xf32> to vector<8x1xf32>
    %389 = vector.broadcast %388 : vector<8x1xf32> to vector<8x8xf32>
    %390 = arith.divf %386, %389 : vector<8x8xf32>
    %cst_184 = arith.constant dense<0.000000e+00> : vector<8x8xf32>
    %391 = tpu.matmul %390, %378, %cst_184 {dimension_numbers = #tpu.dot_dimension_numbers<[1], [0], [0], [1], [0, 0, 1, 1], [], []>} : vector<8x8xf32>, vector<8x8xf32>, vector<8x8xf32> -> vector<8x8xf32>
    %392 = vector.extract_strided_slice %357 {offsets = [0, 16], sizes = [8, 8], strides = [1, 1]} : vector<8x32xf32> to vector<8x8xf32>
    %393 = vector.extract_strided_slice %358 {offsets = [0, 16], sizes = [8, 8], strides = [1, 1]} : vector<8x32xf32> to vector<8x8xf32>
    %394 = vector.extract_strided_slice %359 {offsets = [0, 16], sizes = [8, 8], strides = [1, 1]} : vector<8x32xf32> to vector<8x8xf32>
    %cst_185 = arith.constant dense<0.000000e+00> : vector<8x8xf32>
    %395 = tpu.matmul %392, %393, %cst_185 {dimension_numbers = #tpu.dot_dimension_numbers<[1], [1], [0], [0], [0, 0, 1, 0], [], []>} : vector<8x8xf32>, vector<8x8xf32>, vector<8x8xf32> -> vector<8x8xf32>
    %cst_186 = arith.constant 0.353553385 : f32
    %396 = vector.broadcast %cst_186 : f32 to vector<8x8xf32>
    %397 = arith.mulf %395, %396 : vector<8x8xf32>
    %cst_187 = arith.constant dense<0xFF800000> : vector<8xf32>
    %398 = vector.multi_reduction <maximumf>, %397, %cst_187 [1] : vector<8x8xf32> to vector<8xf32>
    %399 = vector.shape_cast %398 : vector<8xf32> to vector<8x1xf32>
    %400 = vector.broadcast %399 : vector<8x1xf32> to vector<8x8xf32>
    %401 = arith.subf %397, %400 : vector<8x8xf32>
    %402 = math.exp %401 : vector<8x8xf32>
    %cst_188 = arith.constant dense<0.000000e+00> : vector<8xf32>
    %403 = vector.multi_reduction <add>, %402, %cst_188 [1] : vector<8x8xf32> to vector<8xf32>
    %404 = vector.shape_cast %403 : vector<8xf32> to vector<8x1xf32>
    %405 = vector.broadcast %404 : vector<8x1xf32> to vector<8x8xf32>
    %406 = arith.divf %402, %405 : vector<8x8xf32>
    %cst_189 = arith.constant dense<0.000000e+00> : vector<8x8xf32>
    %407 = tpu.matmul %406, %394, %cst_189 {dimension_numbers = #tpu.dot_dimension_numbers<[1], [0], [0], [1], [0, 0, 1, 1], [], []>} : vector<8x8xf32>, vector<8x8xf32>, vector<8x8xf32> -> vector<8x8xf32>
    %408 = vector.extract_strided_slice %357 {offsets = [0, 24], sizes = [8, 8], strides = [1, 1]} : vector<8x32xf32> to vector<8x8xf32>
    %409 = vector.extract_strided_slice %358 {offsets = [0, 24], sizes = [8, 8], strides = [1, 1]} : vector<8x32xf32> to vector<8x8xf32>
    %410 = vector.extract_strided_slice %359 {offsets = [0, 24], sizes = [8, 8], strides = [1, 1]} : vector<8x32xf32> to vector<8x8xf32>
    %cst_190 = arith.constant dense<0.000000e+00> : vector<8x8xf32>
    %411 = tpu.matmul %408, %409, %cst_190 {dimension_numbers = #tpu.dot_dimension_numbers<[1], [1], [0], [0], [0, 0, 1, 0], [], []>} : vector<8x8xf32>, vector<8x8xf32>, vector<8x8xf32> -> vector<8x8xf32>
    %cst_191 = arith.constant 0.353553385 : f32
    %412 = vector.broadcast %cst_191 : f32 to vector<8x8xf32>
    %413 = arith.mulf %411, %412 : vector<8x8xf32>
    %cst_192 = arith.constant dense<0xFF800000> : vector<8xf32>
    %414 = vector.multi_reduction <maximumf>, %413, %cst_192 [1] : vector<8x8xf32> to vector<8xf32>
    %415 = vector.shape_cast %414 : vector<8xf32> to vector<8x1xf32>
    %416 = vector.broadcast %415 : vector<8x1xf32> to vector<8x8xf32>
    %417 = arith.subf %413, %416 : vector<8x8xf32>
    %418 = math.exp %417 : vector<8x8xf32>
    %cst_193 = arith.constant dense<0.000000e+00> : vector<8xf32>
    %419 = vector.multi_reduction <add>, %418, %cst_193 [1] : vector<8x8xf32> to vector<8xf32>
    %420 = vector.shape_cast %419 : vector<8xf32> to vector<8x1xf32>
    %421 = vector.broadcast %420 : vector<8x1xf32> to vector<8x8xf32>
    %422 = arith.divf %418, %421 : vector<8x8xf32>
    %cst_194 = arith.constant dense<0.000000e+00> : vector<8x8xf32>
    %423 = tpu.matmul %422, %410, %cst_194 {dimension_numbers = #tpu.dot_dimension_numbers<[1], [0], [0], [1], [0, 0, 1, 1], [], []>} : vector<8x8xf32>, vector<8x8xf32>, vector<8x8xf32> -> vector<8x8xf32>
    %424 = tpu.concatenate %375, %391, %407, %423 in 1 : vector<8x8xf32>, vector<8x8xf32>, vector<8x8xf32>, vector<8x8xf32> -> vector<8x32xf32>
    %c0_195 = arith.constant 0 : index
    %c0_196 = arith.constant 0 : index
    %c0_197 = arith.constant 0 : index
    %425 = vector.load %arg24[%c0_195, %c0_196, %c0_197] : memref<2x32x32xf32, #tpu.memory_space<vmem>>, vector<1x32x32xf32>
    %426 = vector.shape_cast %425 : vector<1x32x32xf32> to vector<32x32xf32>
    %cst_198 = arith.constant dense<0.000000e+00> : vector<8x32xf32>
    %427 = tpu.matmul %424, %426, %cst_198 {dimension_numbers = #tpu.dot_dimension_numbers<[1], [0], [0], [1], [0, 0, 1, 1], [], []>} : vector<8x32xf32>, vector<32x32xf32>, vector<8x32xf32> -> vector<8x32xf32>
    %c0_199 = arith.constant 0 : index
    %c0_200 = arith.constant 0 : index
    %c0_201 = arith.constant 0 : index
    %428 = vector.load %arg25[%c0_199, %c0_200, %c0_201] : memref<2x1x32xf32, #tpu.memory_space<vmem>>, vector<1x1x32xf32>
    %429 = vector.shape_cast %428 : vector<1x1x32xf32> to vector<1x32xf32>
    %430 = vector.broadcast %429 : vector<1x32xf32> to vector<8x32xf32>
    %431 = arith.addf %427, %430 : vector<8x32xf32>
    %432 = arith.addf %349, %431 : vector<8x32xf32>
    %c0_202 = arith.constant 0 : index
    %c0_203 = arith.constant 0 : index
    %c0_204 = arith.constant 0 : index
    %433 = vector.load %arg26[%c0_202, %c0_203, %c0_204] : memref<2x1x32xf32, #tpu.memory_space<vmem>>, vector<1x1x32xf32>
    %434 = vector.shape_cast %433 : vector<1x1x32xf32> to vector<1x32xf32>
    %c0_205 = arith.constant 0 : index
    %c0_206 = arith.constant 0 : index
    %c0_207 = arith.constant 0 : index
    %435 = vector.load %arg27[%c0_205, %c0_206, %c0_207] : memref<2x1x32xf32, #tpu.memory_space<vmem>>, vector<1x1x32xf32>
    %436 = vector.shape_cast %435 : vector<1x1x32xf32> to vector<1x32xf32>
    %cst_208 = arith.constant dense<0.000000e+00> : vector<8xf32>
    %437 = vector.multi_reduction <add>, %432, %cst_208 [1] : vector<8x32xf32> to vector<8xf32>
    %438 = vector.shape_cast %437 : vector<8xf32> to vector<8x1xf32>
    %cst_209 = arith.constant 3.200000e+01 : f32
    %439 = vector.broadcast %cst_209 : f32 to vector<8x1xf32>
    %440 = arith.divf %438, %439 : vector<8x1xf32>
    %441 = vector.broadcast %440 : vector<8x1xf32> to vector<8x32xf32>
    %442 = arith.subf %432, %441 : vector<8x32xf32>
    %443 = arith.mulf %442, %442 : vector<8x32xf32>
    %cst_210 = arith.constant dense<0.000000e+00> : vector<8xf32>
    %444 = vector.multi_reduction <add>, %443, %cst_210 [1] : vector<8x32xf32> to vector<8xf32>
    %445 = vector.shape_cast %444 : vector<8xf32> to vector<8x1xf32>
    %cst_211 = arith.constant 3.200000e+01 : f32
    %446 = vector.broadcast %cst_211 : f32 to vector<8x1xf32>
    %447 = arith.divf %445, %446 : vector<8x1xf32>
    %cst_212 = arith.constant 9.99999974E-6 : f32
    %448 = vector.broadcast %cst_212 : f32 to vector<8x1xf32>
    %449 = arith.addf %447, %448 : vector<8x1xf32>
    %450 = math.rsqrt %449 : vector<8x1xf32>
    %451 = vector.broadcast %450 : vector<8x1xf32> to vector<8x32xf32>
    %452 = arith.mulf %442, %451 : vector<8x32xf32>
    %453 = vector.broadcast %434 : vector<1x32xf32> to vector<8x32xf32>
    %454 = arith.mulf %452, %453 : vector<8x32xf32>
    %455 = vector.broadcast %436 : vector<1x32xf32> to vector<8x32xf32>
    %456 = arith.addf %454, %455 : vector<8x32xf32>
    %c0_213 = arith.constant 0 : index
    %c0_214 = arith.constant 0 : index
    %c0_215 = arith.constant 0 : index
    %457 = vector.load %arg28[%c0_213, %c0_214, %c0_215] : memref<2x32x32xf32, #tpu.memory_space<vmem>>, vector<1x32x32xf32>
    %458 = vector.shape_cast %457 : vector<1x32x32xf32> to vector<32x32xf32>
    %cst_216 = arith.constant dense<0.000000e+00> : vector<8x32xf32>
    %459 = tpu.matmul %456, %458, %cst_216 {dimension_numbers = #tpu.dot_dimension_numbers<[1], [0], [0], [1], [0, 0, 1, 1], [], []>} : vector<8x32xf32>, vector<32x32xf32>, vector<8x32xf32> -> vector<8x32xf32>
    %c0_217 = arith.constant 0 : index
    %c0_218 = arith.constant 0 : index
    %c0_219 = arith.constant 0 : index
    %460 = vector.load %arg29[%c0_217, %c0_218, %c0_219] : memref<2x1x32xf32, #tpu.memory_space<vmem>>, vector<1x1x32xf32>
    %461 = vector.shape_cast %460 : vector<1x1x32xf32> to vector<1x32xf32>
    %462 = vector.broadcast %461 : vector<1x32xf32> to vector<8x32xf32>
    %463 = arith.addf %459, %462 : vector<8x32xf32>
    %c0_220 = arith.constant 0 : index
    %c0_221 = arith.constant 0 : index
    %c0_222 = arith.constant 0 : index
    %464 = vector.load %arg30[%c0_220, %c0_221, %c0_222] : memref<2x32x64xf32, #tpu.memory_space<vmem>>, vector<1x32x64xf32>
    %465 = vector.shape_cast %464 : vector<1x32x64xf32> to vector<32x64xf32>
    %cst_223 = arith.constant dense<0.000000e+00> : vector<8x64xf32>
    %466 = tpu.matmul %333, %465, %cst_223 {dimension_numbers = #tpu.dot_dimension_numbers<[1], [0], [0], [1], [0, 0, 1, 1], [], []>} : vector<8x32xf32>, vector<32x64xf32>, vector<8x64xf32> -> vector<8x64xf32>
    %c0_224 = arith.constant 0 : index
    %c0_225 = arith.constant 0 : index
    %c0_226 = arith.constant 0 : index
    %467 = vector.load %arg31[%c0_224, %c0_225, %c0_226] : memref<2x1x64xf32, #tpu.memory_space<vmem>>, vector<1x1x64xf32>
    %468 = vector.shape_cast %467 : vector<1x1x64xf32> to vector<1x64xf32>
    %469 = vector.broadcast %468 : vector<1x64xf32> to vector<8x64xf32>
    %470 = arith.addf %466, %469 : vector<8x64xf32>
    %471 = vector.extract_strided_slice %470 {offsets = [0, 0], sizes = [8, 32], strides = [1, 1]} : vector<8x64xf32> to vector<8x32xf32>
    %472 = vector.extract_strided_slice %470 {offsets = [0, 32], sizes = [8, 32], strides = [1, 1]} : vector<8x64xf32> to vector<8x32xf32>
    %473 = vector.extract_strided_slice %463 {offsets = [0, 0], sizes = [8, 8], strides = [1, 1]} : vector<8x32xf32> to vector<8x8xf32>
    %474 = vector.extract_strided_slice %471 {offsets = [0, 0], sizes = [8, 8], strides = [1, 1]} : vector<8x32xf32> to vector<8x8xf32>
    %475 = vector.extract_strided_slice %472 {offsets = [0, 0], sizes = [8, 8], strides = [1, 1]} : vector<8x32xf32> to vector<8x8xf32>
    %cst_227 = arith.constant dense<0.000000e+00> : vector<8x8xf32>
    %476 = tpu.matmul %473, %474, %cst_227 {dimension_numbers = #tpu.dot_dimension_numbers<[1], [1], [0], [0], [0, 0, 1, 0], [], []>} : vector<8x8xf32>, vector<8x8xf32>, vector<8x8xf32> -> vector<8x8xf32>
    %cst_228 = arith.constant 0.353553385 : f32
    %477 = vector.broadcast %cst_228 : f32 to vector<8x8xf32>
    %478 = arith.mulf %476, %477 : vector<8x8xf32>
    %cst_229 = arith.constant dense<0xFF800000> : vector<8xf32>
    %479 = vector.multi_reduction <maximumf>, %478, %cst_229 [1] : vector<8x8xf32> to vector<8xf32>
    %480 = vector.shape_cast %479 : vector<8xf32> to vector<8x1xf32>
    %481 = vector.broadcast %480 : vector<8x1xf32> to vector<8x8xf32>
    %482 = arith.subf %478, %481 : vector<8x8xf32>
    %483 = math.exp %482 : vector<8x8xf32>
    %cst_230 = arith.constant dense<0.000000e+00> : vector<8xf32>
    %484 = vector.multi_reduction <add>, %483, %cst_230 [1] : vector<8x8xf32> to vector<8xf32>
    %485 = vector.shape_cast %484 : vector<8xf32> to vector<8x1xf32>
    %486 = vector.broadcast %485 : vector<8x1xf32> to vector<8x8xf32>
    %487 = arith.divf %483, %486 : vector<8x8xf32>
    %cst_231 = arith.constant dense<0.000000e+00> : vector<8x8xf32>
    %488 = tpu.matmul %487, %475, %cst_231 {dimension_numbers = #tpu.dot_dimension_numbers<[1], [0], [0], [1], [0, 0, 1, 1], [], []>} : vector<8x8xf32>, vector<8x8xf32>, vector<8x8xf32> -> vector<8x8xf32>
    %489 = vector.extract_strided_slice %463 {offsets = [0, 8], sizes = [8, 8], strides = [1, 1]} : vector<8x32xf32> to vector<8x8xf32>
    %490 = vector.extract_strided_slice %471 {offsets = [0, 8], sizes = [8, 8], strides = [1, 1]} : vector<8x32xf32> to vector<8x8xf32>
    %491 = vector.extract_strided_slice %472 {offsets = [0, 8], sizes = [8, 8], strides = [1, 1]} : vector<8x32xf32> to vector<8x8xf32>
    %cst_232 = arith.constant dense<0.000000e+00> : vector<8x8xf32>
    %492 = tpu.matmul %489, %490, %cst_232 {dimension_numbers = #tpu.dot_dimension_numbers<[1], [1], [0], [0], [0, 0, 1, 0], [], []>} : vector<8x8xf32>, vector<8x8xf32>, vector<8x8xf32> -> vector<8x8xf32>
    %cst_233 = arith.constant 0.353553385 : f32
    %493 = vector.broadcast %cst_233 : f32 to vector<8x8xf32>
    %494 = arith.mulf %492, %493 : vector<8x8xf32>
    %cst_234 = arith.constant dense<0xFF800000> : vector<8xf32>
    %495 = vector.multi_reduction <maximumf>, %494, %cst_234 [1] : vector<8x8xf32> to vector<8xf32>
    %496 = vector.shape_cast %495 : vector<8xf32> to vector<8x1xf32>
    %497 = vector.broadcast %496 : vector<8x1xf32> to vector<8x8xf32>
    %498 = arith.subf %494, %497 : vector<8x8xf32>
    %499 = math.exp %498 : vector<8x8xf32>
    %cst_235 = arith.constant dense<0.000000e+00> : vector<8xf32>
    %500 = vector.multi_reduction <add>, %499, %cst_235 [1] : vector<8x8xf32> to vector<8xf32>
    %501 = vector.shape_cast %500 : vector<8xf32> to vector<8x1xf32>
    %502 = vector.broadcast %501 : vector<8x1xf32> to vector<8x8xf32>
    %503 = arith.divf %499, %502 : vector<8x8xf32>
    %cst_236 = arith.constant dense<0.000000e+00> : vector<8x8xf32>
    %504 = tpu.matmul %503, %491, %cst_236 {dimension_numbers = #tpu.dot_dimension_numbers<[1], [0], [0], [1], [0, 0, 1, 1], [], []>} : vector<8x8xf32>, vector<8x8xf32>, vector<8x8xf32> -> vector<8x8xf32>
    %505 = vector.extract_strided_slice %463 {offsets = [0, 16], sizes = [8, 8], strides = [1, 1]} : vector<8x32xf32> to vector<8x8xf32>
    %506 = vector.extract_strided_slice %471 {offsets = [0, 16], sizes = [8, 8], strides = [1, 1]} : vector<8x32xf32> to vector<8x8xf32>
    %507 = vector.extract_strided_slice %472 {offsets = [0, 16], sizes = [8, 8], strides = [1, 1]} : vector<8x32xf32> to vector<8x8xf32>
    %cst_237 = arith.constant dense<0.000000e+00> : vector<8x8xf32>
    %508 = tpu.matmul %505, %506, %cst_237 {dimension_numbers = #tpu.dot_dimension_numbers<[1], [1], [0], [0], [0, 0, 1, 0], [], []>} : vector<8x8xf32>, vector<8x8xf32>, vector<8x8xf32> -> vector<8x8xf32>
    %cst_238 = arith.constant 0.353553385 : f32
    %509 = vector.broadcast %cst_238 : f32 to vector<8x8xf32>
    %510 = arith.mulf %508, %509 : vector<8x8xf32>
    %cst_239 = arith.constant dense<0xFF800000> : vector<8xf32>
    %511 = vector.multi_reduction <maximumf>, %510, %cst_239 [1] : vector<8x8xf32> to vector<8xf32>
    %512 = vector.shape_cast %511 : vector<8xf32> to vector<8x1xf32>
    %513 = vector.broadcast %512 : vector<8x1xf32> to vector<8x8xf32>
    %514 = arith.subf %510, %513 : vector<8x8xf32>
    %515 = math.exp %514 : vector<8x8xf32>
    %cst_240 = arith.constant dense<0.000000e+00> : vector<8xf32>
    %516 = vector.multi_reduction <add>, %515, %cst_240 [1] : vector<8x8xf32> to vector<8xf32>
    %517 = vector.shape_cast %516 : vector<8xf32> to vector<8x1xf32>
    %518 = vector.broadcast %517 : vector<8x1xf32> to vector<8x8xf32>
    %519 = arith.divf %515, %518 : vector<8x8xf32>
    %cst_241 = arith.constant dense<0.000000e+00> : vector<8x8xf32>
    %520 = tpu.matmul %519, %507, %cst_241 {dimension_numbers = #tpu.dot_dimension_numbers<[1], [0], [0], [1], [0, 0, 1, 1], [], []>} : vector<8x8xf32>, vector<8x8xf32>, vector<8x8xf32> -> vector<8x8xf32>
    %521 = vector.extract_strided_slice %463 {offsets = [0, 24], sizes = [8, 8], strides = [1, 1]} : vector<8x32xf32> to vector<8x8xf32>
    %522 = vector.extract_strided_slice %471 {offsets = [0, 24], sizes = [8, 8], strides = [1, 1]} : vector<8x32xf32> to vector<8x8xf32>
    %523 = vector.extract_strided_slice %472 {offsets = [0, 24], sizes = [8, 8], strides = [1, 1]} : vector<8x32xf32> to vector<8x8xf32>
    %cst_242 = arith.constant dense<0.000000e+00> : vector<8x8xf32>
    %524 = tpu.matmul %521, %522, %cst_242 {dimension_numbers = #tpu.dot_dimension_numbers<[1], [1], [0], [0], [0, 0, 1, 0], [], []>} : vector<8x8xf32>, vector<8x8xf32>, vector<8x8xf32> -> vector<8x8xf32>
    %cst_243 = arith.constant 0.353553385 : f32
    %525 = vector.broadcast %cst_243 : f32 to vector<8x8xf32>
    %526 = arith.mulf %524, %525 : vector<8x8xf32>
    %cst_244 = arith.constant dense<0xFF800000> : vector<8xf32>
    %527 = vector.multi_reduction <maximumf>, %526, %cst_244 [1] : vector<8x8xf32> to vector<8xf32>
    %528 = vector.shape_cast %527 : vector<8xf32> to vector<8x1xf32>
    %529 = vector.broadcast %528 : vector<8x1xf32> to vector<8x8xf32>
    %530 = arith.subf %526, %529 : vector<8x8xf32>
    %531 = math.exp %530 : vector<8x8xf32>
    %cst_245 = arith.constant dense<0.000000e+00> : vector<8xf32>
    %532 = vector.multi_reduction <add>, %531, %cst_245 [1] : vector<8x8xf32> to vector<8xf32>
    %533 = vector.shape_cast %532 : vector<8xf32> to vector<8x1xf32>
    %534 = vector.broadcast %533 : vector<8x1xf32> to vector<8x8xf32>
    %535 = arith.divf %531, %534 : vector<8x8xf32>
    %cst_246 = arith.constant dense<0.000000e+00> : vector<8x8xf32>
    %536 = tpu.matmul %535, %523, %cst_246 {dimension_numbers = #tpu.dot_dimension_numbers<[1], [0], [0], [1], [0, 0, 1, 1], [], []>} : vector<8x8xf32>, vector<8x8xf32>, vector<8x8xf32> -> vector<8x8xf32>
    %537 = tpu.concatenate %488, %504, %520, %536 in 1 : vector<8x8xf32>, vector<8x8xf32>, vector<8x8xf32>, vector<8x8xf32> -> vector<8x32xf32>
    %c0_247 = arith.constant 0 : index
    %c0_248 = arith.constant 0 : index
    %c0_249 = arith.constant 0 : index
    %538 = vector.load %arg32[%c0_247, %c0_248, %c0_249] : memref<2x32x32xf32, #tpu.memory_space<vmem>>, vector<1x32x32xf32>
    %539 = vector.shape_cast %538 : vector<1x32x32xf32> to vector<32x32xf32>
    %cst_250 = arith.constant dense<0.000000e+00> : vector<8x32xf32>
    %540 = tpu.matmul %537, %539, %cst_250 {dimension_numbers = #tpu.dot_dimension_numbers<[1], [0], [0], [1], [0, 0, 1, 1], [], []>} : vector<8x32xf32>, vector<32x32xf32>, vector<8x32xf32> -> vector<8x32xf32>
    %c0_251 = arith.constant 0 : index
    %c0_252 = arith.constant 0 : index
    %c0_253 = arith.constant 0 : index
    %541 = vector.load %arg33[%c0_251, %c0_252, %c0_253] : memref<2x1x32xf32, #tpu.memory_space<vmem>>, vector<1x1x32xf32>
    %542 = vector.shape_cast %541 : vector<1x1x32xf32> to vector<1x32xf32>
    %543 = vector.broadcast %542 : vector<1x32xf32> to vector<8x32xf32>
    %544 = arith.addf %540, %543 : vector<8x32xf32>
    %545 = arith.addf %456, %544 : vector<8x32xf32>
    %c0_254 = arith.constant 0 : index
    %c0_255 = arith.constant 0 : index
    %c0_256 = arith.constant 0 : index
    %546 = vector.load %arg34[%c0_254, %c0_255, %c0_256] : memref<2x1x32xf32, #tpu.memory_space<vmem>>, vector<1x1x32xf32>
    %547 = vector.shape_cast %546 : vector<1x1x32xf32> to vector<1x32xf32>
    %c0_257 = arith.constant 0 : index
    %c0_258 = arith.constant 0 : index
    %c0_259 = arith.constant 0 : index
    %548 = vector.load %arg35[%c0_257, %c0_258, %c0_259] : memref<2x1x32xf32, #tpu.memory_space<vmem>>, vector<1x1x32xf32>
    %549 = vector.shape_cast %548 : vector<1x1x32xf32> to vector<1x32xf32>
    %cst_260 = arith.constant dense<0.000000e+00> : vector<8xf32>
    %550 = vector.multi_reduction <add>, %545, %cst_260 [1] : vector<8x32xf32> to vector<8xf32>
    %551 = vector.shape_cast %550 : vector<8xf32> to vector<8x1xf32>
    %cst_261 = arith.constant 3.200000e+01 : f32
    %552 = vector.broadcast %cst_261 : f32 to vector<8x1xf32>
    %553 = arith.divf %551, %552 : vector<8x1xf32>
    %554 = vector.broadcast %553 : vector<8x1xf32> to vector<8x32xf32>
    %555 = arith.subf %545, %554 : vector<8x32xf32>
    %556 = arith.mulf %555, %555 : vector<8x32xf32>
    %cst_262 = arith.constant dense<0.000000e+00> : vector<8xf32>
    %557 = vector.multi_reduction <add>, %556, %cst_262 [1] : vector<8x32xf32> to vector<8xf32>
    %558 = vector.shape_cast %557 : vector<8xf32> to vector<8x1xf32>
    %cst_263 = arith.constant 3.200000e+01 : f32
    %559 = vector.broadcast %cst_263 : f32 to vector<8x1xf32>
    %560 = arith.divf %558, %559 : vector<8x1xf32>
    %cst_264 = arith.constant 9.99999974E-6 : f32
    %561 = vector.broadcast %cst_264 : f32 to vector<8x1xf32>
    %562 = arith.addf %560, %561 : vector<8x1xf32>
    %563 = math.rsqrt %562 : vector<8x1xf32>
    %564 = vector.broadcast %563 : vector<8x1xf32> to vector<8x32xf32>
    %565 = arith.mulf %555, %564 : vector<8x32xf32>
    %566 = vector.broadcast %547 : vector<1x32xf32> to vector<8x32xf32>
    %567 = arith.mulf %565, %566 : vector<8x32xf32>
    %568 = vector.broadcast %549 : vector<1x32xf32> to vector<8x32xf32>
    %569 = arith.addf %567, %568 : vector<8x32xf32>
    %c0_265 = arith.constant 0 : index
    %c0_266 = arith.constant 0 : index
    %c0_267 = arith.constant 0 : index
    %570 = vector.load %arg36[%c0_265, %c0_266, %c0_267] : memref<2x32x64xf32, #tpu.memory_space<vmem>>, vector<1x32x64xf32>
    %571 = vector.shape_cast %570 : vector<1x32x64xf32> to vector<32x64xf32>
    %cst_268 = arith.constant dense<0.000000e+00> : vector<8x64xf32>
    %572 = tpu.matmul %569, %571, %cst_268 {dimension_numbers = #tpu.dot_dimension_numbers<[1], [0], [0], [1], [0, 0, 1, 1], [], []>} : vector<8x32xf32>, vector<32x64xf32>, vector<8x64xf32> -> vector<8x64xf32>
    %c0_269 = arith.constant 0 : index
    %c0_270 = arith.constant 0 : index
    %c0_271 = arith.constant 0 : index
    %573 = vector.load %arg37[%c0_269, %c0_270, %c0_271] : memref<2x1x64xf32, #tpu.memory_space<vmem>>, vector<1x1x64xf32>
    %574 = vector.shape_cast %573 : vector<1x1x64xf32> to vector<1x64xf32>
    %575 = vector.broadcast %574 : vector<1x64xf32> to vector<8x64xf32>
    %576 = arith.addf %572, %575 : vector<8x64xf32>
    %cst_272 = arith.constant 0.000000e+00 : f32
    %577 = vector.broadcast %cst_272 : f32 to vector<8x64xf32>
    %578 = arith.maximumf %576, %577 : vector<8x64xf32>
    %c0_273 = arith.constant 0 : index
    %c0_274 = arith.constant 0 : index
    %c0_275 = arith.constant 0 : index
    %579 = vector.load %arg38[%c0_273, %c0_274, %c0_275] : memref<2x64x32xf32, #tpu.memory_space<vmem>>, vector<1x64x32xf32>
    %580 = vector.shape_cast %579 : vector<1x64x32xf32> to vector<64x32xf32>
    %cst_276 = arith.constant dense<0.000000e+00> : vector<8x32xf32>
    %581 = tpu.matmul %578, %580, %cst_276 {dimension_numbers = #tpu.dot_dimension_numbers<[1], [0], [0], [1], [0, 0, 1, 1], [], []>} : vector<8x64xf32>, vector<64x32xf32>, vector<8x32xf32> -> vector<8x32xf32>
    %c0_277 = arith.constant 0 : index
    %c0_278 = arith.constant 0 : index
    %c0_279 = arith.constant 0 : index
    %582 = vector.load %arg39[%c0_277, %c0_278, %c0_279] : memref<2x1x32xf32, #tpu.memory_space<vmem>>, vector<1x1x32xf32>
    %583 = vector.shape_cast %582 : vector<1x1x32xf32> to vector<1x32xf32>
    %584 = vector.broadcast %583 : vector<1x32xf32> to vector<8x32xf32>
    %585 = arith.addf %581, %584 : vector<8x32xf32>
    %586 = arith.addf %569, %585 : vector<8x32xf32>
    %c0_280 = arith.constant 0 : index
    %c0_281 = arith.constant 0 : index
    %c0_282 = arith.constant 0 : index
    %587 = vector.load %arg40[%c0_280, %c0_281, %c0_282] : memref<2x1x32xf32, #tpu.memory_space<vmem>>, vector<1x1x32xf32>
    %588 = vector.shape_cast %587 : vector<1x1x32xf32> to vector<1x32xf32>
    %c0_283 = arith.constant 0 : index
    %c0_284 = arith.constant 0 : index
    %c0_285 = arith.constant 0 : index
    %589 = vector.load %arg41[%c0_283, %c0_284, %c0_285] : memref<2x1x32xf32, #tpu.memory_space<vmem>>, vector<1x1x32xf32>
    %590 = vector.shape_cast %589 : vector<1x1x32xf32> to vector<1x32xf32>
    %cst_286 = arith.constant dense<0.000000e+00> : vector<8xf32>
    %591 = vector.multi_reduction <add>, %586, %cst_286 [1] : vector<8x32xf32> to vector<8xf32>
    %592 = vector.shape_cast %591 : vector<8xf32> to vector<8x1xf32>
    %cst_287 = arith.constant 3.200000e+01 : f32
    %593 = vector.broadcast %cst_287 : f32 to vector<8x1xf32>
    %594 = arith.divf %592, %593 : vector<8x1xf32>
    %595 = vector.broadcast %594 : vector<8x1xf32> to vector<8x32xf32>
    %596 = arith.subf %586, %595 : vector<8x32xf32>
    %597 = arith.mulf %596, %596 : vector<8x32xf32>
    %cst_288 = arith.constant dense<0.000000e+00> : vector<8xf32>
    %598 = vector.multi_reduction <add>, %597, %cst_288 [1] : vector<8x32xf32> to vector<8xf32>
    %599 = vector.shape_cast %598 : vector<8xf32> to vector<8x1xf32>
    %cst_289 = arith.constant 3.200000e+01 : f32
    %600 = vector.broadcast %cst_289 : f32 to vector<8x1xf32>
    %601 = arith.divf %599, %600 : vector<8x1xf32>
    %cst_290 = arith.constant 9.99999974E-6 : f32
    %602 = vector.broadcast %cst_290 : f32 to vector<8x1xf32>
    %603 = arith.addf %601, %602 : vector<8x1xf32>
    %604 = math.rsqrt %603 : vector<8x1xf32>
    %605 = vector.broadcast %604 : vector<8x1xf32> to vector<8x32xf32>
    %606 = arith.mulf %596, %605 : vector<8x32xf32>
    %607 = vector.broadcast %588 : vector<1x32xf32> to vector<8x32xf32>
    %608 = arith.mulf %606, %607 : vector<8x32xf32>
    %609 = vector.broadcast %590 : vector<1x32xf32> to vector<8x32xf32>
    %610 = arith.addf %608, %609 : vector<8x32xf32>
    %c1_291 = arith.constant 1 : index
    %c0_292 = arith.constant 0 : index
    %c0_293 = arith.constant 0 : index
    %611 = vector.load %arg22[%c1_291, %c0_292, %c0_293] : memref<2x32x96xf32, #tpu.memory_space<vmem>>, vector<1x32x96xf32>
    %612 = vector.shape_cast %611 : vector<1x32x96xf32> to vector<32x96xf32>
    %cst_294 = arith.constant dense<0.000000e+00> : vector<8x96xf32>
    %613 = tpu.matmul %610, %612, %cst_294 {dimension_numbers = #tpu.dot_dimension_numbers<[1], [0], [0], [1], [0, 0, 1, 1], [], []>} : vector<8x32xf32>, vector<32x96xf32>, vector<8x96xf32> -> vector<8x96xf32>
    %c1_295 = arith.constant 1 : index
    %c0_296 = arith.constant 0 : index
    %c0_297 = arith.constant 0 : index
    %614 = vector.load %arg23[%c1_295, %c0_296, %c0_297] : memref<2x1x96xf32, #tpu.memory_space<vmem>>, vector<1x1x96xf32>
    %615 = vector.shape_cast %614 : vector<1x1x96xf32> to vector<1x96xf32>
    %616 = vector.broadcast %615 : vector<1x96xf32> to vector<8x96xf32>
    %617 = arith.addf %613, %616 : vector<8x96xf32>
    %618 = vector.extract_strided_slice %617 {offsets = [0, 0], sizes = [8, 32], strides = [1, 1]} : vector<8x96xf32> to vector<8x32xf32>
    %619 = vector.extract_strided_slice %617 {offsets = [0, 32], sizes = [8, 32], strides = [1, 1]} : vector<8x96xf32> to vector<8x32xf32>
    %620 = vector.extract_strided_slice %617 {offsets = [0, 64], sizes = [8, 32], strides = [1, 1]} : vector<8x96xf32> to vector<8x32xf32>
    %621 = vector.extract_strided_slice %618 {offsets = [0, 0], sizes = [8, 8], strides = [1, 1]} : vector<8x32xf32> to vector<8x8xf32>
    %622 = vector.extract_strided_slice %619 {offsets = [0, 0], sizes = [8, 8], strides = [1, 1]} : vector<8x32xf32> to vector<8x8xf32>
    %623 = vector.extract_strided_slice %620 {offsets = [0, 0], sizes = [8, 8], strides = [1, 1]} : vector<8x32xf32> to vector<8x8xf32>
    %cst_298 = arith.constant dense<0.000000e+00> : vector<8x8xf32>
    %624 = tpu.matmul %621, %622, %cst_298 {dimension_numbers = #tpu.dot_dimension_numbers<[1], [1], [0], [0], [0, 0, 1, 0], [], []>} : vector<8x8xf32>, vector<8x8xf32>, vector<8x8xf32> -> vector<8x8xf32>
    %cst_299 = arith.constant 0.353553385 : f32
    %625 = vector.broadcast %cst_299 : f32 to vector<8x8xf32>
    %626 = arith.mulf %624, %625 : vector<8x8xf32>
    %cst_300 = arith.constant dense<0xFF800000> : vector<8xf32>
    %627 = vector.multi_reduction <maximumf>, %626, %cst_300 [1] : vector<8x8xf32> to vector<8xf32>
    %628 = vector.shape_cast %627 : vector<8xf32> to vector<8x1xf32>
    %629 = vector.broadcast %628 : vector<8x1xf32> to vector<8x8xf32>
    %630 = arith.subf %626, %629 : vector<8x8xf32>
    %631 = math.exp %630 : vector<8x8xf32>
    %cst_301 = arith.constant dense<0.000000e+00> : vector<8xf32>
    %632 = vector.multi_reduction <add>, %631, %cst_301 [1] : vector<8x8xf32> to vector<8xf32>
    %633 = vector.shape_cast %632 : vector<8xf32> to vector<8x1xf32>
    %634 = vector.broadcast %633 : vector<8x1xf32> to vector<8x8xf32>
    %635 = arith.divf %631, %634 : vector<8x8xf32>
    %cst_302 = arith.constant dense<0.000000e+00> : vector<8x8xf32>
    %636 = tpu.matmul %635, %623, %cst_302 {dimension_numbers = #tpu.dot_dimension_numbers<[1], [0], [0], [1], [0, 0, 1, 1], [], []>} : vector<8x8xf32>, vector<8x8xf32>, vector<8x8xf32> -> vector<8x8xf32>
    %637 = vector.extract_strided_slice %618 {offsets = [0, 8], sizes = [8, 8], strides = [1, 1]} : vector<8x32xf32> to vector<8x8xf32>
    %638 = vector.extract_strided_slice %619 {offsets = [0, 8], sizes = [8, 8], strides = [1, 1]} : vector<8x32xf32> to vector<8x8xf32>
    %639 = vector.extract_strided_slice %620 {offsets = [0, 8], sizes = [8, 8], strides = [1, 1]} : vector<8x32xf32> to vector<8x8xf32>
    %cst_303 = arith.constant dense<0.000000e+00> : vector<8x8xf32>
    %640 = tpu.matmul %637, %638, %cst_303 {dimension_numbers = #tpu.dot_dimension_numbers<[1], [1], [0], [0], [0, 0, 1, 0], [], []>} : vector<8x8xf32>, vector<8x8xf32>, vector<8x8xf32> -> vector<8x8xf32>
    %cst_304 = arith.constant 0.353553385 : f32
    %641 = vector.broadcast %cst_304 : f32 to vector<8x8xf32>
    %642 = arith.mulf %640, %641 : vector<8x8xf32>
    %cst_305 = arith.constant dense<0xFF800000> : vector<8xf32>
    %643 = vector.multi_reduction <maximumf>, %642, %cst_305 [1] : vector<8x8xf32> to vector<8xf32>
    %644 = vector.shape_cast %643 : vector<8xf32> to vector<8x1xf32>
    %645 = vector.broadcast %644 : vector<8x1xf32> to vector<8x8xf32>
    %646 = arith.subf %642, %645 : vector<8x8xf32>
    %647 = math.exp %646 : vector<8x8xf32>
    %cst_306 = arith.constant dense<0.000000e+00> : vector<8xf32>
    %648 = vector.multi_reduction <add>, %647, %cst_306 [1] : vector<8x8xf32> to vector<8xf32>
    %649 = vector.shape_cast %648 : vector<8xf32> to vector<8x1xf32>
    %650 = vector.broadcast %649 : vector<8x1xf32> to vector<8x8xf32>
    %651 = arith.divf %647, %650 : vector<8x8xf32>
    %cst_307 = arith.constant dense<0.000000e+00> : vector<8x8xf32>
    %652 = tpu.matmul %651, %639, %cst_307 {dimension_numbers = #tpu.dot_dimension_numbers<[1], [0], [0], [1], [0, 0, 1, 1], [], []>} : vector<8x8xf32>, vector<8x8xf32>, vector<8x8xf32> -> vector<8x8xf32>
    %653 = vector.extract_strided_slice %618 {offsets = [0, 16], sizes = [8, 8], strides = [1, 1]} : vector<8x32xf32> to vector<8x8xf32>
    %654 = vector.extract_strided_slice %619 {offsets = [0, 16], sizes = [8, 8], strides = [1, 1]} : vector<8x32xf32> to vector<8x8xf32>
    %655 = vector.extract_strided_slice %620 {offsets = [0, 16], sizes = [8, 8], strides = [1, 1]} : vector<8x32xf32> to vector<8x8xf32>
    %cst_308 = arith.constant dense<0.000000e+00> : vector<8x8xf32>
    %656 = tpu.matmul %653, %654, %cst_308 {dimension_numbers = #tpu.dot_dimension_numbers<[1], [1], [0], [0], [0, 0, 1, 0], [], []>} : vector<8x8xf32>, vector<8x8xf32>, vector<8x8xf32> -> vector<8x8xf32>
    %cst_309 = arith.constant 0.353553385 : f32
    %657 = vector.broadcast %cst_309 : f32 to vector<8x8xf32>
    %658 = arith.mulf %656, %657 : vector<8x8xf32>
    %cst_310 = arith.constant dense<0xFF800000> : vector<8xf32>
    %659 = vector.multi_reduction <maximumf>, %658, %cst_310 [1] : vector<8x8xf32> to vector<8xf32>
    %660 = vector.shape_cast %659 : vector<8xf32> to vector<8x1xf32>
    %661 = vector.broadcast %660 : vector<8x1xf32> to vector<8x8xf32>
    %662 = arith.subf %658, %661 : vector<8x8xf32>
    %663 = math.exp %662 : vector<8x8xf32>
    %cst_311 = arith.constant dense<0.000000e+00> : vector<8xf32>
    %664 = vector.multi_reduction <add>, %663, %cst_311 [1] : vector<8x8xf32> to vector<8xf32>
    %665 = vector.shape_cast %664 : vector<8xf32> to vector<8x1xf32>
    %666 = vector.broadcast %665 : vector<8x1xf32> to vector<8x8xf32>
    %667 = arith.divf %663, %666 : vector<8x8xf32>
    %cst_312 = arith.constant dense<0.000000e+00> : vector<8x8xf32>
    %668 = tpu.matmul %667, %655, %cst_312 {dimension_numbers = #tpu.dot_dimension_numbers<[1], [0], [0], [1], [0, 0, 1, 1], [], []>} : vector<8x8xf32>, vector<8x8xf32>, vector<8x8xf32> -> vector<8x8xf32>
    %669 = vector.extract_strided_slice %618 {offsets = [0, 24], sizes = [8, 8], strides = [1, 1]} : vector<8x32xf32> to vector<8x8xf32>
    %670 = vector.extract_strided_slice %619 {offsets = [0, 24], sizes = [8, 8], strides = [1, 1]} : vector<8x32xf32> to vector<8x8xf32>
    %671 = vector.extract_strided_slice %620 {offsets = [0, 24], sizes = [8, 8], strides = [1, 1]} : vector<8x32xf32> to vector<8x8xf32>
    %cst_313 = arith.constant dense<0.000000e+00> : vector<8x8xf32>
    %672 = tpu.matmul %669, %670, %cst_313 {dimension_numbers = #tpu.dot_dimension_numbers<[1], [1], [0], [0], [0, 0, 1, 0], [], []>} : vector<8x8xf32>, vector<8x8xf32>, vector<8x8xf32> -> vector<8x8xf32>
    %cst_314 = arith.constant 0.353553385 : f32
    %673 = vector.broadcast %cst_314 : f32 to vector<8x8xf32>
    %674 = arith.mulf %672, %673 : vector<8x8xf32>
    %cst_315 = arith.constant dense<0xFF800000> : vector<8xf32>
    %675 = vector.multi_reduction <maximumf>, %674, %cst_315 [1] : vector<8x8xf32> to vector<8xf32>
    %676 = vector.shape_cast %675 : vector<8xf32> to vector<8x1xf32>
    %677 = vector.broadcast %676 : vector<8x1xf32> to vector<8x8xf32>
    %678 = arith.subf %674, %677 : vector<8x8xf32>
    %679 = math.exp %678 : vector<8x8xf32>
    %cst_316 = arith.constant dense<0.000000e+00> : vector<8xf32>
    %680 = vector.multi_reduction <add>, %679, %cst_316 [1] : vector<8x8xf32> to vector<8xf32>
    %681 = vector.shape_cast %680 : vector<8xf32> to vector<8x1xf32>
    %682 = vector.broadcast %681 : vector<8x1xf32> to vector<8x8xf32>
    %683 = arith.divf %679, %682 : vector<8x8xf32>
    %cst_317 = arith.constant dense<0.000000e+00> : vector<8x8xf32>
    %684 = tpu.matmul %683, %671, %cst_317 {dimension_numbers = #tpu.dot_dimension_numbers<[1], [0], [0], [1], [0, 0, 1, 1], [], []>} : vector<8x8xf32>, vector<8x8xf32>, vector<8x8xf32> -> vector<8x8xf32>
    %685 = tpu.concatenate %636, %652, %668, %684 in 1 : vector<8x8xf32>, vector<8x8xf32>, vector<8x8xf32>, vector<8x8xf32> -> vector<8x32xf32>
    %c1_318 = arith.constant 1 : index
    %c0_319 = arith.constant 0 : index
    %c0_320 = arith.constant 0 : index
    %686 = vector.load %arg24[%c1_318, %c0_319, %c0_320] : memref<2x32x32xf32, #tpu.memory_space<vmem>>, vector<1x32x32xf32>
    %687 = vector.shape_cast %686 : vector<1x32x32xf32> to vector<32x32xf32>
    %cst_321 = arith.constant dense<0.000000e+00> : vector<8x32xf32>
    %688 = tpu.matmul %685, %687, %cst_321 {dimension_numbers = #tpu.dot_dimension_numbers<[1], [0], [0], [1], [0, 0, 1, 1], [], []>} : vector<8x32xf32>, vector<32x32xf32>, vector<8x32xf32> -> vector<8x32xf32>
    %c1_322 = arith.constant 1 : index
    %c0_323 = arith.constant 0 : index
    %c0_324 = arith.constant 0 : index
    %689 = vector.load %arg25[%c1_322, %c0_323, %c0_324] : memref<2x1x32xf32, #tpu.memory_space<vmem>>, vector<1x1x32xf32>
    %690 = vector.shape_cast %689 : vector<1x1x32xf32> to vector<1x32xf32>
    %691 = vector.broadcast %690 : vector<1x32xf32> to vector<8x32xf32>
    %692 = arith.addf %688, %691 : vector<8x32xf32>
    %693 = arith.addf %610, %692 : vector<8x32xf32>
    %c1_325 = arith.constant 1 : index
    %c0_326 = arith.constant 0 : index
    %c0_327 = arith.constant 0 : index
    %694 = vector.load %arg26[%c1_325, %c0_326, %c0_327] : memref<2x1x32xf32, #tpu.memory_space<vmem>>, vector<1x1x32xf32>
    %695 = vector.shape_cast %694 : vector<1x1x32xf32> to vector<1x32xf32>
    %c1_328 = arith.constant 1 : index
    %c0_329 = arith.constant 0 : index
    %c0_330 = arith.constant 0 : index
    %696 = vector.load %arg27[%c1_328, %c0_329, %c0_330] : memref<2x1x32xf32, #tpu.memory_space<vmem>>, vector<1x1x32xf32>
    %697 = vector.shape_cast %696 : vector<1x1x32xf32> to vector<1x32xf32>
    %cst_331 = arith.constant dense<0.000000e+00> : vector<8xf32>
    %698 = vector.multi_reduction <add>, %693, %cst_331 [1] : vector<8x32xf32> to vector<8xf32>
    %699 = vector.shape_cast %698 : vector<8xf32> to vector<8x1xf32>
    %cst_332 = arith.constant 3.200000e+01 : f32
    %700 = vector.broadcast %cst_332 : f32 to vector<8x1xf32>
    %701 = arith.divf %699, %700 : vector<8x1xf32>
    %702 = vector.broadcast %701 : vector<8x1xf32> to vector<8x32xf32>
    %703 = arith.subf %693, %702 : vector<8x32xf32>
    %704 = arith.mulf %703, %703 : vector<8x32xf32>
    %cst_333 = arith.constant dense<0.000000e+00> : vector<8xf32>
    %705 = vector.multi_reduction <add>, %704, %cst_333 [1] : vector<8x32xf32> to vector<8xf32>
    %706 = vector.shape_cast %705 : vector<8xf32> to vector<8x1xf32>
    %cst_334 = arith.constant 3.200000e+01 : f32
    %707 = vector.broadcast %cst_334 : f32 to vector<8x1xf32>
    %708 = arith.divf %706, %707 : vector<8x1xf32>
    %cst_335 = arith.constant 9.99999974E-6 : f32
    %709 = vector.broadcast %cst_335 : f32 to vector<8x1xf32>
    %710 = arith.addf %708, %709 : vector<8x1xf32>
    %711 = math.rsqrt %710 : vector<8x1xf32>
    %712 = vector.broadcast %711 : vector<8x1xf32> to vector<8x32xf32>
    %713 = arith.mulf %703, %712 : vector<8x32xf32>
    %714 = vector.broadcast %695 : vector<1x32xf32> to vector<8x32xf32>
    %715 = arith.mulf %713, %714 : vector<8x32xf32>
    %716 = vector.broadcast %697 : vector<1x32xf32> to vector<8x32xf32>
    %717 = arith.addf %715, %716 : vector<8x32xf32>
    %c1_336 = arith.constant 1 : index
    %c0_337 = arith.constant 0 : index
    %c0_338 = arith.constant 0 : index
    %718 = vector.load %arg28[%c1_336, %c0_337, %c0_338] : memref<2x32x32xf32, #tpu.memory_space<vmem>>, vector<1x32x32xf32>
    %719 = vector.shape_cast %718 : vector<1x32x32xf32> to vector<32x32xf32>
    %cst_339 = arith.constant dense<0.000000e+00> : vector<8x32xf32>
    %720 = tpu.matmul %717, %719, %cst_339 {dimension_numbers = #tpu.dot_dimension_numbers<[1], [0], [0], [1], [0, 0, 1, 1], [], []>} : vector<8x32xf32>, vector<32x32xf32>, vector<8x32xf32> -> vector<8x32xf32>
    %c1_340 = arith.constant 1 : index
    %c0_341 = arith.constant 0 : index
    %c0_342 = arith.constant 0 : index
    %721 = vector.load %arg29[%c1_340, %c0_341, %c0_342] : memref<2x1x32xf32, #tpu.memory_space<vmem>>, vector<1x1x32xf32>
    %722 = vector.shape_cast %721 : vector<1x1x32xf32> to vector<1x32xf32>
    %723 = vector.broadcast %722 : vector<1x32xf32> to vector<8x32xf32>
    %724 = arith.addf %720, %723 : vector<8x32xf32>
    %c1_343 = arith.constant 1 : index
    %c0_344 = arith.constant 0 : index
    %c0_345 = arith.constant 0 : index
    %725 = vector.load %arg30[%c1_343, %c0_344, %c0_345] : memref<2x32x64xf32, #tpu.memory_space<vmem>>, vector<1x32x64xf32>
    %726 = vector.shape_cast %725 : vector<1x32x64xf32> to vector<32x64xf32>
    %cst_346 = arith.constant dense<0.000000e+00> : vector<8x64xf32>
    %727 = tpu.matmul %333, %726, %cst_346 {dimension_numbers = #tpu.dot_dimension_numbers<[1], [0], [0], [1], [0, 0, 1, 1], [], []>} : vector<8x32xf32>, vector<32x64xf32>, vector<8x64xf32> -> vector<8x64xf32>
    %c1_347 = arith.constant 1 : index
    %c0_348 = arith.constant 0 : index
    %c0_349 = arith.constant 0 : index
    %728 = vector.load %arg31[%c1_347, %c0_348, %c0_349] : memref<2x1x64xf32, #tpu.memory_space<vmem>>, vector<1x1x64xf32>
    %729 = vector.shape_cast %728 : vector<1x1x64xf32> to vector<1x64xf32>
    %730 = vector.broadcast %729 : vector<1x64xf32> to vector<8x64xf32>
    %731 = arith.addf %727, %730 : vector<8x64xf32>
    %732 = vector.extract_strided_slice %731 {offsets = [0, 0], sizes = [8, 32], strides = [1, 1]} : vector<8x64xf32> to vector<8x32xf32>
    %733 = vector.extract_strided_slice %731 {offsets = [0, 32], sizes = [8, 32], strides = [1, 1]} : vector<8x64xf32> to vector<8x32xf32>
    %734 = vector.extract_strided_slice %724 {offsets = [0, 0], sizes = [8, 8], strides = [1, 1]} : vector<8x32xf32> to vector<8x8xf32>
    %735 = vector.extract_strided_slice %732 {offsets = [0, 0], sizes = [8, 8], strides = [1, 1]} : vector<8x32xf32> to vector<8x8xf32>
    %736 = vector.extract_strided_slice %733 {offsets = [0, 0], sizes = [8, 8], strides = [1, 1]} : vector<8x32xf32> to vector<8x8xf32>
    %cst_350 = arith.constant dense<0.000000e+00> : vector<8x8xf32>
    %737 = tpu.matmul %734, %735, %cst_350 {dimension_numbers = #tpu.dot_dimension_numbers<[1], [1], [0], [0], [0, 0, 1, 0], [], []>} : vector<8x8xf32>, vector<8x8xf32>, vector<8x8xf32> -> vector<8x8xf32>
    %cst_351 = arith.constant 0.353553385 : f32
    %738 = vector.broadcast %cst_351 : f32 to vector<8x8xf32>
    %739 = arith.mulf %737, %738 : vector<8x8xf32>
    %cst_352 = arith.constant dense<0xFF800000> : vector<8xf32>
    %740 = vector.multi_reduction <maximumf>, %739, %cst_352 [1] : vector<8x8xf32> to vector<8xf32>
    %741 = vector.shape_cast %740 : vector<8xf32> to vector<8x1xf32>
    %742 = vector.broadcast %741 : vector<8x1xf32> to vector<8x8xf32>
    %743 = arith.subf %739, %742 : vector<8x8xf32>
    %744 = math.exp %743 : vector<8x8xf32>
    %cst_353 = arith.constant dense<0.000000e+00> : vector<8xf32>
    %745 = vector.multi_reduction <add>, %744, %cst_353 [1] : vector<8x8xf32> to vector<8xf32>
    %746 = vector.shape_cast %745 : vector<8xf32> to vector<8x1xf32>
    %747 = vector.broadcast %746 : vector<8x1xf32> to vector<8x8xf32>
    %748 = arith.divf %744, %747 : vector<8x8xf32>
    %cst_354 = arith.constant dense<0.000000e+00> : vector<8x8xf32>
    %749 = tpu.matmul %748, %736, %cst_354 {dimension_numbers = #tpu.dot_dimension_numbers<[1], [0], [0], [1], [0, 0, 1, 1], [], []>} : vector<8x8xf32>, vector<8x8xf32>, vector<8x8xf32> -> vector<8x8xf32>
    %750 = vector.extract_strided_slice %724 {offsets = [0, 8], sizes = [8, 8], strides = [1, 1]} : vector<8x32xf32> to vector<8x8xf32>
    %751 = vector.extract_strided_slice %732 {offsets = [0, 8], sizes = [8, 8], strides = [1, 1]} : vector<8x32xf32> to vector<8x8xf32>
    %752 = vector.extract_strided_slice %733 {offsets = [0, 8], sizes = [8, 8], strides = [1, 1]} : vector<8x32xf32> to vector<8x8xf32>
    %cst_355 = arith.constant dense<0.000000e+00> : vector<8x8xf32>
    %753 = tpu.matmul %750, %751, %cst_355 {dimension_numbers = #tpu.dot_dimension_numbers<[1], [1], [0], [0], [0, 0, 1, 0], [], []>} : vector<8x8xf32>, vector<8x8xf32>, vector<8x8xf32> -> vector<8x8xf32>
    %cst_356 = arith.constant 0.353553385 : f32
    %754 = vector.broadcast %cst_356 : f32 to vector<8x8xf32>
    %755 = arith.mulf %753, %754 : vector<8x8xf32>
    %cst_357 = arith.constant dense<0xFF800000> : vector<8xf32>
    %756 = vector.multi_reduction <maximumf>, %755, %cst_357 [1] : vector<8x8xf32> to vector<8xf32>
    %757 = vector.shape_cast %756 : vector<8xf32> to vector<8x1xf32>
    %758 = vector.broadcast %757 : vector<8x1xf32> to vector<8x8xf32>
    %759 = arith.subf %755, %758 : vector<8x8xf32>
    %760 = math.exp %759 : vector<8x8xf32>
    %cst_358 = arith.constant dense<0.000000e+00> : vector<8xf32>
    %761 = vector.multi_reduction <add>, %760, %cst_358 [1] : vector<8x8xf32> to vector<8xf32>
    %762 = vector.shape_cast %761 : vector<8xf32> to vector<8x1xf32>
    %763 = vector.broadcast %762 : vector<8x1xf32> to vector<8x8xf32>
    %764 = arith.divf %760, %763 : vector<8x8xf32>
    %cst_359 = arith.constant dense<0.000000e+00> : vector<8x8xf32>
    %765 = tpu.matmul %764, %752, %cst_359 {dimension_numbers = #tpu.dot_dimension_numbers<[1], [0], [0], [1], [0, 0, 1, 1], [], []>} : vector<8x8xf32>, vector<8x8xf32>, vector<8x8xf32> -> vector<8x8xf32>
    %766 = vector.extract_strided_slice %724 {offsets = [0, 16], sizes = [8, 8], strides = [1, 1]} : vector<8x32xf32> to vector<8x8xf32>
    %767 = vector.extract_strided_slice %732 {offsets = [0, 16], sizes = [8, 8], strides = [1, 1]} : vector<8x32xf32> to vector<8x8xf32>
    %768 = vector.extract_strided_slice %733 {offsets = [0, 16], sizes = [8, 8], strides = [1, 1]} : vector<8x32xf32> to vector<8x8xf32>
    %cst_360 = arith.constant dense<0.000000e+00> : vector<8x8xf32>
    %769 = tpu.matmul %766, %767, %cst_360 {dimension_numbers = #tpu.dot_dimension_numbers<[1], [1], [0], [0], [0, 0, 1, 0], [], []>} : vector<8x8xf32>, vector<8x8xf32>, vector<8x8xf32> -> vector<8x8xf32>
    %cst_361 = arith.constant 0.353553385 : f32
    %770 = vector.broadcast %cst_361 : f32 to vector<8x8xf32>
    %771 = arith.mulf %769, %770 : vector<8x8xf32>
    %cst_362 = arith.constant dense<0xFF800000> : vector<8xf32>
    %772 = vector.multi_reduction <maximumf>, %771, %cst_362 [1] : vector<8x8xf32> to vector<8xf32>
    %773 = vector.shape_cast %772 : vector<8xf32> to vector<8x1xf32>
    %774 = vector.broadcast %773 : vector<8x1xf32> to vector<8x8xf32>
    %775 = arith.subf %771, %774 : vector<8x8xf32>
    %776 = math.exp %775 : vector<8x8xf32>
    %cst_363 = arith.constant dense<0.000000e+00> : vector<8xf32>
    %777 = vector.multi_reduction <add>, %776, %cst_363 [1] : vector<8x8xf32> to vector<8xf32>
    %778 = vector.shape_cast %777 : vector<8xf32> to vector<8x1xf32>
    %779 = vector.broadcast %778 : vector<8x1xf32> to vector<8x8xf32>
    %780 = arith.divf %776, %779 : vector<8x8xf32>
    %cst_364 = arith.constant dense<0.000000e+00> : vector<8x8xf32>
    %781 = tpu.matmul %780, %768, %cst_364 {dimension_numbers = #tpu.dot_dimension_numbers<[1], [0], [0], [1], [0, 0, 1, 1], [], []>} : vector<8x8xf32>, vector<8x8xf32>, vector<8x8xf32> -> vector<8x8xf32>
    %782 = vector.extract_strided_slice %724 {offsets = [0, 24], sizes = [8, 8], strides = [1, 1]} : vector<8x32xf32> to vector<8x8xf32>
    %783 = vector.extract_strided_slice %732 {offsets = [0, 24], sizes = [8, 8], strides = [1, 1]} : vector<8x32xf32> to vector<8x8xf32>
    %784 = vector.extract_strided_slice %733 {offsets = [0, 24], sizes = [8, 8], strides = [1, 1]} : vector<8x32xf32> to vector<8x8xf32>
    %cst_365 = arith.constant dense<0.000000e+00> : vector<8x8xf32>
    %785 = tpu.matmul %782, %783, %cst_365 {dimension_numbers = #tpu.dot_dimension_numbers<[1], [1], [0], [0], [0, 0, 1, 0], [], []>} : vector<8x8xf32>, vector<8x8xf32>, vector<8x8xf32> -> vector<8x8xf32>
    %cst_366 = arith.constant 0.353553385 : f32
    %786 = vector.broadcast %cst_366 : f32 to vector<8x8xf32>
    %787 = arith.mulf %785, %786 : vector<8x8xf32>
    %cst_367 = arith.constant dense<0xFF800000> : vector<8xf32>
    %788 = vector.multi_reduction <maximumf>, %787, %cst_367 [1] : vector<8x8xf32> to vector<8xf32>
    %789 = vector.shape_cast %788 : vector<8xf32> to vector<8x1xf32>
    %790 = vector.broadcast %789 : vector<8x1xf32> to vector<8x8xf32>
    %791 = arith.subf %787, %790 : vector<8x8xf32>
    %792 = math.exp %791 : vector<8x8xf32>
    %cst_368 = arith.constant dense<0.000000e+00> : vector<8xf32>
    %793 = vector.multi_reduction <add>, %792, %cst_368 [1] : vector<8x8xf32> to vector<8xf32>
    %794 = vector.shape_cast %793 : vector<8xf32> to vector<8x1xf32>
    %795 = vector.broadcast %794 : vector<8x1xf32> to vector<8x8xf32>
    %796 = arith.divf %792, %795 : vector<8x8xf32>
    %cst_369 = arith.constant dense<0.000000e+00> : vector<8x8xf32>
    %797 = tpu.matmul %796, %784, %cst_369 {dimension_numbers = #tpu.dot_dimension_numbers<[1], [0], [0], [1], [0, 0, 1, 1], [], []>} : vector<8x8xf32>, vector<8x8xf32>, vector<8x8xf32> -> vector<8x8xf32>
    %798 = tpu.concatenate %749, %765, %781, %797 in 1 : vector<8x8xf32>, vector<8x8xf32>, vector<8x8xf32>, vector<8x8xf32> -> vector<8x32xf32>
    %c1_370 = arith.constant 1 : index
    %c0_371 = arith.constant 0 : index
    %c0_372 = arith.constant 0 : index
    %799 = vector.load %arg32[%c1_370, %c0_371, %c0_372] : memref<2x32x32xf32, #tpu.memory_space<vmem>>, vector<1x32x32xf32>
    %800 = vector.shape_cast %799 : vector<1x32x32xf32> to vector<32x32xf32>
    %cst_373 = arith.constant dense<0.000000e+00> : vector<8x32xf32>
    %801 = tpu.matmul %798, %800, %cst_373 {dimension_numbers = #tpu.dot_dimension_numbers<[1], [0], [0], [1], [0, 0, 1, 1], [], []>} : vector<8x32xf32>, vector<32x32xf32>, vector<8x32xf32> -> vector<8x32xf32>
    %c1_374 = arith.constant 1 : index
    %c0_375 = arith.constant 0 : index
    %c0_376 = arith.constant 0 : index
    %802 = vector.load %arg33[%c1_374, %c0_375, %c0_376] : memref<2x1x32xf32, #tpu.memory_space<vmem>>, vector<1x1x32xf32>
    %803 = vector.shape_cast %802 : vector<1x1x32xf32> to vector<1x32xf32>
    %804 = vector.broadcast %803 : vector<1x32xf32> to vector<8x32xf32>
    %805 = arith.addf %801, %804 : vector<8x32xf32>
    %806 = arith.addf %717, %805 : vector<8x32xf32>
    %c1_377 = arith.constant 1 : index
    %c0_378 = arith.constant 0 : index
    %c0_379 = arith.constant 0 : index
    %807 = vector.load %arg34[%c1_377, %c0_378, %c0_379] : memref<2x1x32xf32, #tpu.memory_space<vmem>>, vector<1x1x32xf32>
    %808 = vector.shape_cast %807 : vector<1x1x32xf32> to vector<1x32xf32>
    %c1_380 = arith.constant 1 : index
    %c0_381 = arith.constant 0 : index
    %c0_382 = arith.constant 0 : index
    %809 = vector.load %arg35[%c1_380, %c0_381, %c0_382] : memref<2x1x32xf32, #tpu.memory_space<vmem>>, vector<1x1x32xf32>
    %810 = vector.shape_cast %809 : vector<1x1x32xf32> to vector<1x32xf32>
    %cst_383 = arith.constant dense<0.000000e+00> : vector<8xf32>
    %811 = vector.multi_reduction <add>, %806, %cst_383 [1] : vector<8x32xf32> to vector<8xf32>
    %812 = vector.shape_cast %811 : vector<8xf32> to vector<8x1xf32>
    %cst_384 = arith.constant 3.200000e+01 : f32
    %813 = vector.broadcast %cst_384 : f32 to vector<8x1xf32>
    %814 = arith.divf %812, %813 : vector<8x1xf32>
    %815 = vector.broadcast %814 : vector<8x1xf32> to vector<8x32xf32>
    %816 = arith.subf %806, %815 : vector<8x32xf32>
    %817 = arith.mulf %816, %816 : vector<8x32xf32>
    %cst_385 = arith.constant dense<0.000000e+00> : vector<8xf32>
    %818 = vector.multi_reduction <add>, %817, %cst_385 [1] : vector<8x32xf32> to vector<8xf32>
    %819 = vector.shape_cast %818 : vector<8xf32> to vector<8x1xf32>
    %cst_386 = arith.constant 3.200000e+01 : f32
    %820 = vector.broadcast %cst_386 : f32 to vector<8x1xf32>
    %821 = arith.divf %819, %820 : vector<8x1xf32>
    %cst_387 = arith.constant 9.99999974E-6 : f32
    %822 = vector.broadcast %cst_387 : f32 to vector<8x1xf32>
    %823 = arith.addf %821, %822 : vector<8x1xf32>
    %824 = math.rsqrt %823 : vector<8x1xf32>
    %825 = vector.broadcast %824 : vector<8x1xf32> to vector<8x32xf32>
    %826 = arith.mulf %816, %825 : vector<8x32xf32>
    %827 = vector.broadcast %808 : vector<1x32xf32> to vector<8x32xf32>
    %828 = arith.mulf %826, %827 : vector<8x32xf32>
    %829 = vector.broadcast %810 : vector<1x32xf32> to vector<8x32xf32>
    %830 = arith.addf %828, %829 : vector<8x32xf32>
    %c1_388 = arith.constant 1 : index
    %c0_389 = arith.constant 0 : index
    %c0_390 = arith.constant 0 : index
    %831 = vector.load %arg36[%c1_388, %c0_389, %c0_390] : memref<2x32x64xf32, #tpu.memory_space<vmem>>, vector<1x32x64xf32>
    %832 = vector.shape_cast %831 : vector<1x32x64xf32> to vector<32x64xf32>
    %cst_391 = arith.constant dense<0.000000e+00> : vector<8x64xf32>
    %833 = tpu.matmul %830, %832, %cst_391 {dimension_numbers = #tpu.dot_dimension_numbers<[1], [0], [0], [1], [0, 0, 1, 1], [], []>} : vector<8x32xf32>, vector<32x64xf32>, vector<8x64xf32> -> vector<8x64xf32>
    %c1_392 = arith.constant 1 : index
    %c0_393 = arith.constant 0 : index
    %c0_394 = arith.constant 0 : index
    %834 = vector.load %arg37[%c1_392, %c0_393, %c0_394] : memref<2x1x64xf32, #tpu.memory_space<vmem>>, vector<1x1x64xf32>
    %835 = vector.shape_cast %834 : vector<1x1x64xf32> to vector<1x64xf32>
    %836 = vector.broadcast %835 : vector<1x64xf32> to vector<8x64xf32>
    %837 = arith.addf %833, %836 : vector<8x64xf32>
    %cst_395 = arith.constant 0.000000e+00 : f32
    %838 = vector.broadcast %cst_395 : f32 to vector<8x64xf32>
    %839 = arith.maximumf %837, %838 : vector<8x64xf32>
    %c1_396 = arith.constant 1 : index
    %c0_397 = arith.constant 0 : index
    %c0_398 = arith.constant 0 : index
    %840 = vector.load %arg38[%c1_396, %c0_397, %c0_398] : memref<2x64x32xf32, #tpu.memory_space<vmem>>, vector<1x64x32xf32>
    %841 = vector.shape_cast %840 : vector<1x64x32xf32> to vector<64x32xf32>
    %cst_399 = arith.constant dense<0.000000e+00> : vector<8x32xf32>
    %842 = tpu.matmul %839, %841, %cst_399 {dimension_numbers = #tpu.dot_dimension_numbers<[1], [0], [0], [1], [0, 0, 1, 1], [], []>} : vector<8x64xf32>, vector<64x32xf32>, vector<8x32xf32> -> vector<8x32xf32>
    %c1_400 = arith.constant 1 : index
    %c0_401 = arith.constant 0 : index
    %c0_402 = arith.constant 0 : index
    %843 = vector.load %arg39[%c1_400, %c0_401, %c0_402] : memref<2x1x32xf32, #tpu.memory_space<vmem>>, vector<1x1x32xf32>
    %844 = vector.shape_cast %843 : vector<1x1x32xf32> to vector<1x32xf32>
    %845 = vector.broadcast %844 : vector<1x32xf32> to vector<8x32xf32>
    %846 = arith.addf %842, %845 : vector<8x32xf32>
    %847 = arith.addf %830, %846 : vector<8x32xf32>
    %c1_403 = arith.constant 1 : index
    %c0_404 = arith.constant 0 : index
    %c0_405 = arith.constant 0 : index
    %848 = vector.load %arg40[%c1_403, %c0_404, %c0_405] : memref<2x1x32xf32, #tpu.memory_space<vmem>>, vector<1x1x32xf32>
    %849 = vector.shape_cast %848 : vector<1x1x32xf32> to vector<1x32xf32>
    %c1_406 = arith.constant 1 : index
    %c0_407 = arith.constant 0 : index
    %c0_408 = arith.constant 0 : index
    %850 = vector.load %arg41[%c1_406, %c0_407, %c0_408] : memref<2x1x32xf32, #tpu.memory_space<vmem>>, vector<1x1x32xf32>
    %851 = vector.shape_cast %850 : vector<1x1x32xf32> to vector<1x32xf32>
    %cst_409 = arith.constant dense<0.000000e+00> : vector<8xf32>
    %852 = vector.multi_reduction <add>, %847, %cst_409 [1] : vector<8x32xf32> to vector<8xf32>
    %853 = vector.shape_cast %852 : vector<8xf32> to vector<8x1xf32>
    %cst_410 = arith.constant 3.200000e+01 : f32
    %854 = vector.broadcast %cst_410 : f32 to vector<8x1xf32>
    %855 = arith.divf %853, %854 : vector<8x1xf32>
    %856 = vector.broadcast %855 : vector<8x1xf32> to vector<8x32xf32>
    %857 = arith.subf %847, %856 : vector<8x32xf32>
    %858 = arith.mulf %857, %857 : vector<8x32xf32>
    %cst_411 = arith.constant dense<0.000000e+00> : vector<8xf32>
    %859 = vector.multi_reduction <add>, %858, %cst_411 [1] : vector<8x32xf32> to vector<8xf32>
    %860 = vector.shape_cast %859 : vector<8xf32> to vector<8x1xf32>
    %cst_412 = arith.constant 3.200000e+01 : f32
    %861 = vector.broadcast %cst_412 : f32 to vector<8x1xf32>
    %862 = arith.divf %860, %861 : vector<8x1xf32>
    %cst_413 = arith.constant 9.99999974E-6 : f32
    %863 = vector.broadcast %cst_413 : f32 to vector<8x1xf32>
    %864 = arith.addf %862, %863 : vector<8x1xf32>
    %865 = math.rsqrt %864 : vector<8x1xf32>
    %866 = vector.broadcast %865 : vector<8x1xf32> to vector<8x32xf32>
    %867 = arith.mulf %857, %866 : vector<8x32xf32>
    %868 = vector.broadcast %849 : vector<1x32xf32> to vector<8x32xf32>
    %869 = arith.mulf %867, %868 : vector<8x32xf32>
    %870 = vector.broadcast %851 : vector<1x32xf32> to vector<8x32xf32>
    %871 = arith.addf %869, %870 : vector<8x32xf32>
    %c0_414 = arith.constant 0 : index
    %c0_415 = arith.constant 0 : index
    %872 = vector.load %arg42[%c0_414, %c0_415] : memref<1x32xf32, #tpu.memory_space<vmem>>, vector<1x32xf32>
    %c0_416 = arith.constant 0 : index
    %c0_417 = arith.constant 0 : index
    %873 = vector.load %arg43[%c0_416, %c0_417] : memref<1x32xf32, #tpu.memory_space<vmem>>, vector<1x32xf32>
    %cst_418 = arith.constant dense<0.000000e+00> : vector<8xf32>
    %874 = vector.multi_reduction <add>, %871, %cst_418 [1] : vector<8x32xf32> to vector<8xf32>
    %875 = vector.shape_cast %874 : vector<8xf32> to vector<8x1xf32>
    %cst_419 = arith.constant 3.200000e+01 : f32
    %876 = vector.broadcast %cst_419 : f32 to vector<8x1xf32>
    %877 = arith.divf %875, %876 : vector<8x1xf32>
    %878 = vector.broadcast %877 : vector<8x1xf32> to vector<8x32xf32>
    %879 = arith.subf %871, %878 : vector<8x32xf32>
    %880 = arith.mulf %879, %879 : vector<8x32xf32>
    %cst_420 = arith.constant dense<0.000000e+00> : vector<8xf32>
    %881 = vector.multi_reduction <add>, %880, %cst_420 [1] : vector<8x32xf32> to vector<8xf32>
    %882 = vector.shape_cast %881 : vector<8xf32> to vector<8x1xf32>
    %cst_421 = arith.constant 3.200000e+01 : f32
    %883 = vector.broadcast %cst_421 : f32 to vector<8x1xf32>
    %884 = arith.divf %882, %883 : vector<8x1xf32>
    %cst_422 = arith.constant 9.99999974E-6 : f32
    %885 = vector.broadcast %cst_422 : f32 to vector<8x1xf32>
    %886 = arith.addf %884, %885 : vector<8x1xf32>
    %887 = math.rsqrt %886 : vector<8x1xf32>
    %888 = vector.broadcast %887 : vector<8x1xf32> to vector<8x32xf32>
    %889 = arith.mulf %879, %888 : vector<8x32xf32>
    %890 = vector.broadcast %872 : vector<1x32xf32> to vector<8x32xf32>
    %891 = arith.mulf %889, %890 : vector<8x32xf32>
    %892 = vector.broadcast %873 : vector<1x32xf32> to vector<8x32xf32>
    %893 = arith.addf %891, %892 : vector<8x32xf32>
    %c0_423 = arith.constant 0 : index
    %c0_424 = arith.constant 0 : index
    %894 = vector.load %arg44[%c0_423, %c0_424] : memref<32x4xf32, #tpu.memory_space<vmem>>, vector<32x4xf32>
    %cst_425 = arith.constant dense<0.000000e+00> : vector<8x4xf32>
    %895 = tpu.matmul %893, %894, %cst_425 {dimension_numbers = #tpu.dot_dimension_numbers<[1], [0], [0], [1], [0, 0, 1, 1], [], []>} : vector<8x32xf32>, vector<32x4xf32>, vector<8x4xf32> -> vector<8x4xf32>
    %c0_426 = arith.constant 0 : index
    %c0_427 = arith.constant 0 : index
    %896 = vector.load %arg45[%c0_426, %c0_427] : memref<1x4xf32, #tpu.memory_space<vmem>>, vector<1x4xf32>
    %897 = vector.broadcast %896 : vector<1x4xf32> to vector<8x4xf32>
    %898 = arith.addf %895, %897 : vector<8x4xf32>
    %c0_428 = arith.constant 0 : index
    %c0_429 = arith.constant 0 : index
    %c0_430 = arith.constant 0 : index
    %899 = vector.load %arg46[%c0_428, %c0_429, %c0_430] : memref<1x8x4xf32, #tpu.memory_space<vmem>>, vector<1x8x4xf32>
    %900 = vector.shape_cast %899 : vector<1x8x4xf32> to vector<8x4xf32>
    %901 = vector.shape_cast %898 : vector<8x4xf32> to vector<1x8x4xf32>
    tpu.vector_store %arg46[%c0_428, %c0_429, %c0_430], %901 {strides = array<i32>} : memref<1x8x4xf32, #tpu.memory_space<vmem>>, vector<1x8x4xf32>,
    return
  }
  func.func @transform_0(%arg0: i32) -> (i32, i32, i32) {
    %c0_i32 = arith.constant 0 : i32
    %c0_i32_0 = arith.constant 0 : i32
    %c0_i32_1 = arith.constant 0 : i32
    return %arg0, %c0_i32, %c0_i32_0 : i32, i32, i32
  }
  func.func @transform_1(%arg0: i32) -> (i32, i32, i32) {
    %c0_i32 = arith.constant 0 : i32
    %c0_i32_0 = arith.constant 0 : i32
    %c0_i32_1 = arith.constant 0 : i32
    return %arg0, %c0_i32, %c0_i32_0 : i32, i32, i32
  }
  func.func @transform_2(%arg0: i32) -> (i32, i32) {
    %c0_i32 = arith.constant 0 : i32
    %c0_i32_0 = arith.constant 0 : i32
    %c0_i32_1 = arith.constant 0 : i32
    return %c0_i32, %c0_i32_0 : i32, i32
  }
  func.func @transform_3(%arg0: i32) -> (i32, i32) {
    %c0_i32 = arith.constant 0 : i32
    %c0_i32_0 = arith.constant 0 : i32
    %c0_i32_1 = arith.constant 0 : i32
    return %c0_i32, %c0_i32_0 : i32, i32
  }
  func.func @transform_4(%arg0: i32) -> (i32, i32) {
    %c0_i32 = arith.constant 0 : i32
    %c0_i32_0 = arith.constant 0 : i32
    %c0_i32_1 = arith.constant 0 : i32
    return %c0_i32, %c0_i32_0 : i32, i32
  }
  func.func @transform_5(%arg0: i32) -> (i32, i32) {
    %c0_i32 = arith.constant 0 : i32
    %c0_i32_0 = arith.constant 0 : i32
    %c0_i32_1 = arith.constant 0 : i32
    return %c0_i32, %c0_i32_0 : i32, i32
  }
  func.func @transform_6(%arg0: i32) -> (i32, i32) {
    %c0_i32 = arith.constant 0 : i32
    %c0_i32_0 = arith.constant 0 : i32
    %c0_i32_1 = arith.constant 0 : i32
    return %c0_i32, %c0_i32_0 : i32, i32
  }
  func.func @transform_7(%arg0: i32) -> (i32, i32, i32) {
    %c0_i32 = arith.constant 0 : i32
    %c0_i32_0 = arith.constant 0 : i32
    %c0_i32_1 = arith.constant 0 : i32
    %c0_i32_2 = arith.constant 0 : i32
    return %c0_i32, %c0_i32_0, %c0_i32_1 : i32, i32, i32
  }
  func.func @transform_8(%arg0: i32) -> (i32, i32, i32) {
    %c0_i32 = arith.constant 0 : i32
    %c0_i32_0 = arith.constant 0 : i32
    %c0_i32_1 = arith.constant 0 : i32
    %c0_i32_2 = arith.constant 0 : i32
    return %c0_i32, %c0_i32_0, %c0_i32_1 : i32, i32, i32
  }
  func.func @transform_9(%arg0: i32) -> (i32, i32, i32) {
    %c0_i32 = arith.constant 0 : i32
    %c0_i32_0 = arith.constant 0 : i32
    %c0_i32_1 = arith.constant 0 : i32
    %c0_i32_2 = arith.constant 0 : i32
    return %c0_i32, %c0_i32_0, %c0_i32_1 : i32, i32, i32
  }
  func.func @transform_10(%arg0: i32) -> (i32, i32, i32) {
    %c0_i32 = arith.constant 0 : i32
    %c0_i32_0 = arith.constant 0 : i32
    %c0_i32_1 = arith.constant 0 : i32
    %c0_i32_2 = arith.constant 0 : i32
    return %c0_i32, %c0_i32_0, %c0_i32_1 : i32, i32, i32
  }
  func.func @transform_11(%arg0: i32) -> (i32, i32, i32) {
    %c0_i32 = arith.constant 0 : i32
    %c0_i32_0 = arith.constant 0 : i32
    %c0_i32_1 = arith.constant 0 : i32
    %c0_i32_2 = arith.constant 0 : i32
    return %c0_i32, %c0_i32_0, %c0_i32_1 : i32, i32, i32
  }
  func.func @transform_12(%arg0: i32) -> (i32, i32, i32) {
    %c0_i32 = arith.constant 0 : i32
    %c0_i32_0 = arith.constant 0 : i32
    %c0_i32_1 = arith.constant 0 : i32
    %c0_i32_2 = arith.constant 0 : i32
    return %c0_i32, %c0_i32_0, %c0_i32_1 : i32, i32, i32
  }
  func.func @transform_13(%arg0: i32) -> (i32, i32, i32) {
    %c0_i32 = arith.constant 0 : i32
    %c0_i32_0 = arith.constant 0 : i32
    %c0_i32_1 = arith.constant 0 : i32
    %c0_i32_2 = arith.constant 0 : i32
    return %c0_i32, %c0_i32_0, %c0_i32_1 : i32, i32, i32
  }
  func.func @transform_14(%arg0: i32) -> (i32, i32, i32) {
    %c0_i32 = arith.constant 0 : i32
    %c0_i32_0 = arith.constant 0 : i32
    %c0_i32_1 = arith.constant 0 : i32
    %c0_i32_2 = arith.constant 0 : i32
    return %c0_i32, %c0_i32_0, %c0_i32_1 : i32, i32, i32
  }
  func.func @transform_15(%arg0: i32) -> (i32, i32, i32) {
    %c0_i32 = arith.constant 0 : i32
    %c0_i32_0 = arith.constant 0 : i32
    %c0_i32_1 = arith.constant 0 : i32
    %c0_i32_2 = arith.constant 0 : i32
    return %c0_i32, %c0_i32_0, %c0_i32_1 : i32, i32, i32
  }
  func.func @transform_16(%arg0: i32) -> (i32, i32, i32) {
    %c0_i32 = arith.constant 0 : i32
    %c0_i32_0 = arith.constant 0 : i32
    %c0_i32_1 = arith.constant 0 : i32
    %c0_i32_2 = arith.constant 0 : i32
    return %c0_i32, %c0_i32_0, %c0_i32_1 : i32, i32, i32
  }
  func.func @transform_17(%arg0: i32) -> (i32, i32, i32) {
    %c0_i32 = arith.constant 0 : i32
    %c0_i32_0 = arith.constant 0 : i32
    %c0_i32_1 = arith.constant 0 : i32
    %c0_i32_2 = arith.constant 0 : i32
    return %c0_i32, %c0_i32_0, %c0_i32_1 : i32, i32, i32
  }
  func.func @transform_18(%arg0: i32) -> (i32, i32, i32) {
    %c0_i32 = arith.constant 0 : i32
    %c0_i32_0 = arith.constant 0 : i32
    %c0_i32_1 = arith.constant 0 : i32
    %c0_i32_2 = arith.constant 0 : i32
    return %c0_i32, %c0_i32_0, %c0_i32_1 : i32, i32, i32
  }
  func.func @transform_19(%arg0: i32) -> (i32, i32) {
    %c0_i32 = arith.constant 0 : i32
    %c0_i32_0 = arith.constant 0 : i32
    %c0_i32_1 = arith.constant 0 : i32
    return %c0_i32, %c0_i32_0 : i32, i32
  }
  func.func @transform_20(%arg0: i32) -> (i32, i32) {
    %c0_i32 = arith.constant 0 : i32
    %c0_i32_0 = arith.constant 0 : i32
    %c0_i32_1 = arith.constant 0 : i32
    return %c0_i32, %c0_i32_0 : i32, i32
  }
  func.func @transform_21(%arg0: i32) -> (i32, i32, i32) {
    %c0_i32 = arith.constant 0 : i32
    %c0_i32_0 = arith.constant 0 : i32
    %c0_i32_1 = arith.constant 0 : i32
    %c0_i32_2 = arith.constant 0 : i32
    return %c0_i32, %c0_i32_0, %c0_i32_1 : i32, i32, i32
  }
  func.func @transform_22(%arg0: i32) -> (i32, i32, i32) {
    %c0_i32 = arith.constant 0 : i32
    %c0_i32_0 = arith.constant 0 : i32
    %c0_i32_1 = arith.constant 0 : i32
    %c0_i32_2 = arith.constant 0 : i32
    return %c0_i32, %c0_i32_0, %c0_i32_1 : i32, i32, i32
  }
  func.func @transform_23(%arg0: i32) -> (i32, i32, i32) {
    %c0_i32 = arith.constant 0 : i32
    %c0_i32_0 = arith.constant 0 : i32
    %c0_i32_1 = arith.constant 0 : i32
    %c0_i32_2 = arith.constant 0 : i32
    return %c0_i32, %c0_i32_0, %c0_i32_1 : i32, i32, i32
  }
  func.func @transform_24(%arg0: i32) -> (i32, i32, i32) {
    %c0_i32 = arith.constant 0 : i32
    %c0_i32_0 = arith.constant 0 : i32
    %c0_i32_1 = arith.constant 0 : i32
    %c0_i32_2 = arith.constant 0 : i32
    return %c0_i32, %c0_i32_0, %c0_i32_1 : i32, i32, i32
  }
  func.func @transform_25(%arg0: i32) -> (i32, i32, i32) {
    %c0_i32 = arith.constant 0 : i32
    %c0_i32_0 = arith.constant 0 : i32
    %c0_i32_1 = arith.constant 0 : i32
    %c0_i32_2 = arith.constant 0 : i32
    return %c0_i32, %c0_i32_0, %c0_i32_1 : i32, i32, i32
  }
  func.func @transform_26(%arg0: i32) -> (i32, i32, i32) {
    %c0_i32 = arith.constant 0 : i32
    %c0_i32_0 = arith.constant 0 : i32
    %c0_i32_1 = arith.constant 0 : i32
    %c0_i32_2 = arith.constant 0 : i32
    return %c0_i32, %c0_i32_0, %c0_i32_1 : i32, i32, i32
  }
  func.func @transform_27(%arg0: i32) -> (i32, i32, i32) {
    %c0_i32 = arith.constant 0 : i32
    %c0_i32_0 = arith.constant 0 : i32
    %c0_i32_1 = arith.constant 0 : i32
    %c0_i32_2 = arith.constant 0 : i32
    return %c0_i32, %c0_i32_0, %c0_i32_1 : i32, i32, i32
  }
  func.func @transform_28(%arg0: i32) -> (i32, i32, i32) {
    %c0_i32 = arith.constant 0 : i32
    %c0_i32_0 = arith.constant 0 : i32
    %c0_i32_1 = arith.constant 0 : i32
    %c0_i32_2 = arith.constant 0 : i32
    return %c0_i32, %c0_i32_0, %c0_i32_1 : i32, i32, i32
  }
  func.func @transform_29(%arg0: i32) -> (i32, i32, i32) {
    %c0_i32 = arith.constant 0 : i32
    %c0_i32_0 = arith.constant 0 : i32
    %c0_i32_1 = arith.constant 0 : i32
    %c0_i32_2 = arith.constant 0 : i32
    return %c0_i32, %c0_i32_0, %c0_i32_1 : i32, i32, i32
  }
  func.func @transform_30(%arg0: i32) -> (i32, i32, i32) {
    %c0_i32 = arith.constant 0 : i32
    %c0_i32_0 = arith.constant 0 : i32
    %c0_i32_1 = arith.constant 0 : i32
    %c0_i32_2 = arith.constant 0 : i32
    return %c0_i32, %c0_i32_0, %c0_i32_1 : i32, i32, i32
  }
  func.func @transform_31(%arg0: i32) -> (i32, i32, i32) {
    %c0_i32 = arith.constant 0 : i32
    %c0_i32_0 = arith.constant 0 : i32
    %c0_i32_1 = arith.constant 0 : i32
    %c0_i32_2 = arith.constant 0 : i32
    return %c0_i32, %c0_i32_0, %c0_i32_1 : i32, i32, i32
  }
  func.func @transform_32(%arg0: i32) -> (i32, i32, i32) {
    %c0_i32 = arith.constant 0 : i32
    %c0_i32_0 = arith.constant 0 : i32
    %c0_i32_1 = arith.constant 0 : i32
    %c0_i32_2 = arith.constant 0 : i32
    return %c0_i32, %c0_i32_0, %c0_i32_1 : i32, i32, i32
  }
  func.func @transform_33(%arg0: i32) -> (i32, i32, i32) {
    %c0_i32 = arith.constant 0 : i32
    %c0_i32_0 = arith.constant 0 : i32
    %c0_i32_1 = arith.constant 0 : i32
    %c0_i32_2 = arith.constant 0 : i32
    return %c0_i32, %c0_i32_0, %c0_i32_1 : i32, i32, i32
  }
  func.func @transform_34(%arg0: i32) -> (i32, i32, i32) {
    %c0_i32 = arith.constant 0 : i32
    %c0_i32_0 = arith.constant 0 : i32
    %c0_i32_1 = arith.constant 0 : i32
    %c0_i32_2 = arith.constant 0 : i32
    return %c0_i32, %c0_i32_0, %c0_i32_1 : i32, i32, i32
  }
  func.func @transform_35(%arg0: i32) -> (i32, i32, i32) {
    %c0_i32 = arith.constant 0 : i32
    %c0_i32_0 = arith.constant 0 : i32
    %c0_i32_1 = arith.constant 0 : i32
    %c0_i32_2 = arith.constant 0 : i32
    return %c0_i32, %c0_i32_0, %c0_i32_1 : i32, i32, i32
  }
  func.func @transform_36(%arg0: i32) -> (i32, i32, i32) {
    %c0_i32 = arith.constant 0 : i32
    %c0_i32_0 = arith.constant 0 : i32
    %c0_i32_1 = arith.constant 0 : i32
    %c0_i32_2 = arith.constant 0 : i32
    return %c0_i32, %c0_i32_0, %c0_i32_1 : i32, i32, i32
  }
  func.func @transform_37(%arg0: i32) -> (i32, i32, i32) {
    %c0_i32 = arith.constant 0 : i32
    %c0_i32_0 = arith.constant 0 : i32
    %c0_i32_1 = arith.constant 0 : i32
    %c0_i32_2 = arith.constant 0 : i32
    return %c0_i32, %c0_i32_0, %c0_i32_1 : i32, i32, i32
  }
  func.func @transform_38(%arg0: i32) -> (i32, i32, i32) {
    %c0_i32 = arith.constant 0 : i32
    %c0_i32_0 = arith.constant 0 : i32
    %c0_i32_1 = arith.constant 0 : i32
    %c0_i32_2 = arith.constant 0 : i32
    return %c0_i32, %c0_i32_0, %c0_i32_1 : i32, i32, i32
  }
  func.func @transform_39(%arg0: i32) -> (i32, i32, i32) {
    %c0_i32 = arith.constant 0 : i32
    %c0_i32_0 = arith.constant 0 : i32
    %c0_i32_1 = arith.constant 0 : i32
    %c0_i32_2 = arith.constant 0 : i32
    return %c0_i32, %c0_i32_0, %c0_i32_1 : i32, i32, i32
  }
  func.func @transform_40(%arg0: i32) -> (i32, i32, i32) {
    %c0_i32 = arith.constant 0 : i32
    %c0_i32_0 = arith.constant 0 : i32
    %c0_i32_1 = arith.constant 0 : i32
    %c0_i32_2 = arith.constant 0 : i32
    return %c0_i32, %c0_i32_0, %c0_i32_1 : i32, i32, i32
  }
  func.func @transform_41(%arg0: i32) -> (i32, i32) {
    %c0_i32 = arith.constant 0 : i32
    %c0_i32_0 = arith.constant 0 : i32
    %c0_i32_1 = arith.constant 0 : i32
    return %c0_i32, %c0_i32_0 : i32, i32
  }
  func.func @transform_42(%arg0: i32) -> (i32, i32) {
    %c0_i32 = arith.constant 0 : i32
    %c0_i32_0 = arith.constant 0 : i32
    %c0_i32_1 = arith.constant 0 : i32
    return %c0_i32, %c0_i32_0 : i32, i32
  }
  func.func @transform_43(%arg0: i32) -> (i32, i32) {
    %c0_i32 = arith.constant 0 : i32
    %c0_i32_0 = arith.constant 0 : i32
    %c0_i32_1 = arith.constant 0 : i32
    return %c0_i32, %c0_i32_0 : i32, i32
  }
  func.func @transform_44(%arg0: i32) -> (i32, i32) {
    %c0_i32 = arith.constant 0 : i32
    %c0_i32_0 = arith.constant 0 : i32
    %c0_i32_1 = arith.constant 0 : i32
    return %c0_i32, %c0_i32_0 : i32, i32
  }
  func.func @transform_45(%arg0: i32) -> (i32, i32, i32) {
    %c0_i32 = arith.constant 0 : i32
    %c0_i32_0 = arith.constant 0 : i32
    %c0_i32_1 = arith.constant 0 : i32
    return %arg0, %c0_i32, %c0_i32_0 : i32, i32, i32
  }
}

</mosaic_0001>

<bundles_post_ra>
// kernel: model_forward.1
= control target key start
LH: loop header
LB: loop body
LE: loop exit
PB: predicated region body
PF: predicated region fallthrough
CT: control target
= control target key end

     0   :  { %s10708_s6 = smov 1   ;;  %s10709_s10 = smov 2   ;;  %s12140_s0 = inlined_call_operand.smem [shape: u32[46], index: -1, kind: input, shape index: {}] }
   0x1   :  { %s10803_s5 = sld [smem:[%s12140_s0]]   ;;  %s10710_s14 = smov 3  }
   0x2   :  { %s10808_s9 = sld [smem:[%s12140_s0 + %s10708_s6]]   ;;  %s10711_s18 = smov 4  }
   0x3   :  { %s10813_s13 = sld [smem:[%s12140_s0 + %s10709_s10]]   ;;  %s10712_s22 = smov 5  }
   0x4   :  { %s10818_s17 = sld [smem:[%s12140_s0 + %s10710_s14]]   ;;  %s10713_s26 = smov 6  }
   0x5   :  { %s10823_s21 = sld [smem:[%s12140_s0 + %s10711_s18]]   ;;  %s10714_s30 = smov 7  }
   0x6   :  { %s10828_s25 = sld [smem:[%s12140_s0 + %s10712_s22]]   ;;  %s10715_s4 = smov 8  }
   0x7   :  { %12231 = sst [smem:[#allocation41_spill]] %s10803_s5  ;;  %s10716_s10 = smov 9  }
   0x8   :  { %12232 = sst [smem:[#allocation42_spill]] %s10808_s9  ;;  %s10717_s15 = smov 10  }
   0x9   :  { %12233 = sst [smem:[#allocation43_spill]] %s10813_s13  ;;  %s10718_s20 = smov 11  }
   0xa   :  { %12234 = sst [smem:[#allocation44_spill]] %s10818_s17  ;;  %s10720_s1 = smov 13  }
   0xb   :  { %12235 = sst [smem:[#allocation45_spill]] %s10823_s21  ;;  %s10721_s7 = smov 14  }
   0xc   :  { %12236 = sst [smem:[#allocation46_spill]] %s10828_s25  ;;  %s10723_s22 = smov 16  }
   0xd   :  { %s10833_s29 = sld [smem:[%s12140_s0 + %s10713_s26]]   ;;  %s10719_s26 = smov 12  }
   0xe   :  { %s10838_s3 = sld [smem:[%s12140_s0 + %s10714_s30]]   ;;  %s10724_s28 = smov 17  }
   0xf   :  { %s10843_s8 = sld [smem:[%s12140_s0 + %s10715_s4]]  }
  0x10   :  { %s10848_s14 = sld [smem:[%s12140_s0 + %s10716_s10]]  }
  0x11   :  { %s10853_s19 = sld [smem:[%s12140_s0 + %s10717_s15]]   ;;  %s10722_s15 = smov 15  }
  0x12   :  { %s10858_s24 = sld [smem:[%s12140_s0 + %s10718_s20]]  }
  0x13   :  { %12237 = sst [smem:[#allocation47_spill]] %s10833_s29 }
  0x14   :  { %12238 = sst [smem:[#allocation48_spill]] %s10838_s3 }
  0x15   :  { %12239 = sst [smem:[#allocation49_spill]] %s10843_s8 }
  0x16   :  { %12240 = sst [smem:[#allocation50_spill]] %s10848_s14 }
  0x17   :  { %12241 = sst [smem:[#allocation51_spill]] %s10853_s19 }
  0x18   :  { %12242 = sst [smem:[#allocation52_spill]] %s10858_s24 }
  0x19   :  { %s10863_s30 = sld [smem:[%s12140_s0 + %s10719_s26]]  }
  0x1a   :  { %s10868_s6 = sld [smem:[%s12140_s0 + %s10720_s1]]  }
  0x1b   :  { %s10873_s12 = sld [smem:[%s12140_s0 + %s10721_s7]]   ;;  %s10725_s7 = smov 18  }
  0x1c   :  { %s10878_s20 = sld [smem:[%s12140_s0 + %s10722_s15]]   ;;  %s10726_s15 = smov 19  }
  0x1d   :  { %s10883_s27 = sld [smem:[%s12140_s0 + %s10723_s22]]   ;;  %s10727_s22 = smov 20  }
  0x1e   :  { %s10888_s4 = sld [smem:[%s12140_s0 + %s10724_s28]]   ;;  %s10728_s28 = smov 21  }
  0x1f   :  { %12243 = sst [smem:[#allocation53_spill]] %s10863_s30 }
  0x20   :  { %12244 = sst [smem:[#allocation54_spill]] %s10868_s6 }
  0x21   :  { %12245 = sst [smem:[#allocation55_spill]] %s10873_s12 }
  0x22   :  { %12246 = sst [smem:[#allocation56_spill]] %s10878_s20 }
  0x23   :  { %12247 = sst [smem:[#allocation57_spill]] %s10883_s27 }
  0x24   :  { %12248 = sst [smem:[#allocation58_spill]] %s10888_s4 }
  0x25   :  { %s10893_s9 = sld [smem:[%s12140_s0 + %s10725_s7]]   ;;  %s10729_s7 = smov 22  }
  0x26   :  { %s10898_s12 = sld [smem:[%s12140_s0 + %s10726_s15]]   ;;  %s10730_s15 = smov 23  }
  0x27   :  { %s10903_s27 = sld [smem:[%s12140_s0 + %s10727_s22]]   ;;  %s10731_s22 = smov 24  }
  0x28   :  { %s10908_s4 = sld [smem:[%s12140_s0 + %s10728_s28]]   ;;  %s10732_s28 = smov 25  }
  0x2b   :  { %12249 = sst [smem:[#allocation59_spill]] %s10893_s9 }
  0x2c   :  { %12250 = sst [smem:[#allocation60_spill]] %s10898_s12 }
  0x2d   :  { %12251 = sst [smem:[#allocation61_spill]] %s10903_s27 }
  0x2e   :  { %12252 = sst [smem:[#allocation62_spill]] %s10908_s4 }
  0x2f   :  { %s10913_s9 = sld [smem:[%s12140_s0 + %s10729_s7]]   ;;  %s10733_s7 = smov 26  }
  0x30   :  { %s10918_s12 = sld [smem:[%s12140_s0 + %s10730_s15]]   ;;  %s10734_s15 = smov 27  }
  0x31   :  { %s10923_s27 = sld [smem:[%s12140_s0 + %s10731_s22]]   ;;  %s10735_s22 = smov 28  }
  0x32   :  { %s10928_s4 = sld [smem:[%s12140_s0 + %s10732_s28]]   ;;  %s10736_s28 = smov 29  }
  0x33   :  { %s10933_s30 = sld [smem:[%s12140_s0 + %s10733_s7]]   ;;  %s10737_s7 = smov 30  }
  0x34   :  { %s10943_s24 = sld [smem:[%s12140_s0 + %s10735_s22]]   ;;  %s10739_s22 = smov 32  }
  0x35   :  { %12253 = sst [smem:[#allocation63_spill]] %s10913_s9 }
  0x36   :  { %12254 = sst [smem:[#allocation64_spill]] %s10918_s12 }
  0x37   :  { %12255 = sst [smem:[#allocation65_spill]] %s10923_s27 }
  0x38   :  { %12256 = sst [smem:[#allocation66_spill]] %s10928_s4 }
  0x39   :  { %12257 = sst [smem:[#allocation67_spill]] %s10933_s30 }
  0x3a   :  { %s10938_s12 = sld [smem:[%s12140_s0 + %s10734_s15]]   ;;  %s10738_s15 = smov 31  }
  0x3b   :  { %12259 = sst [smem:[#allocation69_spill]] %s10943_s24 }
  0x3c   :  { %s10948_s20 = sld [smem:[%s12140_s0 + %s10736_s28]]   ;;  %s10740_s28 = smov 33  }
  0x3d   :  { %s10953_s6 = sld [smem:[%s12140_s0 + %s10737_s7]]   ;;  %s10741_s7 = smov 34  }
  0x3e   :  { %s10963_s19 = sld [smem:[%s12140_s0 + %s10739_s22]]   ;;  %s10743_s22 = smov 36  }
  0x3f   :  { %s10973_s14 = sld [smem:[%s12140_s0 + %s10741_s7]]   ;;  %s10745_s7 = smov 38  }
  0x40   :  { %12258 = sst [smem:[#allocation68_spill]] %s10938_s12 }
  0x41   :  { %s10958_s12 = sld [smem:[%s12140_s0 + %s10738_s15]]   ;;  %s10742_s15 = smov 35  }
  0x42   :  { %12260 = sst [smem:[#allocation70_spill]] %s10948_s20 }
  0x43   :  { %12261 = sst [smem:[#allocation71_spill]] %s10953_s6 }
  0x44   :  { %12263 = sst [smem:[#allocation73_spill]] %s10963_s19 }
  0x45   :  { %s10968_s20 = sld [smem:[%s12140_s0 + %s10740_s28]]   ;;  %s10744_s28 = smov 37  }
  0x46   :  { %12265 = sst [smem:[#allocation75_spill]] %s10973_s14 }
  0x47   :  { %12262 = sst [smem:[#allocation72_spill]] %s10958_s12 }
  0x48   :  { %s10978_s8 = sld [smem:[%s12140_s0 + %s10742_s15]]   ;;  %s10746_s15 = smov 39  }
  0x49   :  { %s10983_s13 = sld [smem:[%s12140_s0 + %s10743_s22]]   ;;  %s10747_s22 = smov 40  }
  0x4a   :  { %s10988_s21 = sld [smem:[%s12140_s0 + %s10744_s28]]   ;;  %s10748_s28 = smov 41  }
  0x4b   :  { %12264 = sst [smem:[#allocation74_spill]] %s10968_s20 }
  0x4c   :  { %s10993_s3 = sld [smem:[%s12140_s0 + %s10745_s7]]   ;;  %s10749_s7 = smov 42  }
  0x4d   :  { %s10998_s17 = sld [smem:[%s12140_s0 + %s10746_s15]]   ;;  %s10750_s15 = smov 43  }
  0x4e   :  { %12266 = sst [smem:[#allocation76_spill]] %s10978_s8 }
  0x4f   :  { %12267 = sst [smem:[#allocation77_spill]] %s10983_s13 }
  0x50   :  { %12268 = sst [smem:[#allocation78_spill]] %s10988_s21 }
  0x51   :  { %s11003_s5 = sld [smem:[%s12140_s0 + %s10747_s22]]   ;;  %s10751_s22 = smov 44  }
  0x52   :  { %12269 = sst [smem:[#allocation79_spill]] %s10993_s3 }
  0x53   :  { %12270 = sst [smem:[#allocation80_spill]] %s10998_s17 }
  0x54   :  { %s11008_s21 = sld [smem:[%s12140_s0 + %s10748_s28]]   ;;  %s10752_s28 = smov 45  }
  0x55   :  { %s11013_s3 = sld [smem:[%s12140_s0 + %s10749_s7]]  }
  0x56   :  { %s11018_s8 = sld [smem:[%s12140_s0 + %s10750_s15]]  }
  0x57   :  { %12271 = sst [smem:[#allocation81_spill]] %s11003_s5 }
  0x58   :  { %s11023_s5 = sld [smem:[%s12140_s0 + %s10751_s22]]  }
  0x59   :  { %s11028_s20 = sld [smem:[%s12140_s0 + %s10752_s28]]  }
  0x5a   :  { %12272 = sst [smem:[#allocation82_spill]] %s11008_s21 }
  0x5b   :  { %12273 = sst [smem:[#allocation83_spill]] %s11013_s3 }
  0x5c   :  { %96 = vsyncpa [#allocation3], 0 }
  0x5d   :  { %97 = vsyncpa [#allocation5], 0 }
  0x5e   :  { %98 = vsyncpa [#allocation8], 0 }
  0x5f   :  { %99 = vsyncpa [#allocation11], 0 }
  0x60   :  { %100 = vsyncpa [#allocation14], 0 }
  0x61   :  { %101 = vsyncpa [#allocation17], 0 }
  0x62   :  { %102 = vsyncpa [#allocation20], 0 }
  0x63   :  { %103 = vsyncpa [#allocation23], 0 }
  0x64   :  { %104 = vsyncpa [#allocation26], 0 }
  0x65   :  { %105 = vsyncpa [#allocation29], 0  ;;  %s11030_s7 = smov 0  }
  0x66 LB: > { %s12274_s30 = sld [smem:[#allocation67_spill]]  ;;  %s12275_s29 = sld [smem:[#allocation47_spill]]  ;;  %s10706_s7 = sphi %s11030_s7, %s111_s7  }
  0x67   : > { %s12276_s25 = sld [smem:[#allocation46_spill]]  ;;  %s12277_s24 = sld [smem:[#allocation69_spill]] }
  0x68   : > { %s12278_s21 = sld [smem:[#allocation82_spill]]  ;;  %s12279_s19 = sld [smem:[#allocation73_spill]] }
  0x69   : > { %s12280_s17 = sld [smem:[#allocation80_spill]]  ;;  %s12281_s14 = sld [smem:[#allocation75_spill]] }
  0x6a   : > { %s12282_s13 = sld [smem:[#allocation77_spill]]  ;;  %s12283_s3 = sld [smem:[#allocation83_spill]] }
  0x6b   : > { %s12284_s12 = sld [smem:[#allocation72_spill]]  ;;  %s12285_s9 = sld [smem:[#allocation63_spill]] }
  0x6c   : > { %s12286_s6 = sld [smem:[#allocation71_spill]]  ;;  %s12287_s4 = sld [smem:[#allocation66_spill]] }
  0x6d   : > { %s12288_s27 = sld [smem:[#allocation65_spill]]  ;;  %12289 = sst [smem:[#allocation84_spill]] %s10706_s7 }
  0x6e   : > { %s10753_s0 = smov [#allocation4]   ;;  %s11036_s11 = sadd.s32 4294967295, %s10706_s7  }
  0x6f   : > { %s1132_s10 = sshll.u32 %s10753_s0, 4  ;;  %p8552_p0 = scmp.ge.s32.totalorder %s10706_s7, 1  ;;  %s11041_s10 = int_to_ptr.vmem [resolvable:$true] %s1132_s10 }
  0x70   : > { %p1097_p1 = scmp.lt.s32.totalorder %s10706_s7, 3  ;;  %p12164_p2 = scmp.eq.s32.totalorder %s11036_s11, 0 }
  0x71   : > { %s10754_s16 = smov [#allocation7]   ;;  %s10755_s23 = smov [#allocation10]  }
  0x72   : > { %p11043_p3 = pnand %p8552_p0, %p1097_p1  ;;  %s1203_s18 = sshll.u32 %s10754_s16, 4  ;;  %s11049_s18 = int_to_ptr.vmem [resolvable:$true] %s1203_s18 }
  0x73   : > { %s1229_s26 = sshll.u32 %s10755_s23, 4  ;;  %s10756_s28 = smov [#allocation13]   ;;  %s11057_s26 = int_to_ptr.vmem [resolvable:$true] %s1229_s26 }
  0x74   : > { %s12290_s15 = scalar_select %p11043_p3, 1, 0 }
  0x75   : > { %p9816_p4 = pneg %p11043_p3  ;;  %s11059_s1 = sshll.u32 %s10756_s28, 4  ;;  %s1262_s1 = int_to_ptr.vmem [resolvable:$true] %s11059_s1 }
  0x76   : > { %s10128_s2 = scalar_lea.hbm %s12275_s29, 16 }
  0x77   : > { %p11053_p5 = pnand %p12164_p2, %p9816_p4  ;;  %p10129_p6 = scmp.ne.s32.totalorder %s12275_s29, %s10128_s2 }
  0x78   : > { %p10135_p10 = scmp.lt.u32.totalorder %s10128_s2, %s12275_s29 }
  0x79   : > { %p11065_p7 = pneg %p11053_p5 }
  0x7b   : > { %p10131_p8 = pnand %p11065_p7, %p10129_p6 }
  0x7d   : > { %p10132_p9 = pneg %p10131_p8 }
  0x7f   : > { %p10137_p11 = pnand %p10135_p10, %p10132_p9 }
  0x81   : > { %10140 = shalt.err (!%p10137_p11)
}
  0x82   : > { %s10141_s16 = scalar_lea.vmem %s11041_s10, 16  ;;  %s10148_s23 = scalar_lea.vmem %s11041_s10, 32 }
  0x83   : > { %p10142_p12 = scmp.ne.s32.totalorder %s11041_s10, %s10141_s16  ;;  %p10149_p1 = scmp.lt.s32.totalorder %s11041_s10, %s11041_s10 }
  0x84   : > { %p10150_p4 = scmp.lt.s32.totalorder %s10148_s23, %s10141_s16 }
  0x85   : > { %p10144_p13 = pnand %p10142_p12, %p11065_p7 }
  0x86   : > { %p10151_p2 = por %p10150_p4, %p10149_p1 }
  0x87   : > { %p10145_p0 = pneg %p10144_p13 }
  0x89   : > { %p10152_p6 = pnand %p10151_p2, %p10145_p0 }
  0x8b   : > { %10155 = shalt.err (!%p10152_p6)
}
  0x8c   : > { %9822 = dma.hbm_to_vmem [thread:$0]  (!%p11053_p5), %s12275_s29, 16, %s11041_s10, [#allocation5]  }
  0x8d   : > { %s10156_s28 = scalar_lea.hbm %s12288_s27, 32 }
  0x8e   : > { %p10157_p8 = scmp.ne.s32.totalorder %s12288_s27, %s10156_s28  ;;  %p10163_p11 = scmp.lt.u32.totalorder %s10156_s28, %s12288_s27 }
  0x90   : > { %p10159_p9 = pnand %p10157_p8, %p11065_p7 }
  0x92   : > { %p10160_p10 = pneg %p10159_p9 }
  0x94   : > { %p10165_p12 = pnand %p10163_p11, %p10160_p10 }
  0x96   : > { %10168 = shalt.err (!%p10165_p12)
}
  0x97   : > { %s10169_s2 = scalar_lea.vmem %s11049_s18, 32  ;;  %p10177_p1 = scmp.lt.s32.totalorder %s11049_s18, %s11049_s18 }
  0x98   : > { %p10170_p2 = scmp.ne.s32.totalorder %s11049_s18, %s10169_s2  ;;  %p10178_p4 = scmp.lt.s32.totalorder %s10169_s2, %s10169_s2 }
  0x9a   : > { %p10172_p13 = pnand %p10170_p2, %p11065_p7  ;;  %p10179_p6 = por %p10178_p4, %p10177_p1 }
  0x9c   : > { %p10173_p0 = pneg %p10172_p13 }
  0x9e   : > { %p10180_p3 = pnand %p10179_p6, %p10173_p0 }
  0xa0   : > { %10183 = shalt.err (!%p10180_p3)
}
  0xa1   : > { %s12167_s10 = smov 16   ;;  %s12169_s16 = smov 1  }
  0xa2   : > { %9828 = dma.hbm_to_vmem [thread:$0]  (!%p11053_p5), %s12288_s27, 32, %s11049_s18, [#allocation8], %s12167_s10, %s12167_s10, %s12169_s16  }
  0xa3   : > { %s10184_s23 = scalar_lea.hbm %s12274_s30, 32 }
  0xa4   : > { %p10185_p8 = scmp.ne.s32.totalorder %s12274_s30, %s10184_s23  ;;  %p10191_p3 = scmp.lt.u32.totalorder %s10184_s23, %s12274_s30 }
  0xa6   : > { %p10187_p9 = pnand %p10185_p8, %p11065_p7 }
  0xa8   : > { %p10188_p10 = pneg %p10187_p9 }
  0xaa   : > { %p10193_p11 = pnand %p10191_p3, %p10188_p10 }
  0xac   : > { %10196 = shalt.err (!%p10193_p11)
}
  0xad   : > { %s10197_s28 = scalar_lea.vmem %s11057_s26, 32  ;;  %p10205_p0 = scmp.lt.s32.totalorder %s11057_s26, %s11057_s26 }
  0xae   : > { %p10198_p12 = scmp.ne.s32.totalorder %s11057_s26, %s10197_s28  ;;  %p10206_p1 = scmp.lt.s32.totalorder %s10197_s28, %s10197_s28 }
  0xb0   : > { %p10200_p2 = pnand %p10198_p12, %p11065_p7  ;;  %p10207_p4 = por %p10206_p1, %p10205_p0 }
  0xb2   : > { %p10201_p13 = pneg %p10200_p2 }
  0xb4   : > { %p10208_p6 = pnand %p10207_p4, %p10201_p13 }
  0xb6   : > { %10211 = shalt.err (!%p10208_p6)
}
  0xb7   : > { %9834 = dma.hbm_to_vmem [thread:$0]  (!%p11053_p5), %s12274_s30, 32, %s11057_s26, [#allocation11], %s12167_s10, %s12167_s10, %s12169_s16  }
  0xb8   : > { %s10212_s18 = scalar_lea.hbm %s12286_s6, 32 }
  0xb9   : > { %p10213_p8 = scmp.ne.s32.totalorder %s12286_s6, %s10212_s18  ;;  %p10219_p3 = scmp.lt.u32.totalorder %s10212_s18, %s12286_s6 }
  0xbb   : > { %p10215_p9 = pnand %p10213_p8, %p11065_p7 }
  0xbd   : > { %p10216_p10 = pneg %p10215_p9 }
  0xbf   : > { %p10221_p11 = pnand %p10219_p3, %p10216_p10 }
  0xc1   : > { %10224 = shalt.err (!%p10221_p11)
}
  0xc2   : > { %s10225_s2 = scalar_lea.vmem %s1262_s1, 32  ;;  %p10233_p0 = scmp.lt.s32.totalorder %s1262_s1, %s1262_s1 }
  0xc3   : > { %p10226_p12 = scmp.ne.s32.totalorder %s1262_s1, %s10225_s2  ;;  %p10234_p1 = scmp.lt.s32.totalorder %s10225_s2, %s10225_s2 }
  0xc5   : > { %p10228_p2 = pnand %p10226_p12, %p11065_p7  ;;  %p10235_p4 = por %p10234_p1, %p10233_p0 }
  0xc7   : > { %p10229_p13 = pneg %p10228_p2 }
  0xc9   : > { %p10236_p6 = pnand %p10235_p4, %p10229_p13 }
  0xcb   : > { %10239 = shalt.err (!%p10236_p6)
}
  0xcc   : > { %9840 = dma.hbm_to_vmem [thread:$0]  (!%p11053_p5), %s12286_s6, 32, %s1262_s1, [#allocation14], %s12167_s10, %s12167_s10, %s12169_s16  }
  0xcd   : > { %s10759_s26 = smov [#allocation16]   ;;  %s10760_s28 = smov [#allocation19]  }
  0xce   : > { %s1287_s23 = sshll.u32 %s10759_s26, 4  ;;  %s1313_s18 = sshll.u32 %s10760_s28, 4  ;;  %s1288_s23 = int_to_ptr.vmem [resolvable:$true] %s1287_s23  ;;  %s1314_s18 = int_to_ptr.vmem [resolvable:$true] %s1313_s18 }
  0xcf   : > { %s10240_s2 = scalar_lea.hbm %s12279_s19, 32 }
  0xd0   : > { %p10241_p8 = scmp.ne.s32.totalorder %s12279_s19, %s10240_s2  ;;  %p10247_p3 = scmp.lt.u32.totalorder %s10240_s2, %s12279_s19 }
  0xd2   : > { %p10243_p9 = pnand %p10241_p8, %p11065_p7 }
  0xd4   : > { %p10244_p10 = pneg %p10243_p9 }
  0xd6   : > { %p10249_p11 = pnand %p10247_p3, %p10244_p10 }
  0xd8   : > { %10252 = shalt.err (!%p10249_p11)
}
  0xd9   : > { %s10253_s27 = scalar_lea.vmem %s1288_s23, 32  ;;  %p10261_p0 = scmp.lt.s32.totalorder %s1288_s23, %s1288_s23 }
  0xda   : > { %p10254_p12 = scmp.ne.s32.totalorder %s1288_s23, %s10253_s27  ;;  %p10262_p1 = scmp.lt.s32.totalorder %s10253_s27, %s10253_s27 }
  0xdc   : > { %p10256_p2 = pnand %p10254_p12, %p11065_p7  ;;  %p10263_p4 = por %p10262_p1, %p10261_p0 }
  0xde   : > { %p10257_p13 = pneg %p10256_p2 }
  0xe0   : > { %p10264_p6 = pnand %p10263_p4, %p10257_p13 }
  0xe2   : > { %10267 = shalt.err (!%p10264_p6)
}
  0xe3   : > { %9846 = dma.hbm_to_vmem [thread:$0]  (!%p11053_p5), %s12279_s19, 32, %s1288_s23, [#allocation17], %s12167_s10, %s12167_s10, %s12169_s16  }
  0xe4   : > { %s10268_s1 = scalar_lea.hbm %s12281_s14, 32 }
  0xe5   : > { %p10269_p8 = scmp.ne.s32.totalorder %s12281_s14, %s10268_s1  ;;  %p10275_p3 = scmp.lt.u32.totalorder %s10268_s1, %s12281_s14 }
  0xe7   : > { %p10271_p9 = pnand %p10269_p8, %p11065_p7 }
  0xe9   : > { %p10272_p10 = pneg %p10271_p9 }
  0xeb   : > { %p10277_p11 = pnand %p10275_p3, %p10272_p10 }
  0xed   : > { %10280 = shalt.err (!%p10277_p11)
}
  0xee   : > { %s10281_s27 = scalar_lea.vmem %s1314_s18, 32  ;;  %p10289_p0 = scmp.lt.s32.totalorder %s1314_s18, %s1314_s18 }
  0xef   : > { %p10282_p12 = scmp.ne.s32.totalorder %s1314_s18, %s10281_s27  ;;  %p10290_p1 = scmp.lt.s32.totalorder %s10281_s27, %s10281_s27 }
  0xf1   : > { %p10284_p2 = pnand %p10282_p12, %p11065_p7  ;;  %p10291_p4 = por %p10290_p1, %p10289_p0 }
  0xf3   : > { %p10285_p13 = pneg %p10284_p2 }
  0xf5   : > { %p10292_p6 = pnand %p10291_p4, %p10285_p13 }
  0xf7   : > { %10295 = shalt.err (!%p10292_p6)
}
  0xf8   : > { %9852 = dma.hbm_to_vmem [thread:$0]  (!%p11053_p5), %s12281_s14, 32, %s1314_s18, [#allocation20], %s12167_s10, %s12167_s10, %s12169_s16  }
  0xf9   : > { %s10761_s26 = smov [#allocation22]   ;;  %s10762_s28 = smov [#allocation25]  }
  0xfa   : > { %s1339_s23 = sshll.u32 %s10761_s26, 4  ;;  %s1368_s2 = sshll.u32 %s10762_s28, 4  ;;  %s1340_s23 = int_to_ptr.vmem [resolvable:$true] %s1339_s23  ;;  %s1369_s2 = int_to_ptr.vmem [resolvable:$true] %s1368_s2 }
  0xfb   : > { %s10296_s1 = scalar_lea.hbm %s12282_s13, 32 }
  0xfc   : > { %p10297_p8 = scmp.ne.s32.totalorder %s12282_s13, %s10296_s1  ;;  %p10303_p3 = scmp.lt.u32.totalorder %s10296_s1, %s12282_s13 }
  0xfe   : > { %p10299_p9 = pnand %p10297_p8, %p11065_p7 }
 0x100   : > { %p10300_p10 = pneg %p10299_p9 }
 0x102   : > { %p10305_p11 = pnand %p10303_p3, %p10300_p10 }
 0x104   : > { %10308 = shalt.err (!%p10305_p11)
}
 0x105   : > { %s10309_s27 = scalar_lea.vmem %s1340_s23, 32  ;;  %p10317_p0 = scmp.lt.s32.totalorder %s1340_s23, %s1340_s23 }
 0x106   : > { %p10310_p12 = scmp.ne.s32.totalorder %s1340_s23, %s10309_s27  ;;  %p10318_p1 = scmp.lt.s32.totalorder %s10309_s27, %s10309_s27 }
 0x108   : > { %p10312_p2 = pnand %p10310_p12, %p11065_p7  ;;  %p10319_p4 = por %p10318_p1, %p10317_p0 }
 0x10a   : > { %p10313_p13 = pneg %p10312_p2 }
 0x10c   : > { %p10320_p6 = pnand %p10319_p4, %p10313_p13 }
 0x10e   : > { %10323 = shalt.err (!%p10320_p6)
}
 0x10f   : > { %9858 = dma.hbm_to_vmem [thread:$0]  (!%p11053_p5), %s12282_s13, 32, %s1340_s23, [#allocation23], %s12167_s10, %s12167_s10, %s12169_s16  }
 0x110   : > { %s10324_s18 = scalar_lea.hbm %s12280_s17, 32 }
 0x111   : > { %p10325_p8 = scmp.ne.s32.totalorder %s12280_s17, %s10324_s18  ;;  %p10331_p3 = scmp.lt.u32.totalorder %s10324_s18, %s12280_s17 }
 0x113   : > { %p10327_p9 = pnand %p10325_p8, %p11065_p7 }
 0x115   : > { %p10328_p10 = pneg %p10327_p9 }
 0x117   : > { %p10333_p11 = pnand %p10331_p3, %p10328_p10 }
 0x119   : > { %10336 = shalt.err (!%p10333_p11)
}
 0x11a   : > { %s10337_s26 = scalar_lea.vmem %s1369_s2, 32  ;;  %p10345_p0 = scmp.lt.s32.totalorder %s1369_s2, %s1369_s2 }
 0x11b   : > { %p10338_p12 = scmp.ne.s32.totalorder %s1369_s2, %s10337_s26  ;;  %p10346_p1 = scmp.lt.s32.totalorder %s10337_s26, %s10337_s26 }
 0x11d   : > { %p10340_p2 = pnand %p10338_p12, %p11065_p7  ;;  %p10347_p4 = por %p10346_p1, %p10345_p0 }
 0x11f   : > { %p10341_p13 = pneg %p10340_p2 }
 0x121   : > { %p10348_p6 = pnand %p10347_p4, %p10341_p13 }
 0x123   : > { %10351 = shalt.err (!%p10348_p6)
}
 0x124   : > { %9864 = dma.hbm_to_vmem [thread:$0]  (!%p11053_p5), %s12280_s17, 32, %s1369_s2, [#allocation26], %s12167_s10, %s12167_s10, %s12169_s16  }
 0x125   : > { %s10763_s23 = smov [#allocation28]   ;;  %s10764_s1 = smov [#allocation2]  }
 0x126   : > { %s1395_s28 = sshll.u32 %s10763_s23, 4  ;;  %s1118_s27 = sshll.u32 %s10764_s1, 4  ;;  %s1396_s28 = int_to_ptr.vmem [resolvable:$true] %s1395_s28  ;;  %s1119_s27 = int_to_ptr.vmem [resolvable:$true] %s1118_s27 }
 0x127   : > { %s10352_s18 = scalar_lea.hbm %s12278_s21, 16 }
 0x128   : > { %p10353_p8 = scmp.ne.s32.totalorder %s12278_s21, %s10352_s18  ;;  %p10359_p3 = scmp.lt.u32.totalorder %s10352_s18, %s12278_s21 }
 0x12a   : > { %p10355_p9 = pnand %p10353_p8, %p11065_p7 }
 0x12c   : > { %p10356_p10 = pneg %p10355_p9 }
 0x12e   : > { %p10361_p11 = pnand %p10359_p3, %p10356_p10 }
 0x130   : > { %10364 = shalt.err (!%p10361_p11)
}
 0x131   : > { %s10365_s26 = scalar_lea.vmem %s1396_s28, 16  ;;  %s10372_s2 = scalar_lea.vmem %s1396_s28, 32 }
 0x132   : > { %p10366_p12 = scmp.ne.s32.totalorder %s1396_s28, %s10365_s26  ;;  %p10373_p0 = scmp.lt.s32.totalorder %s1396_s28, %s1396_s28 }
 0x133   : > { %p10374_p1 = scmp.lt.s32.totalorder %s10372_s2, %s10365_s26 }
 0x134   : > { %p10368_p2 = pnand %p10366_p12, %p11065_p7 }
 0x135   : > { %p10375_p4 = por %p10374_p1, %p10373_p0 }
 0x136   : > { %p10369_p13 = pneg %p10368_p2 }
 0x138   : > { %p10376_p6 = pnand %p10375_p4, %p10369_p13 }
 0x13a   : > { %10379 = shalt.err (!%p10376_p6)
}
 0x13b   : > { %9870 = dma.hbm_to_vmem [thread:$0]  (!%p11053_p5), %s12278_s21, 16, %s1396_s28, [#allocation29]  }
 0x13c   : > { %s10380_s23 = scalar_lea.hbm %s12276_s25, 256 }
 0x13d   : > { %p10381_p8 = scmp.ne.s32.totalorder %s12276_s25, %s10380_s23  ;;  %p10387_p3 = scmp.lt.u32.totalorder %s10380_s23, %s12276_s25 }
 0x13f   : > { %p10383_p9 = pnand %p10381_p8, %p11065_p7 }
 0x141   : > { %p10384_p10 = pneg %p10383_p9 }
 0x143   : > { %p10389_p11 = pnand %p10387_p3, %p10384_p10 }
 0x145   : > { %10392 = shalt.err (!%p10389_p11)
}
 0x146   : > { %s10393_s1 = scalar_lea.vmem %s1119_s27, 256  ;;  %p10401_p0 = scmp.lt.s32.totalorder %s1119_s27, %s1119_s27 }
 0x147   : > { %p10394_p12 = scmp.ne.s32.totalorder %s1119_s27, %s10393_s1  ;;  %p10402_p1 = scmp.lt.s32.totalorder %s10393_s1, %s10393_s1 }
 0x149   : > { %p10396_p2 = pnand %p10394_p12, %p11065_p7  ;;  %p10403_p4 = por %p10402_p1, %p10401_p0 }
 0x14b   : > { %p10397_p13 = pneg %p10396_p2 }
 0x14d   : > { %p10404_p6 = pnand %p10403_p4, %p10397_p13 }
 0x14f   : > { %10407 = shalt.err (!%p10404_p6)
}
 0x150   : > { %s12171_s28 = smov 128   ;;  %s12173_s18 = smov 8  }
 0x151   : > { %9819 = dma.hbm_to_vmem [thread:$0]  (!%p11053_p5), %s12276_s25, 256, %s1119_s27, [#allocation3], %s12171_s28, %s12171_s28, %s12173_s18  }
 0x152   : > { %s10767_s26 = smov [#allocation6]   ;;  %s10768_s23 = smov [#allocation9]  }
 0x153   : > { %s1187_s2 = sshll.u32 %s10767_s26, 4  ;;  %s1216_s1 = sshll.u32 %s10768_s23, 4  ;;  %s1188_s2 = int_to_ptr.vmem [resolvable:$true] %s1187_s2  ;;  %s1217_s1 = int_to_ptr.vmem [resolvable:$true] %s1216_s1 }
 0x154   : > { %s10408_s10 = scalar_lea.hbm %s12285_s9, 32 }
 0x155   : > { %p10409_p8 = scmp.ne.s32.totalorder %s12285_s9, %s10408_s10  ;;  %p10415_p3 = scmp.lt.u32.totalorder %s10408_s10, %s12285_s9 }
 0x157   : > { %p10411_p9 = pnand %p10409_p8, %p11065_p7 }
 0x159   : > { %p10412_p10 = pneg %p10411_p9 }
 0x15b   : > { %p10417_p11 = pnand %p10415_p3, %p10412_p10 }
 0x15d   : > { %10420 = shalt.err (!%p10417_p11)
}
 0x15e   : > { %s10421_s16 = scalar_lea.vmem %s1188_s2, 32  ;;  %p10429_p0 = scmp.lt.s32.totalorder %s1188_s2, %s1188_s2 }
 0x15f   : > { %p10422_p12 = scmp.ne.s32.totalorder %s1188_s2, %s10421_s16  ;;  %p10430_p1 = scmp.lt.s32.totalorder %s10421_s16, %s10421_s16 }
 0x161   : > { %p10424_p2 = pnand %p10422_p12, %p11065_p7  ;;  %p10431_p4 = por %p10430_p1, %p10429_p0 }
 0x163   : > { %p10425_p13 = pneg %p10424_p2 }
 0x165   : > { %p10432_p6 = pnand %p10431_p4, %p10425_p13 }
 0x167   : > { %10435 = shalt.err (!%p10432_p6)
}
 0x168   : > { %s12293_s27 = smov 1   ;;  %s12294_s26 = smov 16  }
 0x169   : > { %9825 = dma.hbm_to_vmem [thread:$0]  (!%p11053_p5), %s12285_s9, 32, %s1188_s2, [#allocation5], %s12294_s26, %s12294_s26, %s12293_s27  }
 0x16a   : > { %s10436_s10 = scalar_lea.hbm %s12287_s4, 32 }
 0x16b   : > { %p10437_p8 = scmp.ne.s32.totalorder %s12287_s4, %s10436_s10  ;;  %p10443_p3 = scmp.lt.u32.totalorder %s10436_s10, %s12287_s4 }
 0x16d   : > { %p10439_p9 = pnand %p10437_p8, %p11065_p7 }
 0x16f   : > { %p10440_p10 = pneg %p10439_p9 }
 0x171   : > { %p10445_p11 = pnand %p10443_p3, %p10440_p10 }
 0x173   : > { %10448 = shalt.err (!%p10445_p11)
}
 0x174   : > { %s10449_s16 = scalar_lea.vmem %s1217_s1, 32  ;;  %p10457_p0 = scmp.lt.s32.totalorder %s1217_s1, %s1217_s1 }
 0x175   : > { %p10450_p12 = scmp.ne.s32.totalorder %s1217_s1, %s10449_s16  ;;  %p10458_p1 = scmp.lt.s32.totalorder %s10449_s16, %s10449_s16 }
 0x177   : > { %p10452_p2 = pnand %p10450_p12, %p11065_p7  ;;  %p10459_p4 = por %p10458_p1, %p10457_p0 }
 0x179   : > { %p10453_p13 = pneg %p10452_p2 }
 0x17b   : > { %p10460_p6 = pnand %p10459_p4, %p10453_p13 }
 0x17d   : > { %10463 = shalt.err (!%p10460_p6)
}
 0x17e   : > { %9831 = dma.hbm_to_vmem [thread:$0]  (!%p11053_p5), %s12287_s4, 32, %s1217_s1, [#allocation8], %s12294_s26, %s12294_s26, %s12293_s27  }
 0x17f   : > { %s10769_s2 = smov [#allocation12]   ;;  %s10770_s10 = smov [#allocation15]  }
 0x180   : > { %s1245_s23 = sshll.u32 %s10769_s2, 4  ;;  %s1274_s28 = sshll.u32 %s10770_s10, 4  ;;  %s1246_s23 = int_to_ptr.vmem [resolvable:$true] %s1245_s23  ;;  %s1275_s28 = int_to_ptr.vmem [resolvable:$true] %s1274_s28 }
 0x181   : > { %s10464_s16 = scalar_lea.hbm %s12277_s24, 32 }
 0x182   : > { %p10465_p8 = scmp.ne.s32.totalorder %s12277_s24, %s10464_s16  ;;  %p10471_p3 = scmp.lt.u32.totalorder %s10464_s16, %s12277_s24 }
 0x184   : > { %p10467_p9 = pnand %p10465_p8, %p11065_p7 }
 0x186   : > { %p10468_p10 = pneg %p10467_p9 }
 0x188   : > { %p10473_p11 = pnand %p10471_p3, %p10468_p10 }
 0x18a   : > { %10476 = shalt.err (!%p10473_p11)
}
 0x18b   : > { %s10477_s18 = scalar_lea.vmem %s1246_s23, 32  ;;  %p10485_p0 = scmp.lt.s32.totalorder %s1246_s23, %s1246_s23 }
 0x18c   : > { %p10478_p12 = scmp.ne.s32.totalorder %s1246_s23, %s10477_s18  ;;  %p10486_p1 = scmp.lt.s32.totalorder %s10477_s18, %s10477_s18 }
 0x18e   : > { %p10480_p2 = pnand %p10478_p12, %p11065_p7  ;;  %p10487_p4 = por %p10486_p1, %p10485_p0 }
 0x190   : > { %p10481_p13 = pneg %p10480_p2 }
 0x192   : > { %p10488_p6 = pnand %p10487_p4, %p10481_p13 }
 0x194   : > { %10491 = shalt.err (!%p10488_p6)
}
 0x195   : > { %9837 = dma.hbm_to_vmem [thread:$0]  (!%p11053_p5), %s12277_s24, 32, %s1246_s23, [#allocation11], %s12294_s26, %s12294_s26, %s12293_s27  }
 0x196   : > { %s10492_s1 = scalar_lea.hbm %s12284_s12, 1024 }
 0x197   : > { %p10493_p8 = scmp.ne.s32.totalorder %s12284_s12, %s10492_s1  ;;  %p10499_p3 = scmp.lt.u32.totalorder %s10492_s1, %s12284_s12 }
 0x199   : > { %p10495_p9 = pnand %p10493_p8, %p11065_p7 }
 0x19b   : > { %p10496_p10 = pneg %p10495_p9 }
 0x19d   : > { %p10501_p11 = pnand %p10499_p3, %p10496_p10 }
 0x19f   : > { %10504 = shalt.err (!%p10501_p11)
}
 0x1a0   : > { %s10505_s18 = scalar_lea.vmem %s1275_s28, 1024  ;;  %p10513_p0 = scmp.lt.s32.totalorder %s1275_s28, %s1275_s28 }
 0x1a1   : > { %p10506_p12 = scmp.ne.s32.totalorder %s1275_s28, %s10505_s18  ;;  %p10514_p1 = scmp.lt.s32.totalorder %s10505_s18, %s10505_s18 }
 0x1a3   : > { %p10508_p2 = pnand %p10506_p12, %p11065_p7  ;;  %p10515_p4 = por %p10514_p1, %p10513_p0 }
 0x1a5   : > { %p10509_p13 = pneg %p10508_p2 }
 0x1a7   : > { %p10516_p6 = pnand %p10515_p4, %p10509_p13 }
 0x1a9   : > { %10519 = shalt.err (!%p10516_p6)
}
 0x1aa   : > { %s12295_s2 = smov 8   ;;  %s12296_s23 = smov 128  }
 0x1ab   : > { %s12297_s10 = sld [smem:[#allocation74_spill]]  ;;  %s10771_s16 = smov [#allocation18]  }
 0x1ac   : > { %9843 = dma.hbm_to_vmem [thread:$0]  (!%p11053_p5), %s12284_s12, 1024, %s1275_s28, [#allocation14], %s12296_s23, %s12296_s23, %s12295_s2  }
 0x1ad   : > { %s1300_s1 = sshll.u32 %s10771_s16, 4  ;;  %s10772_s4 = smov [#allocation21]   ;;  %s1301_s1 = int_to_ptr.vmem [resolvable:$true] %s1300_s1 }
 0x1ae   : > { %s1326_s6 = sshll.u32 %s10772_s4, 4  ;;  %s1327_s6 = int_to_ptr.vmem [resolvable:$true] %s1326_s6 }
 0x1b1   : > { %s10520_s18 = scalar_lea.hbm %s12297_s10, 32 }
 0x1b2   : > { %p10521_p8 = scmp.ne.s32.totalorder %s12297_s10, %s10520_s18  ;;  %p10527_p3 = scmp.lt.u32.totalorder %s10520_s18, %s12297_s10 }
 0x1b4   : > { %p10523_p9 = pnand %p10521_p8, %p11065_p7 }
 0x1b6   : > { %p10524_p10 = pneg %p10523_p9 }
 0x1b8   : > { %p10529_p11 = pnand %p10527_p3, %p10524_p10 }
 0x1ba   : > { %10532 = shalt.err (!%p10529_p11)
}
 0x1bb   : > { %s10533_s9 = scalar_lea.vmem %s1301_s1, 32  ;;  %p10541_p0 = scmp.lt.s32.totalorder %s1301_s1, %s1301_s1 }
 0x1bc   : > { %p10534_p12 = scmp.ne.s32.totalorder %s1301_s1, %s10533_s9  ;;  %p10542_p1 = scmp.lt.s32.totalorder %s10533_s9, %s10533_s9 }
 0x1be   : > { %p10536_p2 = pnand %p10534_p12, %p11065_p7  ;;  %p10543_p4 = por %p10542_p1, %p10541_p0 }
 0x1c0   : > { %p10537_p13 = pneg %p10536_p2 }
 0x1c2   : > { %p10544_p6 = pnand %p10543_p4, %p10537_p13 }
 0x1c4   : > { %10547 = shalt.err (!%p10544_p6)
}
 0x1c5   : > { %s12298_s4 = sld [smem:[#allocation76_spill]] }
 0x1c6   : > { %9849 = dma.hbm_to_vmem [thread:$0]  (!%p11053_p5), %s12297_s10, 32, %s1301_s1, [#allocation17], %s12294_s26, %s12294_s26, %s12293_s27  }
 0x1cb   : > { %s10548_s28 = scalar_lea.hbm %s12298_s4, 1024 }
 0x1cc   : > { %p10549_p8 = scmp.ne.s32.totalorder %s12298_s4, %s10548_s28  ;;  %p10555_p3 = scmp.lt.u32.totalorder %s10548_s28, %s12298_s4 }
 0x1ce   : > { %p10551_p9 = pnand %p10549_p8, %p11065_p7 }
 0x1d0   : > { %p10552_p10 = pneg %p10551_p9 }
 0x1d2   : > { %p10557_p11 = pnand %p10555_p3, %p10552_p10 }
 0x1d4   : > { %10560 = shalt.err (!%p10557_p11)
}
 0x1d5   : > { %s10561_s9 = scalar_lea.vmem %s1327_s6, 1024  ;;  %p10569_p0 = scmp.lt.s32.totalorder %s1327_s6, %s1327_s6 }
 0x1d6   : > { %p10562_p12 = scmp.ne.s32.totalorder %s1327_s6, %s10561_s9  ;;  %p10570_p1 = scmp.lt.s32.totalorder %s10561_s9, %s10561_s9 }
 0x1d8   : > { %p10564_p2 = pnand %p10562_p12, %p11065_p7  ;;  %p10571_p4 = por %p10570_p1, %p10569_p0 }
 0x1da   : > { %p10565_p13 = pneg %p10564_p2 }
 0x1dc   : > { %p10572_p6 = pnand %p10571_p4, %p10565_p13 }
 0x1de   : > { %10575 = shalt.err (!%p10572_p6)
}
 0x1df   : > { %s12299_s16 = sld [smem:[#allocation79_spill]]  ;;  %s10773_s1 = smov [#allocation24]  }
 0x1e0   : > { %9855 = dma.hbm_to_vmem [thread:$0]  (!%p11053_p5), %s12298_s4, 1024, %s1327_s6, [#allocation20], %s12296_s23, %s12296_s23, %s12295_s2  }
 0x1e1   : > { %s1355_s18 = sshll.u32 %s10773_s1, 4  ;;  %s10774_s28 = smov [#allocation27]   ;;  %s1356_s18 = int_to_ptr.vmem [resolvable:$true] %s1355_s18 }
 0x1e2   : > { %s1381_s10 = sshll.u32 %s10774_s28, 4  ;;  %s1382_s10 = int_to_ptr.vmem [resolvable:$true] %s1381_s10 }
 0x1e5   : > { %s10576_s9 = scalar_lea.hbm %s12299_s16, 32 }
 0x1e6   : > { %p10577_p8 = scmp.ne.s32.totalorder %s12299_s16, %s10576_s9  ;;  %p10583_p3 = scmp.lt.u32.totalorder %s10576_s9, %s12299_s16 }
 0x1e8   : > { %p10579_p9 = pnand %p10577_p8, %p11065_p7 }
 0x1ea   : > { %p10580_p10 = pneg %p10579_p9 }
 0x1ec   : > { %p10585_p11 = pnand %p10583_p3, %p10580_p10 }
 0x1ee   : > { %10588 = shalt.err (!%p10585_p11)
}
 0x1ef   : > { %s10589_s12 = scalar_lea.vmem %s1356_s18, 32  ;;  %p10597_p0 = scmp.lt.s32.totalorder %s1356_s18, %s1356_s18 }
 0x1f0   : > { %p10590_p12 = scmp.ne.s32.totalorder %s1356_s18, %s10589_s12  ;;  %p10598_p1 = scmp.lt.s32.totalorder %s10589_s12, %s10589_s12 }
 0x1f2   : > { %p10592_p2 = pnand %p10590_p12, %p11065_p7  ;;  %p10599_p4 = por %p10598_p1, %p10597_p0 }
 0x1f4   : > { %p10593_p13 = pneg %p10592_p2 }
 0x1f6   : > { %p10600_p6 = pnand %p10599_p4, %p10593_p13 }
 0x1f8   : > { %10603 = shalt.err (!%p10600_p6)
}
 0x1f9   : > { %s12300_s6 = sld [smem:[#allocation81_spill]] }
 0x1fa   : > { %9861 = dma.hbm_to_vmem [thread:$0]  (!%p11053_p5), %s12299_s16, 32, %s1356_s18, [#allocation23], %s12294_s26, %s12294_s26, %s12293_s27  }
 0x1ff   : > { %s10604_s2 = scalar_lea.hbm %s12300_s6, 32 }
 0x200   : > { %p10605_p8 = scmp.ne.s32.totalorder %s12300_s6, %s10604_s2  ;;  %p10611_p3 = scmp.lt.u32.totalorder %s10604_s2, %s12300_s6 }
 0x202   : > { %p10607_p9 = pnand %p10605_p8, %p11065_p7 }
 0x204   : > { %p10608_p10 = pneg %p10607_p9 }
 0x206   : > { %p10613_p11 = pnand %p10611_p3, %p10608_p10 }
 0x208   : > { %10616 = shalt.err (!%p10613_p11)
}
 0x209   : > { %s10617_s12 = scalar_lea.vmem %s1382_s10, 32  ;;  %p10625_p0 = scmp.lt.s32.totalorder %s1382_s10, %s1382_s10 }
 0x20a   : > { %p10618_p12 = scmp.ne.s32.totalorder %s1382_s10, %s10617_s12  ;;  %p10626_p1 = scmp.lt.s32.totalorder %s10617_s12, %s10617_s12 }
 0x20c   : > { %p10620_p2 = pnand %p10618_p12, %p11065_p7  ;;  %p10627_p4 = por %p10626_p1, %p10625_p0 }
 0x20e   : > { %p10621_p13 = pneg %p10620_p2 }
 0x210   : > { %p10628_p6 = pnand %p10627_p4, %p10621_p13 }
 0x212   : > { %10631 = shalt.err (!%p10628_p6)
}
 0x213   : > { %9867 = dma.hbm_to_vmem [thread:$0]  (!%p11053_p5), %s12300_s6, 32, %s1382_s10, [#allocation26], %s12294_s26, %s12294_s26, %s12293_s27  }
 0x214   : > { %s10775_s23 = smov [#allocation30]   ;;  %s10632_s18 = scalar_lea.hbm %s12283_s3, 16 }
 0x215   : > { %s1406_s1 = sshll.u32 %s10775_s23, 4  ;;  %p10633_p8 = scmp.ne.s32.totalorder %s12283_s3, %s10632_s18  ;;  %s1407_s1 = int_to_ptr.vmem [resolvable:$true] %s1406_s1 }
 0x216   : > { %p10639_p3 = scmp.lt.u32.totalorder %s10632_s18, %s12283_s3 }
 0x217   : > { %p10635_p9 = pnand %p10633_p8, %p11065_p7 }
 0x219   : > { %p10636_p10 = pneg %p10635_p9 }
 0x21b   : > { %p10641_p11 = pnand %p10639_p3, %p10636_p10 }
 0x21d   : > { %10644 = shalt.err (!%p10641_p11)
}
 0x21e   : > { %s10645_s28 = scalar_lea.vmem %s1407_s1, 16  ;;  %s10652_s9 = scalar_lea.vmem %s1407_s1, 32 }
 0x21f   : > { %p10646_p12 = scmp.ne.s32.totalorder %s1407_s1, %s10645_s28  ;;  %p10653_p0 = scmp.lt.s32.totalorder %s1407_s1, %s1407_s1 }
 0x220   : > { %p10654_p1 = scmp.lt.s32.totalorder %s10652_s9, %s10645_s28 }
 0x221   : > { %p10648_p2 = pnand %p10646_p12, %p11065_p7 }
 0x222   : > { %p10655_p4 = por %p10654_p1, %p10653_p0 }
 0x223   : > { %p10649_p13 = pneg %p10648_p2 }
 0x225   : > { %p10656_p6 = pnand %p10655_p4, %p10649_p13 }
 0x227   : > { %10659 = shalt.err (!%p10656_p6)
}
 0x228   : > { %9873 = dma.hbm_to_vmem [thread:$0]  (!%p11053_p5), %s12283_s3, 16, %s1407_s1, [#allocation29]  }
 0x229   : > { %p12301_p8 = scmp.ne.s32.totalorder %s12290_s15, 0 }
 0x22a   : > { %p12302_p9 = scmp.eq.s32.totalorder (!%p12301_p8), %s11036_s11, 0 }
 0x22b   : > { %1439 = sbr.rel (%p12301_p8) target bundleno = 14427 (0x385b), region = 200 }
 0x232   : > { %10665 = dma.done.wait (%p12302_p9), [#allocation3], 256   ;;  %p12303_p10 = pmov %p12302_p9 }
 0x233   : > { %p12304_p7 = pmov %p12302_p9 }
 0x234   : > { %10667 = vsyncadd (%p12303_p10), [#allocation3], 4294967040 }
 0x235   : > { %10669 = dma.done.wait (%p12304_p7), [#allocation5], 48   ;;  %p12305_p3 = pmov %p12304_p7 }
 0x237   : > { %10671 = vsyncadd (%p12305_p3), [#allocation5], 4294967248  ;;  %p12306_p11 = pmov %p12305_p3 }
 0x238   : > { %p12307_p5 = pmov %p12305_p3 }
 0x239   : > { %10673 = dma.done.wait (%p12306_p11), [#allocation8], 64  }
 0x23a   : > { %10675 = vsyncadd (%p12307_p5), [#allocation8], 4294967232  ;;  %p12308_p12 = pmov %p12305_p3 }
 0x23b   : > { %p12309_p2 = pmov %p12305_p3 }
 0x23c   : > { %10677 = dma.done.wait (%p12308_p12), [#allocation11], 64  }
 0x23d   : > { %10679 = vsyncadd (%p12309_p2), [#allocation11], 4294967232  ;;  %p12310_p13 = pmov %p12309_p2 }
 0x23e   : > { %p12311_p0 = pmov %p12309_p2 }
 0x23f   : > { %10681 = dma.done.wait (%p12310_p13), [#allocation14], 1056  }
 0x240   : > { %10683 = vsyncadd (%p12311_p0), [#allocation14], 4294966240  ;;  %p12312_p1 = pmov %p12311_p0 }
 0x241   : > { %p12313_p4 = pmov %p12311_p0 }
 0x242   : > { %10685 = dma.done.wait (%p12312_p1), [#allocation17], 64  }
 0x243   : > { %10687 = vsyncadd (%p12313_p4), [#allocation17], 4294967232  ;;  %p12314_p6 = pmov %p12311_p0 }
 0x244   : > { %p12315_p8 = pmov %p12311_p0 }
 0x245   : > { %10689 = dma.done.wait (%p12314_p6), [#allocation20], 1056  }
 0x246   : > { %10691 = vsyncadd (%p12315_p8), [#allocation20], 4294966240  ;;  %p12316_p9 = pmov %p12311_p0 }
 0x247   : > { %p12317_p10 = pmov %p12311_p0 }
 0x248   : > { %10693 = dma.done.wait (%p12316_p9), [#allocation23], 64  }
 0x249   : > { %10695 = vsyncadd (%p12317_p10), [#allocation23], 4294967232  ;;  %p12318_p7 = pmov %p12311_p0 }
 0x24a   : > { %p12319_p3 = pmov %p12311_p0 }
 0x24b   : > { %10697 = dma.done.wait (%p12318_p7), [#allocation26], 64  }
 0x24c   : > { %10699 = vsyncadd (%p12319_p3), [#allocation26], 4294967232  ;;  %p12320_p11 = pmov %p12311_p0 }
 0x24d   : > { %p12321_p5 = pmov %p12311_p0 }
 0x24e   : > { %10701 = dma.done.wait (%p12320_p11), [#allocation29], 32  }
 0x24f   : > { %10703 = vsyncadd (%p12321_p5), [#allocation29], 4294967264  ;;  %s12322_s15 = sld [smem:[#allocation41_spill]]  ;;  %s12323_s22 = sld [smem:[#allocation44_spill]]  ;;  %v10776_v0 = vmov 0.0|0.0   ;;  %vm1668_vm0 = vcmask 1043456  }
 0x250   : > { %p1621_p12 = scmp.lt.s32.totalorder %s11036_s11, 1  ;;  %9570 = vmatprep.subr.bf16.mxu1 %v10776_v0  ;;  %vm10777_vm1 = vmmov 0   ;;  %v10778_v1 = vmov 0.0   ;;  %s12324_s26 = sld [smem:[#allocation48_spill]]  ;;  %vm10779_vm2 = vmmov 1   ;;  %vm1654_vm4 = vcmask 31744  }
 0x251   : > { %9035 = vmatprep.mubr.msk.f32.mxu1 %vm10777_vm1, %v10778_v1  ;;  %9049 = vmatprep.subr.mxu0 %v10778_v1  ;;  %vm11376_vm3 = vmpackc.low %vm1668_vm0, %vm10779_vm2  ;;  %s12180_s10 = smov 4   ;;  %s12327_s2 = sld [smem:[#allocation45_spill]]  ;;  %vm1656_vm5 = vcmask 64512   ;;  %vm1664_vm6 = vcmask 97280   ;;  %vm1754_vm7 = vcmask 261120   ;;  %vm2504_vm8 = vcmask 130048  }
 0x252   : > { %s12367_s11 = smov (!%p1621_p12, %s11036_s11), 1  ;;  %9051 = vmatprep.mubr.msk.f32.mxu0 %vm10777_vm1, %v10778_v1  ;;  %s12328_s12 = sld [smem:[#allocation43_spill]]  ;;  %vm2506_vm9 = vcmask 195584   ;;  %vm2723_vm10 = vcmask 523264  }
 0x253   : > { %s11370_s0 = sshll.u32 %s12367_s11, 3  ;;  %s12199_s11 = smov 8  }
 0x254   : > { %s12329_s23 = sld [smem:[#allocation49_spill]]  ;;  %s12201_s1 = smov 120  }
 0x255   : > { %s1624_s27 = scalar_lea.vmem %s12322_s15, %s11370_s0  ;;  %v1634_v4 = vld [vmem:[%s12323_s22] sm:$0xff]  ;;  %v1635_v5 = vld [vmem:[%s12323_s22 + $0x8] sm:$0xf]  ;;  %s12205_s18 = smov 96  }
 0x256   : > { %v1633_v3 = vld [vmem:[%s1624_s27] sm:$0xff]  ;;  %v9571_v7 = vpack.c.bf16 %v1635_v5, %v1634_v4  ;;  %v1744_v11 = vld [vmem:[%s12324_s26 + $0x8] sm:$0xff]  ;;  %v1745_v16 = vld [vmem:[%s12324_s26 + $0x10] sm:$0xff]  ;;  %s12203_s28 = smov 112   ;;  %s12207_s9 = smov 88  }
 0x257   : > { %1647 = vrot.lane.b32.xlu0 %v1633_v3, %s12180_s10  ;;  %v1643_v6 = vrot.slane %v1633_v3, 1  ;;  %v1639_v8 = vrot.slane %v1633_v3, 7  ;;  %v1743_v10 = vld [vmem:[%s12324_s26] sm:$0xff]  ;;  %v1746_v17 = vld [vmem:[%s12324_s26 + $0x18] sm:$0xff]  ;;  %s12193_s15 = smov 104   ;;  %s12185_s27 = smov 80  }
 0x258   : > { %9573 = vmatpush3.bf16.msk.msra.mxu1 %vm11376_vm3, %v9571_v7  ;;  %v9575_v12 = vpack.c.bf16 %v1744_v11, %v1743_v10  ;;  %v9578_v18 = vpack.c.bf16 %v1746_v17, %v1745_v16  ;;  %v8596_v19 = vld [vmem:[%s12327_s2] ss:$0 sm:$0xff]  ;;  %s12183_s2 = smov 72   ;;  %s12181_s10 = smov 56  }
 0x259   : > { %9574 = vmatprep.subr.bf16.mxu1 %v10776_v0  ;;  %v1637_v20 = vld [vmem:[%s12328_s12] sm:$0xff]  ;;  %s12339_s3 = sld [smem:[#allocation59_spill]]  ;;  %s12340_s4 = smov 88  }
 0x25a   : > { %v8599_v25 = vld [vmem:[%s12329_s23] ss:$0 sm:$0xff]  ;;  %s12341_s6 = smov 96   ;;  %s12342_s13 = smov 112  }
 0x25b   : > { %1651 = vrot.lane.b32.xlu0 %v1643_v6, %s12199_s11  ;;  %s12343_s14 = smov 120   ;;  %s12344_s16 = smov 104  }
 0x25c   : > { %s12345_s17 = smov 80   ;;  %s12346_s19 = smov 72  }
 0x25d   : > { %s12347_s21 = smov 56   ;;  %s12348_s22 = smov 64  }
 0x25e   : > { %s12350_s24 = smov 40   ;;  %s12351_s25 = smov 8  }
 0x25f   : > { %s12353_s29 = smov 24   ;;  %s12354_s30 = sld [smem:[#allocation42_spill]] }
 0x260   : > { %s12355_s7 = smov 4  }
 0x2c9   : > { %v1648_v9 = vpop.permute.xlu0 %1647 }
 0x2ca   : > { %v1655_v13 = vsel %vm1654_vm4, %v1639_v8, %v1648_v9 }
 0x2cd   : > { %v1652_v14 = vpop.permute.xlu0 %1651 }
 0x2ce   : > { %v1657_v15 = vsel %vm1656_vm5, %v1655_v13, %v1652_v14 }
 0x2cf   : > { %9036 = vmatmul.mubr.msk.f32.vlgmr.msra.gmra.mrb[0].mxu1 %vm1664_vm6, %v1657_v15 }
 0x2d0   : > { %9576 = vmatpush3.bf16.msra.mxu1 %v9575_v12  ;;  %9046 = vmatprep.mubr.msk.f32.mxu1 %vm10777_vm1, %v10778_v1 }
 0x2d1   : > { %9577 = vmatprep.subr.bf16.mxu1 %v10776_v0 }
 0x2d4   : > { %9579 = vmatpush3.bf16.msra.mxu1 %v9578_v18 }
 0x2d5   : > { %9059 = vmatprep.subr.mxu1 %v10778_v1 }
 0x3a2   : > { %v1738_v21 = vpop.f32.mrb[0].mxu1 }
 0x3a3   : > { %v1739_v22 = vadd.f32 %v8596_v19, %v1738_v21  ;;  %v9037_v23 = vpop.f32.mrb[1].mxu1 }
 0x3a5   : > { %v11400_v24 = vadd.f32 %v1739_v22, %v1637_v20 }
 0x3a7   : > { %9047 = vmatmul.mubr.msk.f32.vlgmr.msra.gmra.mrb[2].mxu1 %vm1754_vm7, %v11400_v24 }
 0x3a8   : > { %9061 = vmatprep.mubr.msk.f32.mxu1 %vm10777_vm1, %v10778_v1 }
 0x47a   : > { %v1824_v26 = vpop.f32.mrb[2].mxu1 }
 0x47b   : > { %v11407_v27 = vadd.f32 %v8599_v25, %v1824_v26  ;;  %v9048_v28 = vpop.f32.mrb[3].mxu1 }
 0x47d   : > { %1993 = vrot.lane.b32.xlu0 %v11407_v27, %s12201_s1  ;;  %1829 = vrot.lane.b32.xlu1 %v11407_v27, %s12205_s18  ;;  %s12335_s1 = sld [smem:[#allocation53_spill]]  ;;  %s12337_s18 = sld [smem:[#allocation57_spill]] }
 0x481   : > { %2159 = vrot.lane.b32.xlu0 %v11407_v27, %s12203_s28  ;;  %1995 = vrot.lane.b32.xlu1 %v11407_v27, %s12207_s9  ;;  %s12336_s28 = sld [smem:[#allocation55_spill]]  ;;  %s12338_s9 = sld [smem:[#allocation58_spill]] }
 0x485   : > { %2325 = vrot.lane.b32.xlu0 %v11407_v27, %s12193_s15  ;;  %2161 = vrot.lane.b32.xlu1 %v11407_v27, %s12185_s27  ;;  %s12187_s27 = smov 40   ;;  %s12197_s15 = smov 24  }
 0x489   : > { %2327 = vrot.lane.b32.xlu1 %v11407_v27, %s12183_s2  ;;  %s12189_s2 = smov 48  }
 0x4ef   : > { %v1830_v29 = vpop.permute.xlu1 %1829  ;;  %v1994_v30 = vpop.permute.xlu0 %1993 }
 0x4f0   : > { %9050 = vmatpush3.xpose.msk.msra.mxu0 %vm1656_vm5, %v1830_v29 }
 0x4f1   : > { %9054 = vmatprep.subr.mxu0 %v10778_v1 }
 0x4f3   : > { %9052 = vmatmul.mubr.msk.f32.vlgmr.msra.gmra.mrb[0].mxu0 %vm1656_vm5, %v11407_v27  ;;  %v1996_v31 = vpop.permute.xlu1 %1995  ;;  %v2160_v33 = vpop.permute.xlu0 %2159 }
 0x4f4   : > { %9060 = vmatpush3.xpose.msk.msra.mxu1 %vm1656_vm5, %v1996_v31  ;;  %9056 = vmatprep.mubr.msk.f32.mxu0 %vm10777_vm1, %v10778_v1 }
 0x4f5   : > { %9069 = vmatprep.subr.mxu1 %v10778_v1 }
 0x4f7   : > { %9062 = vmatmul.mubr.msk.f32.vlgmr.msra.gmra.mrb[4].mxu1 %vm1656_vm5, %v1994_v30  ;;  %v2162_v32 = vpop.permute.xlu1 %2161  ;;  %v2326_v35 = vpop.permute.xlu0 %2325 }
 0x4f8   : > { %9070 = vmatpush3.xpose.msk.msra.mxu1 %vm1656_vm5, %v2162_v32  ;;  %9071 = vmatprep.mubr.msk.f32.mxu1 %vm10777_vm1, %v10778_v1 }
 0x4f9   : > { %9079 = vmatprep.subr.mxu1 %v10778_v1 }
 0x4fb   : > { %9072 = vmatmul.mubr.msk.f32.vlgmr.msra.gmra.mrb[6].mxu1 %vm1656_vm5, %v2160_v33  ;;  %v2328_v34 = vpop.permute.xlu1 %2327 }
 0x4fc   : > { %9080 = vmatpush3.xpose.msk.msra.mxu1 %vm1656_vm5, %v2328_v34  ;;  %9081 = vmatprep.mubr.msk.f32.mxu1 %vm10777_vm1, %v10778_v1 }
 0x4fd   : > { %9580 = vmatprep.subr.bf16.mxu1 %v10776_v0 }
 0x4ff   : > { %9082 = vmatmul.mubr.msk.f32.vlgmr.msra.gmra.mrb[8].mxu1 %vm1656_vm5, %v2326_v35 }
 0x500   : > { %9097 = vmatprep.mubr.msk.f32.mxu1 %vm10777_vm1, %v10778_v1 }
 0x5c6   : > { %v1901_v36 = vpop.f32.mrb[0].mxu0 }
 0x5c7   : > { %v1905_v37 = vmul.f32 0.35355338, %v1901_v36  ;;  %v9053_v38 = vpop.f32.mrb[1].mxu0 }
 0x5c9   : > { %v1906_v39 = vsel %vm1656_vm5, %v1905_v37, -inf }
 0x5ca   : > { %1907 = vmax.xlane.f32.xlu1 %v1906_v39  ;;  %v2067_v40 = vpop.f32.mrb[4].mxu1 }
 0x5cb   : > { %v2071_v41 = vmul.f32 0.35355338, %v2067_v40  ;;  %v9063_v42 = vpop.f32.mrb[5].mxu1 }
 0x5cd   : > { %v2072_v43 = vsel %vm1656_vm5, %v2071_v41, -inf }
 0x5ce   : > { %2073 = vmax.xlane.f32.xlu0 %v2072_v43  ;;  %v2233_v44 = vpop.f32.mrb[6].mxu1 }
 0x5cf   : > { %v2237_v45 = vmul.f32 0.35355338, %v2233_v44  ;;  %v9073_v46 = vpop.f32.mrb[7].mxu1 }
 0x5d1   : > { %v2238_v47 = vsel %vm1656_vm5, %v2237_v45, -inf }
 0x5d2   : > { %2239 = vmax.xlane.f32.xlu0 %v2238_v47  ;;  %v2399_v48 = vpop.f32.mrb[8].mxu1 }
 0x5d3   : > { %v2403_v49 = vmul.f32 0.35355338, %v2399_v48  ;;  %v9083_v50 = vpop.f32.mrb[9].mxu1 }
 0x5d5   : > { %v2404_v51 = vsel %vm1656_vm5, %v2403_v49, -inf }
 0x5d6   : > { %2405 = vmax.xlane.f32.xlu1 %v2404_v51 }
 0x5e7   : > { %2083 = vrot.lane.b32.xlu1 %v11407_v27, %s12181_s10  ;;  %s12191_s10 = smov 64  }
 0x657   : > { %v1908_v52 = vpop.xlane.xlu1 %1907 }
 0x658   : > { %v1909_v53 = vsub.f32 %v1905_v37, %v1908_v52 }
 0x65a   : > { %v1910_v54 = vmul.f32 1.442695, %v1909_v53 }
 0x65b   : > { %v2074_v55 = vpop.xlane.xlu0 %2073 }
 0x65c   : > { %10007 = vpow2.f32 %v1910_v54  ;;  %v2075_v56 = vsub.f32 %v2071_v41, %v2074_v55 }
 0x65e   : > { %v2076_v57 = vmul.f32 1.442695, %v2075_v56 }
 0x65f   : > { %v2240_v6 = vpop.xlane.xlu0 %2239 }
 0x660   : > { %10009 = vpow2.f32 %v2076_v57  ;;  %v2241_v7 = vsub.f32 %v2237_v45, %v2240_v6 }
 0x662   : > { %v2242_v8 = vmul.f32 1.442695, %v2241_v7 }
 0x663   : > { %v2406_v58 = vpop.xlane.xlu1 %2405 }
 0x664   : > { %v2407_v59 = vsub.f32 %v2403_v49, %v2406_v58 }
 0x666   : > { %v10008_v60 = vpop.eup %10007  ;;  %v2408_v61 = vmul.f32 1.442695, %v2407_v59 }
 0x667   : > { %v1912_v62 = vsel %vm1656_vm5, %v10008_v60, 0.0  ;;  %v2084_v11 = vpop.permute.xlu1 %2083 }
 0x668   : > { %10011 = vpow2.f32 %v2408_v61  ;;  %1913 = vadd.xlane.f32.xlu0 %v1912_v62 }
 0x669   : > { %10013 = vpow2.f32 %v2242_v8 }
 0x66a   : > { %v10010_v63 = vpop.eup %10009 }
 0x66b   : > { %v2078_v3 = vsel %vm1656_vm5, %v10010_v63, 0.0 }
 0x66c   : > { %2079 = vadd.xlane.f32.xlu1 %v2078_v3 }
 0x672   : > { %v10012_v4 = vpop.eup %10011 }
 0x673   : > { %v2410_v5 = vsel %vm1656_vm5, %v10012_v4, 0.0  ;;  %v10014_v9 = vpop.eup %10013 }
 0x674   : > { %2411 = vadd.xlane.f32.xlu1 %v2410_v5  ;;  %v2244_v10 = vsel %vm1656_vm5, %v10014_v9, 0.0 }
 0x67e   : > { %1917 = vrot.lane.b32.xlu0 %v11407_v27, %s12191_s10  ;;  %s12331_s10 = sld [smem:[#allocation51_spill]] }
 0x684   : > { %v8613_v48 = vld [vmem:[%s12331_s10] ss:$0 sm:$0xff] }
 0x685   : > { %2249 = vrot.lane.b32.xlu1 %v11407_v27, %s12189_s2  ;;  %s12195_s2 = smov 16  }
 0x69d   : > { %2245 = vadd.xlane.f32.xlu0 %v2244_v10 }
 0x6b3   : > { %2415 = vrot.lane.b32.xlu0 %v11407_v27, %s12187_s27  ;;  %s12330_s27 = sld [smem:[#allocation50_spill]] }
 0x6b9   : > { %v2508_v28 = vld [vmem:[%s12330_s27] sm:$0xff]  ;;  %v2509_v29 = vld [vmem:[%s12330_s27 + $0x8] sm:$0xff]  ;;  %v2510_v35 = vld [vmem:[%s12330_s27 + $0x10] sm:$0xff] }
 0x6ba   : > { %v9581_v30 = vpack.c.bf16 %v2509_v29, %v2508_v28  ;;  %v2511_v36 = vld [vmem:[%s12330_s27 + $0x18] sm:$0xff] }
 0x6bb   : > { %v9584_v37 = vpack.c.bf16 %v2511_v36, %v2510_v35 }
 0x6bc   : > { %9582 = vmatpush3.bf16.msra.mxu1 %v9581_v30  ;;  %v8619_v30 = vld [vmem:[%s12337_s18] ss:$0 sm:$0xff] }
 0x6bd   : > { %9583 = vmatprep.subr.bf16.mxu1 %v10776_v0 }
 0x6c0   : > { %9585 = vmatpush3.bf16.msra.mxu1 %v9584_v37 }
 0x6c1   : > { %9592 = vmatprep.subr.bf16.mxu1 %v10776_v0 }
 0x6f5   : > { %v1914_v12 = vpop.xlane.xlu0 %1913 }
 0x6f6   : > { %10015 = vrcp.f32 %v1914_v12 }
 0x6f9   : > { %v1918_v13 = vpop.permute.xlu0 %1917  ;;  %v2080_v14 = vpop.xlane.xlu1 %2079 }
 0x6fa   : > { %10017 = vrcp.f32 %v2080_v14  ;;  %9055 = vmatpush3.msra.mxu0 %v1918_v13 }
 0x6fb   : > { %9064 = vmatprep.subr.mxu0 %v10778_v1 }
 0x700   : > { %v10016_v15 = vpop.eup %10015 }
 0x701   : > { %v2412_v16 = vpop.xlane.xlu1 %2411  ;;  %v1916_v17 = vmul.f32 %v10016_v15, %v10008_v60 }
 0x703   : > { %9057 = vmatmul.mubr.msk.f32.vlgmr.msra.gmra.mrb[2].mxu0 %vm1656_vm5, %v1916_v17 }
 0x704   : > { %v10018_v18 = vpop.eup %10017  ;;  %9065 = vmatpush3.msra.mxu0 %v2084_v11  ;;  %9066 = vmatprep.mubr.msk.f32.mxu0 %vm10777_vm1, %v10778_v1 }
 0x705   : > { %v2250_v19 = vpop.permute.xlu1 %2249  ;;  %9074 = vmatprep.subr.mxu0 %v10778_v1  ;;  %v2082_v20 = vmul.f32 %v10018_v18, %v10010_v63  ;;  %v8616_v18 = vld [vmem:[%s12335_s1] ss:$0 sm:$0xff] }
 0x707   : > { %9067 = vmatmul.mubr.msk.f32.vlgmr.msra.gmra.mrb[4].mxu0 %vm1656_vm5, %v2082_v20 }
 0x708   : > { %9075 = vmatpush3.msra.mxu0 %v2250_v19  ;;  %9076 = vmatprep.mubr.msk.f32.mxu0 %vm10777_vm1, %v10778_v1 }
 0x709   : > { %9084 = vmatprep.subr.mxu0 %v10778_v1 }
 0x72a   : > { %v2246_v21 = vpop.xlane.xlu0 %2245 }
 0x72b   : > { %10019 = vrcp.f32 %v2246_v21 }
 0x72c   : > { %10021 = vrcp.f32 %v2412_v16 }
 0x72e   : > { %v2416_v26 = vpop.permute.xlu0 %2415 }
 0x735   : > { %v10020_v22 = vpop.eup %10019 }
 0x736   : > { %v2248_v23 = vmul.f32 %v10020_v22, %v10014_v9  ;;  %v10022_v25 = vpop.eup %10021 }
 0x737   : > { %v2414_v27 = vmul.f32 %v10022_v25, %v10012_v4  ;;  %v8617_v25 = vld [vmem:[%s12336_s28] ss:$0 sm:$0xff] }
 0x738   : > { %9077 = vmatmul.mubr.msk.f32.vlgmr.msra.gmra.mrb[6].mxu0 %vm1656_vm5, %v2248_v23 }
 0x739   : > { %9085 = vmatpush3.msra.mxu0 %v2416_v26  ;;  %9086 = vmatprep.mubr.msk.f32.mxu0 %vm10777_vm1, %v10778_v1 }
 0x73a   : > { %9586 = vmatprep.subr.bf16.mxu0 %v10776_v0 }
 0x73c   : > { %9087 = vmatmul.mubr.msk.f32.vlgmr.msra.gmra.mrb[8].mxu0 %vm1656_vm5, %v2414_v27 }
 0x73d   : > { %9108 = vmatprep.mubr.msk.f32.mxu0 %vm10777_vm1, %v10778_v1 }
 0x7d6   : > { %v1989_v31 = vpop.f32.mrb[2].mxu0 }
 0x7d7   : > { %v9058_v32 = vpop.f32.mrb[3].mxu0 }
 0x7da   : > { %v2155_v33 = vpop.f32.mrb[4].mxu0 }
 0x7db   : > { %2492 = vrot.lane.b32.xlu1 %v2155_v33, %s12199_s11  ;;  %v9068_v34 = vpop.f32.mrb[5].mxu0  ;;  %s12334_s11 = sld [smem:[#allocation52_spill]] }
 0x7e1   : > { %v8615_v16 = vld [vmem:[%s12334_s11] ss:$0 sm:$0xff] }
 0x80b   : > { %v2321_v38 = vpop.f32.mrb[6].mxu0 }
 0x80c   : > { %2496 = vrot.lane.b32.xlu0 %v2321_v38, %s12195_s2  ;;  %v9078_v39 = vpop.f32.mrb[7].mxu0  ;;  %s12332_s2 = sld [smem:[#allocation54_spill]] }
 0x80f   : > { %v2487_v40 = vpop.f32.mrb[8].mxu0 }
 0x810   : > { %2500 = vrot.lane.b32.xlu1 %v2487_v40, %s12197_s15  ;;  %v9088_v41 = vpop.f32.mrb[9].mxu0  ;;  %s12333_s15 = sld [smem:[#allocation56_spill]] }
 0x811   : > { %v8623_v41 = vld [vmem:[%s12324_s26 + $0x20] sm:$0xff] }
 0x812   : > { %v2623_v59 = vld [vmem:[%s12332_s2] sm:$0xff]  ;;  %v2624_v60 = vld [vmem:[%s12332_s2 + $0x8] sm:$0xff]  ;;  %v2626_v62 = vld [vmem:[%s12332_s2 + $0x18] sm:$0xff] }
 0x813   : > { %v9587_v61 = vpack.c.bf16 %v2624_v60, %v2623_v59 }
 0x815   : > { %9588 = vmatpush3.bf16.msra.mxu0 %v9587_v61 }
 0x816   : > { %9589 = vmatprep.subr.bf16.mxu0 %v10776_v0  ;;  %v2708_v3 = vld [vmem:[%s12333_s15] sm:$0xff]  ;;  %v2709_v4 = vld [vmem:[%s12333_s15 + $0x8] sm:$0xff]  ;;  %v2710_v5 = vld [vmem:[%s12333_s15 + $0x10] sm:$0xff] }
 0x817   : > { %v9593_v6 = vpack.c.bf16 %v2709_v4, %v2708_v3  ;;  %v2711_v7 = vld [vmem:[%s12333_s15 + $0x18] sm:$0xff]  ;;  %v2712_v9 = vld [vmem:[%s12333_s15 + $0x20] sm:$0xff]  ;;  %v2713_v10 = vld [vmem:[%s12333_s15 + $0x28] sm:$0xff] }
 0x818   : > { %v9596_v8 = vpack.c.bf16 %v2711_v7, %v2710_v5  ;;  %v9599_v11 = vpack.c.bf16 %v2713_v10, %v2712_v9  ;;  %v2714_v21 = vld [vmem:[%s12333_s15 + $0x30] sm:$0xff]  ;;  %v2715_v22 = vld [vmem:[%s12333_s15 + $0x38] sm:$0xff] }
 0x819   : > { %v9602_v23 = vpack.c.bf16 %v2715_v22, %v2714_v21 }
 0x84d   : > { %v2493_v42 = vpop.permute.xlu1 %2492 }
 0x84e   : > { %v2503_v44 = vsel %vm1656_vm5, %v1989_v31, %v2493_v42  ;;  %v8624_v42 = vld [vmem:[%s12324_s26 + $0x28] sm:$0xff] }
 0x87e   : > { %v2497_v43 = vpop.permute.xlu0 %2496 }
 0x87f   : > { %v2505_v45 = vsel %vm2504_vm8, %v2503_v44, %v2497_v43  ;;  %v9605_v43 = vpack.c.bf16 %v8624_v42, %v8623_v41  ;;  %v8625_v44 = vld [vmem:[%s12324_s26 + $0x30] sm:$0xff] }
 0x882   : > { %v2501_v46 = vpop.permute.xlu1 %2500 }
 0x883   : > { %v2507_v47 = vsel %vm2506_vm9, %v2505_v45, %v2501_v46  ;;  %v8626_v45 = vld [vmem:[%s12324_s26 + $0x38] sm:$0xff]  ;;  %s12352_s26 = smov 16  }
 0x884   : > { %9098 = vmatmul.mubr.msk.f32.vlgmr.msra.gmra.mrb[10].mxu1 %vm1754_vm7, %v2507_v47  ;;  %v9608_v46 = vpack.c.bf16 %v8626_v45, %v8625_v44 }
 0x885   : > { %9127 = vmatprep.mubr.msk.f32.mxu1 %vm10777_vm1, %v10778_v1  ;;  %9594 = vmatpush3.bf16.msra.mxu1 %v9593_v6 }
 0x886   : > { %9595 = vmatprep.subr.bf16.mxu1 %v10776_v0 }
 0x889   : > { %9597 = vmatpush3.bf16.msra.mxu1 %v9596_v8 }
 0x88a   : > { %9598 = vmatprep.subr.bf16.mxu1 %v10776_v0 }
 0x88d   : > { %9600 = vmatpush3.bf16.msra.mxu1 %v9599_v11 }
 0x88e   : > { %9601 = vmatprep.subr.bf16.mxu1 %v10776_v0 }
 0x891   : > { %9603 = vmatpush3.bf16.msra.mxu1 %v9602_v23 }
 0x892   : > { %9151 = vmatprep.subr.mxu1 %v10778_v1 }
 0x957   : > { %v2588_v49 = vpop.f32.mrb[10].mxu1 }
 0x958   : > { %v2589_v50 = vadd.f32 %v8613_v48, %v2588_v49  ;;  %v9099_v51 = vpop.f32.mrb[11].mxu1 }
 0x959   : > { %v8621_v51 = vld [vmem:[%s12338_s9] ss:$0 sm:$0xff] }
 0x95a   : > { %v2592_v52 = vadd.f32 %v2589_v50, %v11400_v24  ;;  %v2625_v24 = vld [vmem:[%s12332_s2 + $0x10] sm:$0xff] }
 0x95b   : > { %v9590_v63 = vpack.c.bf16 %v2626_v62, %v2625_v24 }
 0x95c   : > { %v2595_v53 = vsel %vm1754_vm7, %v2592_v52, 0.0 }
 0x95d   : > { %2596 = vadd.xlane.f32.xlu0 %v2595_v53  ;;  %9591 = vmatpush3.bf16.msra.mxu0 %v9590_v63  ;;  %v8622_v53 = vld [vmem:[%s12339_s3] ss:$0 sm:$0xff] }
 0x95e   : > { %9604 = vmatprep.subr.bf16.mxu0 %v10776_v0 }
 0x9ea   : > { %v2597_v54 = vpop.xlane.xlu0 %2596 }
 0x9eb   : > { %v2599_v55 = vmul.f32 0.03125, %v2597_v54 }
 0x9ed   : > { %v2600_v56 = vsub.f32 %v2592_v52, %v2599_v55 }
 0x9ef   : > { %v2601_v57 = vmul.f32 %v2600_v56, %v2600_v56 }
 0x9f1   : > { %v2602_v58 = vsel %vm1754_vm7, %v2601_v57, 0.0 }
 0x9f2   : > { %2603 = vadd.xlane.f32.xlu1 %v2602_v58 }
 0xa7f   : > { %v2604_v12 = vpop.xlane.xlu1 %2603 }
 0xa80   : > { %v2605_v13 = vmul.f32 0.03125, %v2604_v12 }
 0xa82   : > { %v2606_v14 = vadd.f32 1e-05, %v2605_v13 }
 0xa84   : > { %10023 = vrsqrt.f32 %v2606_v14 }
 0xa8e   : > { %v10024_v15 = vpop.eup %10023 }
 0xa8f   : > { %v2608_v17 = vmul.f32 %v10024_v15, %v2600_v56  ;;  %v8628_v56 = vld [vmem:[%s12329_s23 + $0x1] ss:$0 sm:$0xff]  ;;  %s12349_s23 = smov 48  }
 0xa91   : > { %v2615_v19 = vmul.f32 %v8615_v16, %v2608_v17 }
 0xa93   : > { %v2622_v20 = vadd.f32 %v8616_v18, %v2615_v19 }
 0xa95   : > { %9109 = vmatmul.mubr.msk.f32.vlgmr.msra.gmra.mrb[10].mxu0 %vm1754_vm7, %v2622_v20 }
 0xa96   : > { %9138 = vmatprep.mubr.msk.f32.mxu0 %vm10777_vm1, %v10778_v1  ;;  %9606 = vmatpush3.bf16.msra.mxu0 %v9605_v43 }
 0xa97   : > { %9607 = vmatprep.subr.bf16.mxu0 %v10776_v0 }
 0xa9a   : > { %9609 = vmatpush3.bf16.msra.mxu0 %v9608_v46 }
 0xa9b   : > { %9141 = vmatprep.subr.mxu0 %v10778_v1 }
 0xb68   : > { %v2703_v26 = vpop.f32.mrb[10].mxu0 }
 0xb69   : > { %v2704_v27 = vadd.f32 %v8617_v25, %v2703_v26  ;;  %v9110_v28 = vpop.f32.mrb[11].mxu0 }
 0xb6b   : > { %v2707_v29 = vmax.f32 %v2704_v27, 0.0 }
 0xb6d   : > { %9128 = vmatmul.mubr.msk.f32.vlgmr.msra.gmra.mrb[12].mxu1 %vm2723_vm10, %v2707_v29 }
 0xb6e   : > { %9153 = vmatprep.mubr.msk.f32.mxu1 %vm10777_vm1, %v10778_v1 }
 0xc40   : > { %v2793_v31 = vpop.f32.mrb[12].mxu1 }
 0xc41   : > { %v2794_v32 = vadd.f32 %v8619_v30, %v2793_v31  ;;  %v9129_v33 = vpop.f32.mrb[13].mxu1 }
 0xc43   : > { %v2797_v34 = vadd.f32 %v2794_v32, %v2622_v20 }
 0xc45   : > { %v2800_v35 = vsel %vm1754_vm7, %v2797_v34, 0.0 }
 0xc46   : > { %2801 = vadd.xlane.f32.xlu0 %v2800_v35 }
 0xcd3   : > { %v2802_v36 = vpop.xlane.xlu0 %2801 }
 0xcd4   : > { %v2803_v37 = vmul.f32 0.03125, %v2802_v36 }
 0xcd6   : > { %v2804_v38 = vsub.f32 %v2797_v34, %v2803_v37 }
 0xcd8   : > { %v2805_v39 = vmul.f32 %v2804_v38, %v2804_v38 }
 0xcda   : > { %v2806_v40 = vsel %vm1754_vm7, %v2805_v39, 0.0 }
 0xcdb   : > { %2807 = vadd.xlane.f32.xlu0 %v2806_v40 }
 0xd68   : > { %v2808_v47 = vpop.xlane.xlu0 %2807 }
 0xd69   : > { %v2809_v48 = vmul.f32 0.03125, %v2808_v47 }
 0xd6b   : > { %v2810_v49 = vadd.f32 1e-05, %v2809_v48 }
 0xd6d   : > { %10025 = vrsqrt.f32 %v2810_v49 }
 0xd77   : > { %v10026_v50 = vpop.eup %10025 }
 0xd78   : > { %v2812_v52 = vmul.f32 %v10026_v50, %v2804_v38 }
 0xd7a   : > { %v2819_v54 = vmul.f32 %v8621_v51, %v2812_v52 }
 0xd7c   : > { %v11533_v55 = vadd.f32 %v8622_v53, %v2819_v54 }
 0xd7e   : > { %9139 = vmatmul.mubr.msk.f32.vlgmr.msra.gmra.mrb[12].mxu0 %vm1754_vm7, %v11533_v55 }
 0xd7f   : > { %9143 = vmatprep.mubr.msk.f32.mxu0 %vm10777_vm1, %v10778_v1 }
 0xe51   : > { %v2909_v57 = vpop.f32.mrb[12].mxu0 }
 0xe52   : > { %v11540_v58 = vadd.f32 %v8628_v56, %v2909_v57  ;;  %v9140_v59 = vpop.f32.mrb[13].mxu0 }
 0xe53   : > { %v8642_v59 = vld [vmem:[%s12330_s27 + $0x20] sm:$0xff] }
 0xe54   : > { %3080 = vrot.lane.b32.xlu0 %v11540_v58, %s12340_s4  ;;  %2914 = vrot.lane.b32.xlu1 %v11540_v58, %s12341_s6 }
 0xe58   : > { %3244 = vrot.lane.b32.xlu0 %v11540_v58, %s12342_s13  ;;  %3078 = vrot.lane.b32.xlu1 %v11540_v58, %s12343_s14 }
 0xe5c   : > { %3410 = vrot.lane.b32.xlu0 %v11540_v58, %s12344_s16  ;;  %3246 = vrot.lane.b32.xlu1 %v11540_v58, %s12345_s17 }
 0xe60   : > { %3412 = vrot.lane.b32.xlu1 %v11540_v58, %s12346_s19 }
 0xec6   : > { %v3081_v60 = vpop.permute.xlu0 %3080  ;;  %v2915_v61 = vpop.permute.xlu1 %2914 }
 0xec7   : > { %9142 = vmatpush3.xpose.msk.msra.mxu0 %vm1656_vm5, %v2915_v61  ;;  %9152 = vmatpush3.xpose.msk.msra.mxu1 %vm1656_vm5, %v3081_v60  ;;  %v8643_v60 = vld [vmem:[%s12330_s27 + $0x28] sm:$0xff] }
 0xec8   : > { %9161 = vmatprep.subr.mxu1 %v10778_v1  ;;  %9146 = vmatprep.subr.mxu0 %v10778_v1  ;;  %v9611_v61 = vpack.c.bf16 %v8643_v60, %v8642_v59 }
 0xeca   : > { %9144 = vmatmul.mubr.msk.f32.vlgmr.msra.gmra.mrb[14].mxu0 %vm1656_vm5, %v11540_v58  ;;  %v3079_v24 = vpop.permute.xlu1 %3078  ;;  %v3245_v63 = vpop.permute.xlu0 %3244 }
 0xecb   : > { %9154 = vmatmul.mubr.msk.f32.vlgmr.msra.gmra.mrb[14].mxu1 %vm1656_vm5, %v3079_v24  ;;  %9148 = vmatprep.mubr.msk.f32.mxu0 %vm10777_vm1, %v10778_v1 }
 0xecc   : > { %9163 = vmatprep.mubr.msk.f32.mxu1 %vm10777_vm1, %v10778_v1 }
 0xece   : > { %v3247_v62 = vpop.permute.xlu1 %3246  ;;  %v3411_v4 = vpop.permute.xlu0 %3410 }
 0xecf   : > { %9162 = vmatpush3.xpose.msk.msra.mxu1 %vm1656_vm5, %v3247_v62 }
 0xed0   : > { %9171 = vmatprep.subr.mxu1 %v10778_v1 }
 0xed2   : > { %9164 = vmatmul.mubr.msk.f32.vlgmr.msra.gmra.mrb[16].mxu1 %vm1656_vm5, %v3245_v63  ;;  %v3413_v3 = vpop.permute.xlu1 %3412 }
 0xed3   : > { %9172 = vmatpush3.xpose.msk.msra.mxu1 %vm1656_vm5, %v3413_v3  ;;  %9173 = vmatprep.mubr.msk.f32.mxu1 %vm10777_vm1, %v10778_v1 }
 0xed4   : > { %9610 = vmatprep.subr.bf16.mxu1 %v10776_v0 }
 0xed6   : > { %9174 = vmatmul.mubr.msk.f32.vlgmr.msra.gmra.mrb[18].mxu1 %vm1656_vm5, %v3411_v4  ;;  %v8644_v4 = vld [vmem:[%s12330_s27 + $0x30] sm:$0xff] }
 0xed7   : > { %9189 = vmatprep.mubr.msk.f32.mxu1 %vm10777_vm1, %v10778_v1  ;;  %9612 = vmatpush3.bf16.msra.mxu1 %v9611_v61 }
 0xed8   : > { %9613 = vmatprep.subr.bf16.mxu1 %v10776_v0 }
 0xf9d   : > { %v2986_v5 = vpop.f32.mrb[14].mxu0 }
 0xf9e   : > { %v2990_v6 = vmul.f32 0.35355338, %v2986_v5  ;;  %v9145_v7 = vpop.f32.mrb[15].mxu0  ;;  %v3152_v8 = vpop.f32.mrb[14].mxu1  ;;  %v8645_v5 = vld [vmem:[%s12330_s27 + $0x38] sm:$0xff]  ;;  %s1628_s27 = scalar_lea.vmem %s12354_s30, %s11370_s0  ;;  %s12356_s30 = sld [smem:[#allocation62_spill]] }
 0xf9f   : > { %v3156_v9 = vmul.f32 0.35355338, %v3152_v8  ;;  %v9155_v10 = vpop.f32.mrb[15].mxu1 }
 0xfa0   : > { %v2991_v11 = vsel %vm1656_vm5, %v2990_v6, -inf }
 0xfa1   : > { %2992 = vmax.xlane.f32.xlu1 %v2991_v11  ;;  %v3157_v12 = vsel %vm1656_vm5, %v3156_v9, -inf }
 0xfa2   : > { %3158 = vmax.xlane.f32.xlu0 %v3157_v12 }
 0xfa4   : > { %v4051_v2 = vld [vmem:[%s12356_s30 + $0x8] sm:$0xff] }
 0xfa5   : > { %v3318_v13 = vpop.f32.mrb[16].mxu1 }
 0xfa6   : > { %v3322_v14 = vmul.f32 0.35355338, %v3318_v13  ;;  %v9165_v15 = vpop.f32.mrb[17].mxu1 }
 0xfa8   : > { %v3323_v16 = vsel %vm1656_vm5, %v3322_v14, -inf }
 0xfa9   : > { %3324 = vmax.xlane.f32.xlu0 %v3323_v16  ;;  %v3484_v17 = vpop.f32.mrb[18].mxu1 }
 0xfaa   : > { %v3488_v18 = vmul.f32 0.35355338, %v3484_v17  ;;  %v9175_v19 = vpop.f32.mrb[19].mxu1  ;;  %v8647_v17 = vld [vmem:[%s12331_s10 + $0x1] ss:$0 sm:$0xff] }
 0xfac   : > { %v3489_v20 = vsel %vm1656_vm5, %v3488_v18, -inf }
 0xfad   : > { %3490 = vmax.xlane.f32.xlu1 %v3489_v20 }
 0xfbe   : > { %3168 = vrot.lane.b32.xlu1 %v11540_v58, %s12347_s21 }
0x102e   : > { %v2993_v21 = vpop.xlane.xlu1 %2992 }
0x102f   : > { %v2994_v22 = vsub.f32 %v2990_v6, %v2993_v21  ;;  %v3159_v23 = vpop.xlane.xlu0 %3158  ;;  %v9614_v6 = vpack.c.bf16 %v8645_v5, %v8644_v4 }
0x1030   : > { %v3160_v25 = vsub.f32 %v3156_v9, %v3159_v23  ;;  %v3947_v23 = vld [vmem:[%s1628_s27] sm:$0xff] }
0x1031   : > { %v2995_v26 = vmul.f32 1.442695, %v2994_v22  ;;  %9615 = vmatpush3.bf16.msra.mxu1 %v9614_v6  ;;  %v4052_v6 = vld [vmem:[%s12356_s30 + $0x10] sm:$0xff] }
0x1032   : > { %v3161_v27 = vmul.f32 1.442695, %v3160_v25  ;;  %9622 = vmatprep.subr.bf16.mxu1 %v10776_v0 }
0x1033   : > { %10027 = vpow2.f32 %v2995_v26 }
0x1034   : > { %10029 = vpow2.f32 %v3161_v27 }
0x1036   : > { %v3325_v37 = vpop.xlane.xlu0 %3324 }
0x1037   : > { %v3326_v38 = vsub.f32 %v3322_v14, %v3325_v37  ;;  %v8661_v37 = vld [vmem:[%s12333_s15 + $0x48] sm:$0xff] }
0x1039   : > { %v3327_v39 = vmul.f32 1.442695, %v3326_v38  ;;  %v8662_v38 = vld [vmem:[%s12333_s15 + $0x50] sm:$0xff] }
0x103a   : > { %v3491_v28 = vpop.xlane.xlu1 %3490 }
0x103b   : > { %v3492_v29 = vsub.f32 %v3488_v18, %v3491_v28 }
0x103d   : > { %v10028_v30 = vpop.eup %10027  ;;  %v3493_v31 = vmul.f32 1.442695, %v3492_v29 }
0x103e   : > { %v10030_v32 = vpop.eup %10029  ;;  %v2997_v33 = vsel %vm1656_vm5, %v10028_v30, 0.0  ;;  %v3169_v42 = vpop.permute.xlu1 %3168 }
0x103f   : > { %10031 = vpow2.f32 %v3493_v31  ;;  %2998 = vadd.xlane.f32.xlu0 %v2997_v33  ;;  %v3163_v34 = vsel %vm1656_vm5, %v10030_v32, 0.0  ;;  %v8654_v31 = vld [vmem:[%s12332_s2 + $0x28] sm:$0xff]  ;;  %v8655_v33 = vld [vmem:[%s12332_s2 + $0x30] sm:$0xff] }
0x1040   : > { %3164 = vadd.xlane.f32.xlu1 %v3163_v34  ;;  %10033 = vpow2.f32 %v3327_v39  ;;  %v8656_v34 = vld [vmem:[%s12332_s2 + $0x38] sm:$0xff] }
0x1049   : > { %v10032_v35 = vpop.eup %10031 }
0x104a   : > { %v3495_v36 = vsel %vm1656_vm5, %v10032_v35, 0.0  ;;  %v10034_v40 = vpop.eup %10033 }
0x104b   : > { %3496 = vadd.xlane.f32.xlu1 %v3495_v36  ;;  %v3329_v41 = vsel %vm1656_vm5, %v10034_v40, 0.0  ;;  %v8660_v36 = vld [vmem:[%s12333_s15 + $0x40] sm:$0xff] }
0x104c   : > { %v9623_v39 = vpack.c.bf16 %v8661_v37, %v8660_v36 }
0x1055   : > { %3002 = vrot.lane.b32.xlu0 %v11540_v58, %s12348_s22 }
0x105c   : > { %3334 = vrot.lane.b32.xlu1 %v11540_v58, %s12349_s23 }
0x1074   : > { %3330 = vadd.xlane.f32.xlu0 %v3329_v41 }
0x108a   : > { %3500 = vrot.lane.b32.xlu0 %v11540_v58, %s12350_s24 }
0x10cc   : > { %v2999_v43 = vpop.xlane.xlu0 %2998 }
0x10cd   : > { %10035 = vrcp.f32 %v2999_v43  ;;  %v3165_v44 = vpop.xlane.xlu1 %3164  ;;  %v8665_v43 = vld [vmem:[%s12333_s15 + $0x68] sm:$0xff] }
0x10ce   : > { %10037 = vrcp.f32 %v3165_v44 }
0x10d0   : > { %v3003_v45 = vpop.permute.xlu0 %3002 }
0x10d1   : > { %9147 = vmatpush3.msra.mxu0 %v3003_v45 }
0x10d2   : > { %9156 = vmatprep.subr.mxu0 %v10778_v1 }
0x10d7   : > { %v10036_v46 = vpop.eup %10035 }
0x10d8   : > { %v3497_v47 = vpop.xlane.xlu1 %3496  ;;  %v3001_v48 = vmul.f32 %v10036_v46, %v10028_v30  ;;  %v10038_v49 = vpop.eup %10037  ;;  %v8653_v30 = vld [vmem:[%s12332_s2 + $0x20] sm:$0xff]  ;;  %s12361_s2 = sld [smem:[#allocation68_spill]] }
0x10d9   : > { %v3167_v51 = vmul.f32 %v10038_v49, %v10030_v32  ;;  %v9617_v32 = vpack.c.bf16 %v8654_v31, %v8653_v30  ;;  %v8651_v49 = vld [vmem:[%s12334_s11 + $0x1] ss:$0 sm:$0xff] }
0x10da   : > { %9149 = vmatmul.mubr.msk.f32.vlgmr.msra.gmra.mrb[16].mxu0 %vm1656_vm5, %v3001_v48 }
0x10db   : > { %9157 = vmatpush3.msra.mxu0 %v3169_v42  ;;  %9158 = vmatprep.mubr.msk.f32.mxu0 %vm10777_vm1, %v10778_v1  ;;  %v8664_v42 = vld [vmem:[%s12333_s15 + $0x60] sm:$0xff] }
0x10dc   : > { %v3335_v50 = vpop.permute.xlu1 %3334  ;;  %9166 = vmatprep.subr.mxu0 %v10778_v1  ;;  %v9629_v44 = vpack.c.bf16 %v8665_v43, %v8664_v42 }
0x10de   : > { %9159 = vmatmul.mubr.msk.f32.vlgmr.msra.gmra.mrb[18].mxu0 %vm1656_vm5, %v3167_v51 }
0x10df   : > { %9167 = vmatpush3.msra.mxu0 %v3335_v50  ;;  %9168 = vmatprep.mubr.msk.f32.mxu0 %vm10777_vm1, %v10778_v1  ;;  %v3952_v50 = vrot.slane %v3947_v23, 7 }
0x10e0   : > { %9176 = vmatprep.subr.mxu0 %v10778_v1 }
0x1101   : > { %v3331_v52 = vpop.xlane.xlu0 %3330 }
0x1102   : > { %10039 = vrcp.f32 %v3331_v52  ;;  %v3948_v52 = vld [vmem:[#allocation2] sm:$0xff] }
0x1103   : > { %10041 = vrcp.f32 %v3497_v47 }
0x1105   : > { %v3501_v57 = vpop.permute.xlu0 %3500 }
0x110c   : > { %v10040_v53 = vpop.eup %10039 }
0x110d   : > { %v3333_v54 = vmul.f32 %v10040_v53, %v10034_v40  ;;  %v10042_v56 = vpop.eup %10041  ;;  %v8663_v40 = vld [vmem:[%s12333_s15 + $0x58] sm:$0xff]  ;;  %v3949_v53 = vld [vmem:[#allocation2 + $0x8] sm:$0xf] }
0x110e   : > { %v3499_v58 = vmul.f32 %v10042_v56, %v10032_v35  ;;  %v9620_v35 = vpack.c.bf16 %v8656_v34, %v8655_v33  ;;  %v9626_v41 = vpack.c.bf16 %v8663_v40, %v8662_v38 }
0x110f   : > { %9169 = vmatmul.mubr.msk.f32.vlgmr.msra.gmra.mrb[20].mxu0 %vm1656_vm5, %v3333_v54  ;;  %v8652_v54 = vld [vmem:[%s12335_s1 + $0x1] ss:$0 sm:$0xff] }
0x1110   : > { %9177 = vmatpush3.msra.mxu0 %v3501_v57  ;;  %9178 = vmatprep.mubr.msk.f32.mxu0 %vm10777_vm1, %v10778_v1 }
0x1111   : > { %9616 = vmatprep.subr.bf16.mxu0 %v10776_v0 }
0x1113   : > { %9179 = vmatmul.mubr.msk.f32.vlgmr.msra.gmra.mrb[22].mxu0 %vm1656_vm5, %v3499_v58  ;;  %v9635_v58 = vpack.c.bf16 %v3949_v53, %v3948_v52 }
0x1114   : > { %9200 = vmatprep.mubr.msk.f32.mxu0 %vm10777_vm1, %v10778_v1  ;;  %9618 = vmatpush3.bf16.msra.mxu0 %v9617_v32 }
0x1115   : > { %9619 = vmatprep.subr.bf16.mxu0 %v10776_v0 }
0x1118   : > { %9621 = vmatpush3.bf16.msra.mxu0 %v9620_v35 }
0x1119   : > { %9634 = vmatprep.subr.bf16.mxu0 %v10776_v0 }
0x11ad   : > { %v3074_v24 = vpop.f32.mrb[16].mxu0 }
0x11ae   : > { %v9150_v62 = vpop.f32.mrb[17].mxu0 }
0x11af   : > { %v8666_v62 = vld [vmem:[%s12333_s15 + $0x70] sm:$0xff] }
0x11b1   : > { %v3240_v63 = vpop.f32.mrb[18].mxu0 }
0x11b2   : > { %3577 = vrot.lane.b32.xlu1 %v3240_v63, %s12351_s25  ;;  %v9160_v3 = vpop.f32.mrb[19].mxu0  ;;  %v8667_v63 = vld [vmem:[%s12333_s15 + $0x78] sm:$0xff] }
0x11b3   : > { %v4050_v3 = vld [vmem:[%s12356_s30] sm:$0xff]  ;;  %v9632_v4 = vpack.c.bf16 %v8667_v63, %v8666_v62 }
0x11b4   : > { %v9639_v5 = vpack.c.bf16 %v4051_v2, %v4050_v3 }
0x11e2   : > { %v3406_v7 = vpop.f32.mrb[20].mxu0 }
0x11e3   : > { %3581 = vrot.lane.b32.xlu0 %v3406_v7, %s12352_s26  ;;  %v9170_v8 = vpop.f32.mrb[21].mxu0  ;;  %v4053_v7 = vld [vmem:[%s12356_s30 + $0x18] sm:$0xff] }
0x11e4   : > { %v9642_v8 = vpack.c.bf16 %v4053_v7, %v4052_v6 }
0x11e6   : > { %v3572_v9 = vpop.f32.mrb[22].mxu0 }
0x11e7   : > { %3585 = vrot.lane.b32.xlu1 %v3572_v9, %s12353_s29  ;;  %v9180_v10 = vpop.f32.mrb[23].mxu0  ;;  %v8658_v9 = vld [vmem:[%s12336_s28 + $0x1] ss:$0 sm:$0xff] }
0x1224   : > { %v3578_v11 = vpop.permute.xlu1 %3577 }
0x1225   : > { %v3588_v13 = vsel %vm1656_vm5, %v3074_v24, %v3578_v11 }
0x1255   : > { %v3582_v12 = vpop.permute.xlu0 %3581 }
0x1256   : > { %v3589_v14 = vsel %vm2504_vm8, %v3588_v13, %v3582_v12  ;;  %v8677_v13 = vld [vmem:[#allocation4] ss:$0 sm:$0xff] }
0x1259   : > { %v3586_v15 = vpop.permute.xlu1 %3585 }
0x125a   : > { %v3590_v16 = vsel %vm2506_vm9, %v3589_v14, %v3586_v15 }
0x125b   : > { %9190 = vmatmul.mubr.msk.f32.vlgmr.msra.gmra.mrb[20].mxu1 %vm1754_vm7, %v3590_v16 }
0x125c   : > { %9219 = vmatprep.mubr.msk.f32.mxu1 %vm10777_vm1, %v10778_v1  ;;  %9624 = vmatpush3.bf16.msra.mxu1 %v9623_v39 }
0x125d   : > { %9625 = vmatprep.subr.bf16.mxu1 %v10776_v0 }
0x1260   : > { %9627 = vmatpush3.bf16.msra.mxu1 %v9626_v41 }
0x1261   : > { %9628 = vmatprep.subr.bf16.mxu1 %v10776_v0 }
0x1264   : > { %9630 = vmatpush3.bf16.msra.mxu1 %v9629_v44 }
0x1265   : > { %9631 = vmatprep.subr.bf16.mxu1 %v10776_v0 }
0x1268   : > { %9633 = vmatpush3.bf16.msra.mxu1 %v9632_v4 }
0x1269   : > { %9245 = vmatprep.subr.mxu1 %v10778_v1 }
0x132e   : > { %v3673_v18 = vpop.f32.mrb[20].mxu1 }
0x132f   : > { %v3674_v19 = vadd.f32 %v8647_v17, %v3673_v18  ;;  %v9191_v20 = vpop.f32.mrb[21].mxu1  ;;  %v10127_v18 = vld [vmem:[%s12328_s12] sm:$0xff] }
0x1331   : > { %v3677_v21 = vadd.f32 %v3674_v19, %v11533_v55  ;;  %v3955_v55 = vrot.slane %v3947_v23, 1 }
0x1333   : > { %v3682_v22 = vsel %vm1754_vm7, %v3677_v21, 0.0 }
0x1334   : > { %3683 = vadd.xlane.f32.xlu0 %v3682_v22  ;;  %v8680_v22 = vld [vmem:[#allocation6] ss:$0 sm:$0xff] }
0x134a   : > { %3958 = vrot.lane.b32.xlu0 %v3947_v23, %s12355_s7  ;;  %s12357_s7 = sld [smem:[#allocation64_spill]] }
0x1350   : > { %s12358_s27 = smov %s12357_s7 }
0x13c1   : > { %v3684_v25 = vpop.xlane.xlu0 %3683 }
0x13c2   : > { %v3685_v26 = vmul.f32 0.03125, %v3684_v25 }
0x13c4   : > { %v3686_v27 = vsub.f32 %v3677_v21, %v3685_v26 }
0x13c5   : > { %v3959_v56 = vpop.permute.xlu0 %3958 }
0x13c6   : > { %v3687_v28 = vmul.f32 %v3686_v27, %v3686_v27  ;;  %v3965_v60 = vsel %vm1654_vm4, %v3952_v50, %v3959_v56 }
0x13c8   : > { %v3688_v29 = vsel %vm1754_vm7, %v3687_v28, 0.0 }
0x13c9   : > { %3689 = vadd.xlane.f32.xlu1 %v3688_v29 }
0x13da   : > { %3962 = vrot.lane.b32.xlu1 %v3955_v55, %s12351_s25 }
0x1456   : > { %v3690_v45 = vpop.xlane.xlu1 %3689 }
0x1457   : > { %v3691_v46 = vmul.f32 0.03125, %v3690_v45 }
0x1459   : > { %v3692_v47 = vadd.f32 1e-05, %v3691_v46 }
0x145a   : > { %v3963_v61 = vpop.permute.xlu1 %3962 }
0x145b   : > { %10043 = vrsqrt.f32 %v3692_v47  ;;  %v3966_v24 = vsel %vm1656_vm5, %v3965_v60, %v3963_v61 }
0x1465   : > { %v10044_v48 = vpop.eup %10043 }
0x1466   : > { %v3694_v51 = vmul.f32 %v10044_v48, %v3686_v27 }
0x1468   : > { %v3701_v57 = vmul.f32 %v8651_v49, %v3694_v51 }
0x146a   : > { %v11649_v59 = vadd.f32 %v8652_v54, %v3701_v57 }
0x146c   : > { %9201 = vmatmul.mubr.msk.f32.vlgmr.msra.gmra.mrb[24].mxu0 %vm1754_vm7, %v11649_v59 }
0x146d   : > { %9637 = vmatpush3.bf16.msk.msra.mxu0 %vm11376_vm3, %v9635_v58  ;;  %9226 = vmatprep.mubr.msk.f32.mxu0 %vm10777_vm1, %v10778_v1 }
0x146e   : > { %9638 = vmatprep.subr.bf16.mxu0 %v10776_v0 }
0x1470   : > { %9227 = vmatmul.mubr.msk.f32.vlgmr.msra.gmra.mrb[26].mxu0 %vm1664_vm6, %v3966_v24 }
0x1471   : > { %9237 = vmatprep.mubr.msk.f32.mxu0 %vm10777_vm1, %v10778_v1  ;;  %9640 = vmatpush3.bf16.msra.mxu0 %v9639_v5 }
0x1472   : > { %9641 = vmatprep.subr.bf16.mxu0 %v10776_v0 }
0x1475   : > { %9643 = vmatpush3.bf16.msra.mxu0 %v9642_v8 }
0x1476   : > { %9240 = vmatprep.subr.mxu0 %v10778_v1 }
0x153f   : > { %v3791_v10 = vpop.f32.mrb[24].mxu0 }
0x1540   : > { %v3792_v11 = vadd.f32 %v8658_v9, %v3791_v10  ;;  %v9202_v12 = vpop.f32.mrb[25].mxu0 }
0x1542   : > { %v3795_v14 = vmax.f32 %v3792_v11, 0.0 }
0x1543   : > { %v4045_v15 = vpop.f32.mrb[26].mxu0 }
0x1544   : > { %v4046_v16 = vadd.f32 %v8677_v13, %v4045_v15  ;;  %9220 = vmatmul.mubr.msk.f32.vlgmr.msra.gmra.mrb[22].mxu1 %vm2723_vm10, %v3795_v14  ;;  %v9228_v17 = vpop.f32.mrb[27].mxu0 }
0x1545   : > { %9247 = vmatprep.mubr.msk.f32.mxu1 %vm10777_vm1, %v10778_v1 }
0x1546   : > { %v11677_v19 = vadd.f32 %v10127_v18, %v4046_v16 }
0x1548   : > { %9238 = vmatmul.mubr.msk.f32.vlgmr.msra.gmra.mrb[28].mxu0 %vm1754_vm7, %v11677_v19 }
0x1549   : > { %9242 = vmatprep.mubr.msk.f32.mxu0 %vm10777_vm1, %v10778_v1 }
0x1617   : > { %v11683_v20 = vpop.f32.mrb[22].mxu1 }
0x1618   : > { %v9221_v21 = vpop.f32.mrb[23].mxu1 }
0x161b   : > { %v4130_v23 = vpop.f32.mrb[28].mxu0 }
0x161c   : > { %v11685_v25 = vadd.f32 %v8680_v22, %v4130_v23  ;;  %v9239_v26 = vpop.f32.mrb[29].mxu0 }
0x161e   : > { %4301 = vrot.lane.b32.xlu1 %v11685_v25, %s12340_s4  ;;  %4135 = vrot.lane.b32.xlu0 %v11685_v25, %s12341_s6 }
0x1622   : > { %4467 = vrot.lane.b32.xlu1 %v11685_v25, %s12345_s17  ;;  %4299 = vrot.lane.b32.xlu0 %v11685_v25, %s12343_s14 }
0x1626   : > { %4633 = vrot.lane.b32.xlu1 %v11685_v25, %s12346_s19  ;;  %4465 = vrot.lane.b32.xlu0 %v11685_v25, %s12342_s13 }
0x162a   : > { %4631 = vrot.lane.b32.xlu0 %v11685_v25, %s12344_s16 }
0x1690   : > { %v4302_v27 = vpop.permute.xlu1 %4301  ;;  %v4136_v28 = vpop.permute.xlu0 %4135 }
0x1691   : > { %9241 = vmatpush3.xpose.msk.msra.mxu0 %vm1656_vm5, %v4136_v28  ;;  %v4813_v28 = vld [vmem:[%s12358_s27 + $0x8] sm:$0xff] }
0x1692   : > { %9250 = vmatprep.subr.mxu0 %v10778_v1 }
0x1694   : > { %9243 = vmatmul.mubr.msk.f32.vlgmr.msra.gmra.mrb[30].mxu0 %vm1656_vm5, %v11685_v25  ;;  %v4300_v29 = vpop.permute.xlu0 %4299  ;;  %v4468_v55 = vpop.permute.xlu1 %4467 }
0x1695   : > { %9251 = vmatpush3.xpose.msk.msra.mxu0 %vm1656_vm5, %v4302_v27  ;;  %9252 = vmatprep.mubr.msk.f32.mxu0 %vm10777_vm1, %v10778_v1  ;;  %v4812_v27 = vld [vmem:[%s12357_s7] sm:$0xff]  ;;  %s12359_s7 = sld [smem:[#allocation70_spill]] }
0x1696   : > { %9260 = vmatprep.subr.mxu0 %v10778_v1 }
0x1698   : > { %9253 = vmatmul.mubr.msk.f32.vlgmr.msra.gmra.mrb[32].mxu0 %vm1656_vm5, %v4300_v29  ;;  %v4466_v30 = vpop.permute.xlu0 %4465  ;;  %v4634_v31 = vpop.permute.xlu1 %4633  ;;  %v9645_v29 = vpack.c.bf16 %v4813_v28, %v4812_v27 }
0x1699   : > { %9261 = vmatpush3.xpose.msk.msra.mxu0 %vm1656_vm5, %v4468_v55  ;;  %9262 = vmatprep.mubr.msk.f32.mxu0 %vm10777_vm1, %v10778_v1 }
0x169a   : > { %9270 = vmatprep.subr.mxu0 %v10778_v1 }
0x169b   : > { %s12360_s1 = smov %s12359_s7 }
0x169c   : > { %9263 = vmatmul.mubr.msk.f32.vlgmr.msra.gmra.mrb[34].mxu0 %vm1656_vm5, %v4466_v30  ;;  %v4632_v32 = vpop.permute.xlu0 %4631  ;;  %v5013_v27 = vld [vmem:[%s12360_s1 + $0x18] sm:$0xff] }
0x169d   : > { %9271 = vmatpush3.xpose.msk.msra.mxu0 %vm1656_vm5, %v4634_v31  ;;  %9272 = vmatprep.mubr.msk.f32.mxu0 %vm10777_vm1, %v10778_v1 }
0x169e   : > { %9644 = vmatprep.subr.bf16.mxu0 %v10776_v0 }
0x16a0   : > { %9273 = vmatmul.mubr.msk.f32.vlgmr.msra.gmra.mrb[36].mxu0 %vm1656_vm5, %v4632_v32 }
0x16a1   : > { %9288 = vmatprep.mubr.msk.f32.mxu0 %vm10777_vm1, %v10778_v1  ;;  %9646 = vmatpush3.bf16.msra.mxu0 %v9645_v29  ;;  %v4928_v29 = vld [vmem:[%s12361_s2 + $0x10] sm:$0xff] }
0x16a2   : > { %9647 = vmatprep.subr.bf16.mxu0 %v10776_v0 }
0x1767   : > { %v4207_v33 = vpop.f32.mrb[30].mxu0 }
0x1768   : > { %v4211_v34 = vmul.f32 0.35355338, %v4207_v33  ;;  %v9244_v35 = vpop.f32.mrb[31].mxu0  ;;  %v4814_v33 = vld [vmem:[%s12358_s27 + $0x10] sm:$0xff] }
0x176a   : > { %v4212_v36 = vsel %vm1656_vm5, %v4211_v34, -inf }
0x176b   : > { %4213 = vmax.xlane.f32.xlu1 %v4212_v36  ;;  %v4373_v37 = vpop.f32.mrb[32].mxu0 }
0x176c   : > { %v4377_v38 = vmul.f32 0.35355338, %v4373_v37  ;;  %v9254_v39 = vpop.f32.mrb[33].mxu0 }
0x176e   : > { %v4378_v40 = vsel %vm1656_vm5, %v4377_v38, -inf }
0x176f   : > { %4379 = vmax.xlane.f32.xlu0 %v4378_v40  ;;  %v4539_v41 = vpop.f32.mrb[34].mxu0  ;;  %v8669_v40 = vld [vmem:[%s12337_s18 + $0x1] ss:$0 sm:$0xff] }
0x1770   : > { %v4543_v42 = vmul.f32 0.35355338, %v4539_v41  ;;  %v9264_v43 = vpop.f32.mrb[35].mxu0  ;;  %v3883_v41 = vadd.f32 %v8669_v40, %v11683_v20 }
0x1772   : > { %v4544_v44 = vsel %vm1656_vm5, %v4543_v42, -inf }
0x1773   : > { %4545 = vmax.xlane.f32.xlu0 %v4544_v44  ;;  %v4705_v45 = vpop.f32.mrb[36].mxu0 }
0x1774   : > { %v4709_v46 = vmul.f32 0.35355338, %v4705_v45  ;;  %v9274_v47 = vpop.f32.mrb[37].mxu0 }
0x1776   : > { %v4710_v48 = vsel %vm1656_vm5, %v4709_v46, -inf }
0x1777   : > { %4711 = vmax.xlane.f32.xlu1 %v4710_v48 }
0x1788   : > { %4389 = vrot.lane.b32.xlu1 %v11685_v25, %s12347_s21 }
0x17f8   : > { %v4214_v49 = vpop.xlane.xlu1 %4213 }
0x17f9   : > { %v4215_v50 = vsub.f32 %v4211_v34, %v4214_v49  ;;  %v4815_v34 = vld [vmem:[%s12358_s27 + $0x18] sm:$0xff] }
0x17fa   : > { %v9648_v35 = vpack.c.bf16 %v4815_v34, %v4814_v33 }
0x17fb   : > { %v4216_v51 = vmul.f32 1.442695, %v4215_v50 }
0x17fc   : > { %v4380_v52 = vpop.xlane.xlu0 %4379  ;;  %9649 = vmatpush3.bf16.msra.mxu0 %v9648_v35 }
0x17fd   : > { %10045 = vpow2.f32 %v4216_v51  ;;  %v4381_v53 = vsub.f32 %v4377_v38, %v4380_v52  ;;  %9656 = vmatprep.subr.bf16.mxu0 %v10776_v0 }
0x17ff   : > { %v4382_v54 = vmul.f32 1.442695, %v4381_v53 }
0x1800   : > { %v4546_v4 = vpop.xlane.xlu0 %4545 }
0x1801   : > { %10047 = vpow2.f32 %v4382_v54  ;;  %v4547_v2 = vsub.f32 %v4543_v42, %v4546_v4  ;;  %v3886_v42 = vadd.f32 %v3883_v41, %v11649_v59 }
0x1803   : > { %v4548_v5 = vmul.f32 1.442695, %v4547_v2  ;;  %v3891_v43 = vsel %vm1754_vm7, %v3886_v42, 0.0 }
0x1804   : > { %v4712_v56 = vpop.xlane.xlu1 %4711 }
0x1805   : > { %v4713_v57 = vsub.f32 %v4709_v46, %v4712_v56 }
0x1807   : > { %v10046_v58 = vpop.eup %10045  ;;  %v4714_v60 = vmul.f32 1.442695, %v4713_v57 }
0x1808   : > { %v4218_v61 = vsel %vm1656_vm5, %v10046_v58, 0.0  ;;  %v4390_v8 = vpop.permute.xlu1 %4389 }
0x1809   : > { %10049 = vpow2.f32 %v4714_v60  ;;  %4219 = vadd.xlane.f32.xlu0 %v4218_v61  ;;  %v8694_v61 = vld [vmem:[#allocation7] ss:$0 sm:$0xff] }
0x180a   : > { %10051 = vpow2.f32 %v4548_v5 }
0x180b   : > { %v10048_v24 = vpop.eup %10047 }
0x180c   : > { %v4384_v62 = vsel %vm1656_vm5, %v10048_v24, 0.0 }
0x180d   : > { %4385 = vadd.xlane.f32.xlu1 %v4384_v62 }
0x1813   : > { %v10050_v63 = vpop.eup %10049 }
0x1814   : > { %v4716_v3 = vsel %vm1656_vm5, %v10050_v63, 0.0  ;;  %v10052_v6 = vpop.eup %10051 }
0x1815   : > { %4717 = vadd.xlane.f32.xlu1 %v4716_v3  ;;  %v4550_v7 = vsel %vm1656_vm5, %v10052_v6, 0.0 }
0x181f   : > { %4223 = vrot.lane.b32.xlu0 %v11685_v25, %s12348_s22 }
0x1826   : > { %4555 = vrot.lane.b32.xlu1 %v11685_v25, %s12349_s23 }
0x183e   : > { %4551 = vadd.xlane.f32.xlu0 %v4550_v7 }
0x1854   : > { %4721 = vrot.lane.b32.xlu0 %v11685_v25, %s12350_s24 }
0x1896   : > { %v4220_v9 = vpop.xlane.xlu0 %4219 }
0x1897   : > { %10053 = vrcp.f32 %v4220_v9 }
0x189a   : > { %v4224_v10 = vpop.permute.xlu0 %4223  ;;  %v4386_v11 = vpop.xlane.xlu1 %4385 }
0x189b   : > { %10055 = vrcp.f32 %v4386_v11  ;;  %9246 = vmatpush3.msra.mxu1 %v4224_v10 }
0x189c   : > { %9255 = vmatprep.subr.mxu1 %v10778_v1 }
0x18a1   : > { %v10054_v12 = vpop.eup %10053 }
0x18a2   : > { %v4222_v13 = vmul.f32 %v10054_v12, %v10046_v58  ;;  %v4718_v14 = vpop.xlane.xlu1 %4717 }
0x18a4   : > { %9248 = vmatmul.mubr.msk.f32.vlgmr.msra.gmra.mrb[24].mxu1 %vm1656_vm5, %v4222_v13 }
0x18a5   : > { %v10056_v15 = vpop.eup %10055  ;;  %9256 = vmatpush3.msra.mxu1 %v4390_v8  ;;  %9257 = vmatprep.mubr.msk.f32.mxu1 %vm10777_vm1, %v10778_v1 }
0x18a6   : > { %v4388_v16 = vmul.f32 %v10056_v15, %v10048_v24  ;;  %v4556_v17 = vpop.permute.xlu1 %4555  ;;  %9265 = vmatprep.subr.mxu1 %v10778_v1  ;;  %v8673_v24 = vld [vmem:[%s12338_s9 + $0x1] ss:$0 sm:$0xff]  ;;  %s12363_s9 = sld [smem:[#allocation61_spill]] }
0x18a8   : > { %9258 = vmatmul.mubr.msk.f32.vlgmr.msra.gmra.mrb[26].mxu1 %vm1656_vm5, %v4388_v16 }
0x18a9   : > { %9266 = vmatpush3.msra.mxu1 %v4556_v17  ;;  %9267 = vmatprep.mubr.msk.f32.mxu1 %vm10777_vm1, %v10778_v1  ;;  %v5010_v17 = vld [vmem:[%s12359_s7] sm:$0xff] }
0x18aa   : > { %9275 = vmatprep.subr.mxu1 %v10778_v1 }
0x18ac   : > { %v8676_v40 = vld [vmem:[%s12363_s9] ss:$0 sm:$0xff] }
0x18cb   : > { %v4552_v18 = vpop.xlane.xlu0 %4551 }
0x18cc   : > { %10057 = vrcp.f32 %v4552_v18  ;;  %v5011_v18 = vld [vmem:[%s12360_s1 + $0x8] sm:$0xff] }
0x18cd   : > { %10059 = vrcp.f32 %v4718_v14 }
0x18cf   : > { %v4722_v25 = vpop.permute.xlu0 %4721 }
0x18d6   : > { %v10058_v21 = vpop.eup %10057 }
0x18d7   : > { %v4554_v22 = vmul.f32 %v10058_v21, %v10052_v6  ;;  %v10060_v23 = vpop.eup %10059  ;;  %v9657_v21 = vpack.c.bf16 %v5011_v18, %v5010_v17 }
0x18d8   : > { %v4720_v26 = vmul.f32 %v10060_v23, %v10050_v63  ;;  %v8674_v63 = vld [vmem:[%s12339_s3 + $0x1] ss:$0 sm:$0xff]  ;;  %v4927_v23 = vld [vmem:[%s12361_s2 + $0x8] sm:$0xff]  ;;  %s12362_s3 = sld [smem:[#allocation60_spill]] }
0x18d9   : > { %9268 = vmatmul.mubr.msk.f32.vlgmr.msra.gmra.mrb[28].mxu1 %vm1656_vm5, %v4554_v22  ;;  %v4926_v22 = vld [vmem:[%s12361_s2] sm:$0xff] }
0x18da   : > { %9276 = vmatpush3.msra.mxu1 %v4722_v25  ;;  %9277 = vmatprep.mubr.msk.f32.mxu1 %vm10777_vm1, %v10778_v1  ;;  %v5012_v25 = vld [vmem:[%s12360_s1 + $0x10] sm:$0xff] }
0x18db   : > { %9650 = vmatprep.subr.bf16.mxu1 %v10776_v0  ;;  %v9660_v28 = vpack.c.bf16 %v5013_v27, %v5012_v25 }
0x18dd   : > { %9278 = vmatmul.mubr.msk.f32.vlgmr.msra.gmra.mrb[30].mxu1 %vm1656_vm5, %v4720_v26  ;;  %v9651_v26 = vpack.c.bf16 %v4927_v23, %v4926_v22 }
0x18de   : > { %9299 = vmatprep.mubr.msk.f32.mxu1 %vm10777_vm1, %v10778_v1 }
0x18df   : > { %9652 = vmatpush3.bf16.msra.mxu1 %v9651_v26 }
0x18e0   : > { %9653 = vmatprep.subr.bf16.mxu1 %v10776_v0 }
0x1977   : > { %v4295_v55 = vpop.f32.mrb[24].mxu1 }
0x1978   : > { %v9249_v30 = vpop.f32.mrb[25].mxu1 }
0x197b   : > { %v4461_v31 = vpop.f32.mrb[26].mxu1 }
0x197c   : > { %4798 = vrot.lane.b32.xlu1 %v4461_v31, %s12351_s25  ;;  %v9259_v32 = vpop.f32.mrb[27].mxu1 }
0x19ac   : > { %v4627_v36 = vpop.f32.mrb[28].mxu1 }
0x19ad   : > { %4802 = vrot.lane.b32.xlu0 %v4627_v36, %s12352_s26  ;;  %v9269_v37 = vpop.f32.mrb[29].mxu1 }
0x19b0   : > { %v4793_v38 = vpop.f32.mrb[30].mxu1 }
0x19b1   : > { %4806 = vrot.lane.b32.xlu1 %v4793_v38, %s12353_s29  ;;  %v9279_v39 = vpop.f32.mrb[31].mxu1  ;;  %v8675_v38 = vld [vmem:[%s12362_s3] ss:$0 sm:$0xff]  ;;  %s12364_s3 = sld [smem:[#allocation78_spill]] }
0x19cc   : > { %3892 = vadd.xlane.f32.xlu0 %v3891_v43  ;;  %v8696_v43 = vld [vmem:[#allocation9] ss:$0 sm:$0xff] }
0x19ee   : > { %v4799_v44 = vpop.permute.xlu1 %4798 }
0x19ef   : > { %v4809_v46 = vsel %vm1656_vm5, %v4295_v55, %v4799_v44  ;;  %v4929_v55 = vld [vmem:[%s12361_s2 + $0x18] sm:$0xff] }
0x19f0   : > { %v9654_v30 = vpack.c.bf16 %v4929_v55, %v4928_v29 }
0x19f2   : > { %9655 = vmatpush3.bf16.msra.mxu1 %v9654_v30 }
0x19f3   : > { %9313 = vmatprep.subr.mxu1 %v10778_v1 }
0x1a1f   : > { %v4803_v45 = vpop.permute.xlu0 %4802 }
0x1a20   : > { %v4810_v47 = vsel %vm2504_vm8, %v4809_v46, %v4803_v45  ;;  %v8697_v46 = vld [vmem:[#allocation10] ss:$0 sm:$0xff] }
0x1a23   : > { %v4807_v48 = vpop.permute.xlu1 %4806 }
0x1a24   : > { %v4811_v49 = vsel %vm2506_vm9, %v4810_v47, %v4807_v48 }
0x1a25   : > { %9289 = vmatmul.mubr.msk.f32.vlgmr.msra.gmra.mrb[38].mxu0 %vm1754_vm7, %v4811_v49  ;;  %v8700_v49 = vld [vmem:[#allocation13] ss:$0 sm:$0xff] }
0x1a26   : > { %9310 = vmatprep.mubr.msk.f32.mxu0 %vm10777_vm1, %v10778_v1  ;;  %9658 = vmatpush3.bf16.msra.mxu0 %v9657_v21 }
0x1a27   : > { %9659 = vmatprep.subr.bf16.mxu0 %v10776_v0 }
0x1a2a   : > { %9661 = vmatpush3.bf16.msra.mxu0 %v9660_v28 }
0x1a2b   : > { %9323 = vmatprep.subr.mxu0 %v10778_v1 }
0x1a59   : > { %v3893_v20 = vpop.xlane.xlu0 %3892 }
0x1a5a   : > { %v3894_v59 = vmul.f32 0.03125, %v3893_v20 }
0x1a5c   : > { %v3895_v50 = vsub.f32 %v3886_v42, %v3894_v59 }
0x1a5e   : > { %v3896_v51 = vmul.f32 %v3895_v50, %v3895_v50 }
0x1a60   : > { %v3897_v52 = vsel %vm1754_vm7, %v3896_v51, 0.0  ;;  %v8698_v51 = vld [vmem:[#allocation12] ss:$0 sm:$0xff] }
0x1a61   : > { %3898 = vadd.xlane.f32.xlu1 %v3897_v52 }
0x1aee   : > { %v3899_v53 = vpop.xlane.xlu1 %3898 }
0x1aef   : > { %v3900_v54 = vmul.f32 0.03125, %v3899_v53 }
0x1af1   : > { %v3901_v56 = vadd.f32 1e-05, %v3900_v54 }
0x1af3   : > { %10061 = vrsqrt.f32 %v3901_v56 }
0x1af8   : > { %v4892_v57 = vpop.f32.mrb[38].mxu0 }
0x1af9   : > { %v9290_v58 = vpop.f32.mrb[39].mxu0  ;;  %v4893_v3 = vadd.f32 %v8694_v61, %v4892_v57 }
0x1afb   : > { %v4896_v6 = vadd.f32 %v4893_v3, %v11677_v19 }
0x1afd   : > { %v10062_v60 = vpop.eup %10061  ;;  %v4899_v7 = vsel %vm1754_vm7, %v4896_v6, 0.0 }
0x1afe   : > { %v3903_v62 = vmul.f32 %v10062_v60, %v3895_v50 }
0x1b00   : > { %v3910_v4 = vmul.f32 %v8673_v24, %v3903_v62 }
0x1b02   : > { %v3917_v2 = vadd.f32 %v8674_v63, %v3910_v4 }
0x1b04   : > { %v3920_v5 = vsel %vm1754_vm7, %v3917_v2, 0.0 }
0x1b05   : > { %3921 = vadd.xlane.f32.xlu0 %v3920_v5 }
0x1b09   : > { %4900 = vadd.xlane.f32.xlu0 %v4899_v7 }
0x1b92   : > { %v3922_v8 = vpop.xlane.xlu0 %3921 }
0x1b93   : > { %v3923_v9 = vmul.f32 0.03125, %v3922_v8 }
0x1b95   : > { %v3924_v10 = vsub.f32 %v3917_v2, %v3923_v9 }
0x1b96   : > { %v4901_v11 = vpop.xlane.xlu0 %4900 }
0x1b97   : > { %v4902_v12 = vmul.f32 0.03125, %v4901_v11  ;;  %v3925_v13 = vmul.f32 %v3924_v10, %v3924_v10 }
0x1b99   : > { %v4903_v14 = vsub.f32 %v4896_v6, %v4902_v12  ;;  %v3926_v15 = vsel %vm1754_vm7, %v3925_v13, 0.0 }
0x1b9a   : > { %3927 = vadd.xlane.f32.xlu1 %v3926_v15 }
0x1b9b   : > { %v4904_v19 = vmul.f32 %v4903_v14, %v4903_v14 }
0x1b9d   : > { %v4905_v16 = vsel %vm1754_vm7, %v4904_v19, 0.0 }
0x1b9e   : > { %4906 = vadd.xlane.f32.xlu0 %v4905_v16 }
0x1c27   : > { %v3928_v31 = vpop.xlane.xlu1 %3927 }
0x1c28   : > { %v3929_v32 = vmul.f32 0.03125, %v3928_v31 }
0x1c2a   : > { %v3930_v33 = vadd.f32 1e-05, %v3929_v32 }
0x1c2b   : > { %v4907_v34 = vpop.xlane.xlu0 %4906 }
0x1c2c   : > { %10063 = vrsqrt.f32 %v3930_v33  ;;  %v4908_v35 = vmul.f32 0.03125, %v4907_v34 }
0x1c2e   : > { %v4909_v36 = vadd.f32 1e-05, %v4908_v35 }
0x1c30   : > { %10065 = vrsqrt.f32 %v4909_v36 }
0x1c36   : > { %v10064_v37 = vpop.eup %10063 }
0x1c37   : > { %v3932_v39 = vmul.f32 %v10064_v37, %v3924_v10 }
0x1c39   : > { %v3939_v41 = vmul.f32 %v8675_v38, %v3932_v39 }
0x1c3a   : > { %v10066_v42 = vpop.eup %10065 }
0x1c3b   : > { %v4911_v44 = vmul.f32 %v10066_v42, %v4903_v14  ;;  %v11795_v45 = vadd.f32 %v8676_v40, %v3939_v41 }
0x1c3d   : > { %9311 = vmatmul.mubr.msk.f32.vlgmr.msra.gmra.mrb[40].mxu0 %vm1754_vm7, %v11795_v45  ;;  %v4918_v47 = vmul.f32 %v8696_v43, %v4911_v44 }
0x1c3e   : > { %9325 = vmatprep.mubr.msk.f32.mxu0 %vm10777_vm1, %v10778_v1 }
0x1c3f   : > { %v11801_v48 = vadd.f32 %v8697_v46, %v4918_v47 }
0x1c41   : > { %9300 = vmatmul.mubr.msk.f32.vlgmr.msra.gmra.mrb[32].mxu1 %vm1754_vm7, %v11801_v48 }
0x1c42   : > { %9315 = vmatprep.mubr.msk.f32.mxu1 %vm10777_vm1, %v10778_v1 }
0x1d10   : > { %v5090_v20 = vpop.f32.mrb[40].mxu0 }
0x1d11   : > { %v11807_v59 = vadd.f32 %v8700_v49, %v5090_v20  ;;  %v9312_v50 = vpop.f32.mrb[41].mxu0 }
0x1d13   : > { %5260 = vrot.lane.b32.xlu1 %v11807_v59, %s12343_s14  ;;  %9314 = vmatpush3.xpose.msk.msra.mxu1 %vm1656_vm5, %v11807_v59 }
0x1d14   : > { %v5006_v52 = vpop.f32.mrb[32].mxu1  ;;  %9318 = vmatprep.subr.mxu1 %v10778_v1 }
0x1d15   : > { %v5007_v53 = vadd.f32 %v8698_v51, %v5006_v52  ;;  %v9301_v54 = vpop.f32.mrb[33].mxu1 }
0x1d17   : > { %5426 = vrot.lane.b32.xlu1 %v11807_v59, %s12342_s13  ;;  %5258 = vrot.lane.b32.xlu0 %v5007_v53, %s12343_s14 }
0x1d18   : > { %9316 = vmatmul.mubr.msk.f32.vlgmr.msra.gmra.mrb[34].mxu1 %vm1656_vm5, %v5007_v53 }
0x1d19   : > { %9320 = vmatprep.mubr.msk.f32.mxu1 %vm10777_vm1, %v10778_v1 }
0x1d1b   : > { %5424 = vrot.lane.b32.xlu1 %v5007_v53, %s12342_s13  ;;  %5592 = vrot.lane.b32.xlu0 %v11807_v59, %s12344_s16 }
0x1d1f   : > { %5590 = vrot.lane.b32.xlu1 %v5007_v53, %s12344_s16 }
0x1d85   : > { %v5261_v56 = vpop.permute.xlu1 %5260 }
0x1d86   : > { %9324 = vmatpush3.xpose.msk.msra.mxu0 %vm1656_vm5, %v5261_v56  ;;  %v5771_v56 = vld [vmem:[#allocation15] sm:$0xff] }
0x1d87   : > { %9333 = vmatprep.subr.mxu0 %v10778_v1 }
0x1d89   : > { %v5427_v57 = vpop.permute.xlu1 %5426  ;;  %v5259_v58 = vpop.permute.xlu0 %5258 }
0x1d8a   : > { %9326 = vmatmul.mubr.msk.f32.vlgmr.msra.gmra.mrb[42].mxu0 %vm1656_vm5, %v5259_v58 }
0x1d8b   : > { %9334 = vmatpush3.xpose.msk.msra.mxu0 %vm1656_vm5, %v5427_v57  ;;  %9335 = vmatprep.mubr.msk.f32.mxu0 %vm10777_vm1, %v10778_v1  ;;  %v5772_v57 = vld [vmem:[#allocation15 + $0x8] sm:$0xff] }
0x1d8c   : > { %9343 = vmatprep.subr.mxu0 %v10778_v1  ;;  %v9663_v58 = vpack.c.bf16 %v5772_v57, %v5771_v56  ;;  %v8720_v56 = vld [vmem:[#allocation24] ss:$0 sm:$0xff] }
0x1d8d   : > { %v5425_v60 = vpop.permute.xlu1 %5424  ;;  %v5593_v61 = vpop.permute.xlu0 %5592 }
0x1d8e   : > { %9336 = vmatmul.mubr.msk.f32.vlgmr.msra.gmra.mrb[44].mxu0 %vm1656_vm5, %v5425_v60  ;;  %v5773_v60 = vld [vmem:[#allocation15 + $0x10] sm:$0xff] }
0x1d8f   : > { %9344 = vmatpush3.xpose.msk.msra.mxu0 %vm1656_vm5, %v5593_v61  ;;  %9345 = vmatprep.mubr.msk.f32.mxu0 %vm10777_vm1, %v10778_v1  ;;  %v5774_v61 = vld [vmem:[#allocation15 + $0x18] sm:$0xff] }
0x1d90   : > { %9662 = vmatprep.subr.bf16.mxu0 %v10776_v0 }
0x1d91   : > { %v5591_v24 = vpop.permute.xlu1 %5590 }
0x1d92   : > { %9346 = vmatmul.mubr.msk.f32.vlgmr.msra.gmra.mrb[46].mxu0 %vm1656_vm5, %v5591_v24  ;;  %v9666_v24 = vpack.c.bf16 %v5774_v61, %v5773_v60 }
0x1d93   : > { %9361 = vmatprep.mubr.msk.f32.mxu0 %vm10777_vm1, %v10778_v1  ;;  %9664 = vmatpush3.bf16.msra.mxu0 %v9663_v58 }
0x1d94   : > { %9665 = vmatprep.subr.bf16.mxu0 %v10776_v0 }
0x1d97   : > { %9667 = vmatpush3.bf16.msra.mxu0 %v9666_v24 }
0x1d98   : > { %9674 = vmatprep.subr.bf16.mxu0 %v10776_v0 }
0x1deb   : > { %v5166_v62 = vpop.f32.mrb[34].mxu1 }
0x1dec   : > { %v5170_v63 = vmul.f32 0.35355338, %v5166_v62  ;;  %v9317_v3 = vpop.f32.mrb[35].mxu1 }
0x1dee   : > { %v5171_v4 = vsel %vm1656_vm5, %v5170_v63, -inf }
0x1def   : > { %5172 = vmax.xlane.f32.xlu0 %v5171_v4 }
0x1e5d   : > { %v5332_v2 = vpop.f32.mrb[42].mxu0 }
0x1e5e   : > { %v5336_v5 = vmul.f32 0.35355338, %v5332_v2  ;;  %v9327_v6 = vpop.f32.mrb[43].mxu0 }
0x1e60   : > { %v5337_v7 = vsel %vm1656_vm5, %v5336_v5, -inf }
0x1e61   : > { %5338 = vmax.xlane.f32.xlu1 %v5337_v7  ;;  %v5498_v8 = vpop.f32.mrb[44].mxu0 }
0x1e62   : > { %v5502_v9 = vmul.f32 0.35355338, %v5498_v8  ;;  %v9337_v10 = vpop.f32.mrb[45].mxu0 }
0x1e64   : > { %v5503_v11 = vsel %vm1656_vm5, %v5502_v9, -inf }
0x1e65   : > { %v5664_v12 = vpop.f32.mrb[46].mxu0  ;;  %5504 = vmax.xlane.f32.xlu0 %v5503_v11 }
0x1e66   : > { %v5668_v13 = vmul.f32 0.35355338, %v5664_v12  ;;  %v9347_v14 = vpop.f32.mrb[47].mxu0  ;;  %v8714_v12 = vld [vmem:[#allocation16] ss:$0 sm:$0xff] }
0x1e68   : > { %v5669_v15 = vsel %vm1656_vm5, %v5668_v13, -inf }
0x1e69   : > { %5670 = vmax.xlane.f32.xlu0 %v5669_v15 }
0x1e72   : > { %5182 = vrot.lane.b32.xlu1 %v11807_v59, %s12341_s6 }
0x1e7c   : > { %v5173_v19 = vpop.xlane.xlu0 %5172 }
0x1e7d   : > { %v5174_v16 = vsub.f32 %v5170_v63, %v5173_v19 }
0x1e7f   : > { %v5175_v17 = vmul.f32 1.442695, %v5174_v16 }
0x1e81   : > { %10067 = vpow2.f32 %v5175_v17 }
0x1e8b   : > { %v10068_v18 = vpop.eup %10067 }
0x1e8c   : > { %v5177_v21 = vsel %vm1656_vm5, %v10068_v18, 0.0 }
0x1e96   : > { %5178 = vadd.xlane.f32.xlu1 %v5177_v21 }
0x1eee   : > { %v5339_v22 = vpop.xlane.xlu1 %5338 }
0x1eef   : > { %v5340_v23 = vsub.f32 %v5336_v5, %v5339_v22 }
0x1ef1   : > { %v5341_v25 = vmul.f32 1.442695, %v5340_v23 }
0x1ef2   : > { %v5183_v26 = vpop.permute.xlu1 %5182  ;;  %v5505_v27 = vpop.xlane.xlu0 %5504 }
0x1ef3   : > { %10069 = vpow2.f32 %v5341_v25  ;;  %v5506_v28 = vsub.f32 %v5502_v9, %v5505_v27  ;;  %9319 = vmatpush3.msra.mxu1 %v5183_v26  ;;  %v5885_v25 = vld [vmem:[#allocation21] sm:$0xff]  ;;  %v5886_v26 = vld [vmem:[#allocation21 + $0x8] sm:$0xff] }
0x1ef4   : > { %9328 = vmatprep.subr.mxu1 %v10778_v1  ;;  %v9669_v27 = vpack.c.bf16 %v5886_v26, %v5885_v25 }
0x1ef5   : > { %v5507_v29 = vmul.f32 1.442695, %v5506_v28  ;;  %v5888_v28 = vld [vmem:[#allocation21 + $0x18] sm:$0xff] }
0x1ef6   : > { %v5671_v55 = vpop.xlane.xlu0 %5670 }
0x1ef7   : > { %10071 = vpow2.f32 %v5507_v29  ;;  %v5672_v30 = vsub.f32 %v5668_v13, %v5671_v55  ;;  %v5970_v55 = vld [vmem:[%s12364_s3] sm:$0xff] }
0x1ef9   : > { %v5673_v31 = vmul.f32 1.442695, %v5672_v30  ;;  %v5971_v30 = vld [vmem:[%s12364_s3 + $0x8] sm:$0xff] }
0x1efb   : > { %10073 = vpow2.f32 %v5673_v31  ;;  %v5972_v31 = vld [vmem:[%s12364_s3 + $0x10] sm:$0xff] }
0x1efd   : > { %v10070_v32 = vpop.eup %10069 }
0x1efe   : > { %v5343_v33 = vsel %vm1656_vm5, %v10070_v32, 0.0 }
0x1eff   : > { %5344 = vadd.xlane.f32.xlu0 %v5343_v33  ;;  %v5973_v33 = vld [vmem:[%s12364_s3 + $0x18] sm:$0xff] }
0x1f01   : > { %v10072_v34 = vpop.eup %10071 }
0x1f02   : > { %v5509_v35 = vsel %vm1656_vm5, %v10072_v34, 0.0 }
0x1f03   : > { %5510 = vadd.xlane.f32.xlu1 %v5509_v35  ;;  %v5974_v35 = vld [vmem:[%s12364_s3 + $0x20] sm:$0xff] }
0x1f05   : > { %v10074_v36 = vpop.eup %10073 }
0x1f06   : > { %v5675_v37 = vsel %vm1656_vm5, %v10074_v36, 0.0 }
0x1f07   : > { %5676 = vadd.xlane.f32.xlu0 %v5675_v37 }
0x1f14   : > { %5514 = vrot.lane.b32.xlu1 %v11807_v59, %s12345_s17 }
0x1f18   : > { %5680 = vrot.lane.b32.xlu1 %v11807_v59, %s12346_s19 }
0x1f1d   : > { %5348 = vrot.lane.b32.xlu0 %v11807_v59, %s12340_s4 }
0x1f23   : > { %v5179_v38 = vpop.xlane.xlu1 %5178 }
0x1f24   : > { %10075 = vrcp.f32 %v5179_v38 }
0x1f2e   : > { %v10076_v39 = vpop.eup %10075 }
0x1f2f   : > { %v5181_v40 = vmul.f32 %v10076_v39, %v10068_v18 }
0x1f31   : > { %9321 = vmatmul.mubr.msk.f32.vlgmr.msra.gmra.mrb[36].mxu1 %vm1656_vm5, %v5181_v40 }
0x1f32   : > { %9330 = vmatprep.mubr.msk.f32.mxu1 %vm10777_vm1, %v10778_v1 }
0x1f8c   : > { %v5345_v41 = vpop.xlane.xlu0 %5344 }
0x1f8d   : > { %10077 = vrcp.f32 %v5345_v41 }
0x1f90   : > { %v5511_v42 = vpop.xlane.xlu1 %5510 }
0x1f91   : > { %10079 = vrcp.f32 %v5511_v42  ;;  %v8716_v42 = vld [vmem:[#allocation18] ss:$0 sm:$0xff] }
0x1f94   : > { %v5677_v43 = vpop.xlane.xlu0 %5676  ;;  %v5515_v47 = vpop.permute.xlu1 %5514 }
0x1f95   : > { %10081 = vrcp.f32 %v5677_v43 }
0x1f97   : > { %v10078_v44 = vpop.eup %10077 }
0x1f98   : > { %v5347_v46 = vmul.f32 %v10078_v44, %v10070_v32  ;;  %v5349_v49 = vpop.permute.xlu0 %5348  ;;  %v5681_v50 = vpop.permute.xlu1 %5680  ;;  %v9675_v32 = vpack.c.bf16 %v5971_v30, %v5970_v55  ;;  %v8717_v44 = vld [vmem:[#allocation19] ss:$0 sm:$0xff] }
0x1f99   : > { %9329 = vmatpush3.msra.mxu1 %v5349_v49  ;;  %v5976_v49 = vld [vmem:[%s12364_s3 + $0x30] sm:$0xff] }
0x1f9a   : > { %9331 = vmatmul.mubr.msk.f32.vlgmr.msra.gmra.mrb[38].mxu1 %vm1656_vm5, %v5347_v46  ;;  %9338 = vmatprep.subr.mxu1 %v10778_v1 }
0x1f9b   : > { %v10080_v20 = vpop.eup %10079  ;;  %9339 = vmatpush3.msra.mxu1 %v5515_v47  ;;  %9340 = vmatprep.mubr.msk.f32.mxu1 %vm10777_vm1, %v10778_v1 }
0x1f9c   : > { %v5513_v59 = vmul.f32 %v10080_v20, %v10072_v34  ;;  %9348 = vmatprep.subr.mxu1 %v10778_v1  ;;  %v9678_v34 = vpack.c.bf16 %v5973_v33, %v5972_v31  ;;  %v5977_v20 = vld [vmem:[%s12364_s3 + $0x38] sm:$0xff] }
0x1f9e   : > { %9341 = vmatmul.mubr.msk.f32.vlgmr.msra.gmra.mrb[40].mxu1 %vm1656_vm5, %v5513_v59  ;;  %v9684_v59 = vpack.c.bf16 %v5977_v20, %v5976_v49 }
0x1f9f   : > { %v10082_v51 = vpop.eup %10081  ;;  %9349 = vmatpush3.msra.mxu1 %v5681_v50  ;;  %9350 = vmatprep.mubr.msk.f32.mxu1 %vm10777_vm1, %v10778_v1  ;;  %v8718_v50 = vld [vmem:[#allocation22] ss:$0 sm:$0xff] }
0x1fa0   : > { %v5679_v52 = vmul.f32 %v10082_v51, %v10074_v36  ;;  %9668 = vmatprep.subr.bf16.mxu1 %v10776_v0  ;;  %v5975_v36 = vld [vmem:[%s12364_s3 + $0x28] sm:$0xff] }
0x1fa1   : > { %v9681_v37 = vpack.c.bf16 %v5975_v36, %v5974_v35 }
0x1fa2   : > { %9351 = vmatmul.mubr.msk.f32.vlgmr.msra.gmra.mrb[42].mxu1 %vm1656_vm5, %v5679_v52 }
0x1fa3   : > { %9372 = vmatprep.mubr.msk.f32.mxu1 %vm10777_vm1, %v10778_v1  ;;  %9670 = vmatpush3.bf16.msra.mxu1 %v9669_v27 }
0x1fa4   : > { %9671 = vmatprep.subr.bf16.mxu1 %v10776_v0 }
0x2004   : > { %v5254_v53 = vpop.f32.mrb[36].mxu1 }
0x2005   : > { %v9322_v54 = vpop.f32.mrb[37].mxu1 }
0x206d   : > { %v5420_v62 = vpop.f32.mrb[38].mxu1 }
0x206e   : > { %5757 = vrot.lane.b32.xlu0 %v5420_v62, %s12351_s25  ;;  %v9332_v63 = vpop.f32.mrb[39].mxu1 }
0x2071   : > { %v5586_v3 = vpop.f32.mrb[40].mxu1 }
0x2072   : > { %5761 = vrot.lane.b32.xlu1 %v5586_v3, %s12352_s26  ;;  %v9342_v4 = vpop.f32.mrb[41].mxu1 }
0x2075   : > { %v5752_v2 = vpop.f32.mrb[42].mxu1 }
0x2076   : > { %5765 = vrot.lane.b32.xlu0 %v5752_v2, %s12353_s29  ;;  %v9352_v5 = vpop.f32.mrb[43].mxu1 }
0x2077   : > { %v8724_v5 = vld [vmem:[%s12356_s30 + $0x20] sm:$0xff] }
0x20e0   : > { %v5758_v6 = vpop.permute.xlu0 %5757 }
0x20e1   : > { %v5768_v8 = vsel %vm1656_vm5, %v5254_v53, %v5758_v6  ;;  %v8725_v6 = vld [vmem:[%s12356_s30 + $0x28] sm:$0xff] }
0x20e4   : > { %v5762_v7 = vpop.permute.xlu1 %5761 }
0x20e5   : > { %v5769_v9 = vsel %vm2504_vm8, %v5768_v8, %v5762_v7  ;;  %v9687_v7 = vpack.c.bf16 %v8725_v6, %v8724_v5  ;;  %v8726_v8 = vld [vmem:[%s12356_s30 + $0x30] sm:$0xff] }
0x20e8   : > { %v5766_v10 = vpop.permute.xlu0 %5765 }
0x20e9   : > { %v5770_v11 = vsel %vm2506_vm9, %v5769_v9, %v5766_v10  ;;  %v8727_v9 = vld [vmem:[%s12356_s30 + $0x38] sm:$0xff] }
0x20ea   : > { %9362 = vmatmul.mubr.msk.f32.vlgmr.msra.gmra.mrb[48].mxu0 %vm1754_vm7, %v5770_v11  ;;  %v9690_v10 = vpack.c.bf16 %v8727_v9, %v8726_v8 }
0x20eb   : > { %9391 = vmatprep.mubr.msk.f32.mxu0 %vm10777_vm1, %v10778_v1  ;;  %9676 = vmatpush3.bf16.msra.mxu0 %v9675_v32 }
0x20ec   : > { %9677 = vmatprep.subr.bf16.mxu0 %v10776_v0 }
0x20ef   : > { %9679 = vmatpush3.bf16.msra.mxu0 %v9678_v34 }
0x20f0   : > { %9680 = vmatprep.subr.bf16.mxu0 %v10776_v0 }
0x20f3   : > { %9682 = vmatpush3.bf16.msra.mxu0 %v9681_v37 }
0x20f4   : > { %9683 = vmatprep.subr.bf16.mxu0 %v10776_v0 }
0x20f7   : > { %9685 = vmatpush3.bf16.msra.mxu0 %v9684_v59 }
0x20f8   : > { %9415 = vmatprep.subr.mxu0 %v10778_v1 }
0x21bd   : > { %v5851_v13 = vpop.f32.mrb[48].mxu0 }
0x21be   : > { %v5852_v14 = vadd.f32 %v8714_v12, %v5851_v13  ;;  %v9363_v15 = vpop.f32.mrb[49].mxu0 }
0x21bf   : > { %v8722_v15 = vld [vmem:[#allocation25] ss:$0 sm:$0xff] }
0x21c0   : > { %v5855_v19 = vadd.f32 %v5852_v14, %v11801_v48  ;;  %v5887_v48 = vld [vmem:[#allocation21 + $0x10] sm:$0xff] }
0x21c1   : > { %v9672_v29 = vpack.c.bf16 %v5888_v28, %v5887_v48 }
0x21c2   : > { %v5858_v16 = vsel %vm1754_vm7, %v5855_v19, 0.0 }
0x21c3   : > { %5859 = vadd.xlane.f32.xlu1 %v5858_v16  ;;  %9673 = vmatpush3.bf16.msra.mxu1 %v9672_v29  ;;  %v8723_v16 = vld [vmem:[#allocation27] ss:$0 sm:$0xff] }
0x21c4   : > { %9686 = vmatprep.subr.bf16.mxu1 %v10776_v0 }
0x2250   : > { %v5860_v17 = vpop.xlane.xlu1 %5859 }
0x2251   : > { %v5861_v18 = vmul.f32 0.03125, %v5860_v17 }
0x2253   : > { %v5862_v21 = vsub.f32 %v5855_v19, %v5861_v18 }
0x2255   : > { %v5863_v22 = vmul.f32 %v5862_v21, %v5862_v21 }
0x2257   : > { %v5864_v23 = vsel %vm1754_vm7, %v5863_v22, 0.0 }
0x2258   : > { %5865 = vadd.xlane.f32.xlu0 %v5864_v23 }
0x22e5   : > { %v5866_v38 = vpop.xlane.xlu0 %5865 }
0x22e6   : > { %v5867_v39 = vmul.f32 0.03125, %v5866_v38 }
0x22e8   : > { %v5868_v40 = vadd.f32 1e-05, %v5867_v39 }
0x22ea   : > { %10083 = vrsqrt.f32 %v5868_v40 }
0x22f4   : > { %v10084_v41 = vpop.eup %10083 }
0x22f5   : > { %v5870_v43 = vmul.f32 %v10084_v41, %v5862_v21  ;;  %v8728_v21 = vld [vmem:[#allocation6 + $0x1] ss:$0 sm:$0xff] }
0x22f7   : > { %v5877_v46 = vmul.f32 %v8716_v42, %v5870_v43 }
0x22f9   : > { %v5884_v47 = vadd.f32 %v8717_v44, %v5877_v46 }
0x22fb   : > { %9373 = vmatmul.mubr.msk.f32.vlgmr.msra.gmra.mrb[44].mxu1 %vm1754_vm7, %v5884_v47 }
0x22fc   : > { %9402 = vmatprep.mubr.msk.f32.mxu1 %vm10777_vm1, %v10778_v1  ;;  %9688 = vmatpush3.bf16.msra.mxu1 %v9687_v7 }
0x22fd   : > { %9689 = vmatprep.subr.bf16.mxu1 %v10776_v0 }
0x2300   : > { %9691 = vmatpush3.bf16.msra.mxu1 %v9690_v10 }
0x2301   : > { %9405 = vmatprep.subr.mxu1 %v10778_v1 }
0x23ce   : > { %v5965_v51 = vpop.f32.mrb[44].mxu1 }
0x23cf   : > { %v5966_v52 = vadd.f32 %v8718_v50, %v5965_v51  ;;  %v9374_v53 = vpop.f32.mrb[45].mxu1 }
0x23d1   : > { %v5969_v54 = vmax.f32 %v5966_v52, 0.0 }
0x23d3   : > { %9392 = vmatmul.mubr.msk.f32.vlgmr.msra.gmra.mrb[50].mxu0 %vm2723_vm10, %v5969_v54 }
0x23d4   : > { %9417 = vmatprep.mubr.msk.f32.mxu0 %vm10777_vm1, %v10778_v1 }
0x24a6   : > { %v6054_v57 = vpop.f32.mrb[50].mxu0 }
0x24a7   : > { %v6055_v58 = vadd.f32 %v8720_v56, %v6054_v57  ;;  %v9393_v60 = vpop.f32.mrb[51].mxu0 }
0x24a9   : > { %v6058_v61 = vadd.f32 %v6055_v58, %v5884_v47 }
0x24ab   : > { %v6061_v24 = vsel %vm1754_vm7, %v6058_v61, 0.0 }
0x24ac   : > { %6062 = vadd.xlane.f32.xlu0 %v6061_v24 }
0x2539   : > { %v6063_v62 = vpop.xlane.xlu0 %6062 }
0x253a   : > { %v6064_v63 = vmul.f32 0.03125, %v6063_v62 }
0x253c   : > { %v6065_v3 = vsub.f32 %v6058_v61, %v6064_v63 }
0x253e   : > { %v6066_v4 = vmul.f32 %v6065_v3, %v6065_v3 }
0x2540   : > { %v6067_v2 = vsel %vm1754_vm7, %v6066_v4, 0.0 }
0x2541   : > { %6068 = vadd.xlane.f32.xlu1 %v6067_v2 }
0x25ce   : > { %v6069_v11 = vpop.xlane.xlu1 %6068 }
0x25cf   : > { %v6070_v12 = vmul.f32 0.03125, %v6069_v11 }
0x25d1   : > { %v6071_v13 = vadd.f32 1e-05, %v6070_v12 }
0x25d3   : > { %10085 = vrsqrt.f32 %v6071_v13 }
0x25dd   : > { %v10086_v14 = vpop.eup %10085 }
0x25de   : > { %v6073_v19 = vmul.f32 %v10086_v14, %v6065_v3 }
0x25e0   : > { %v6080_v17 = vmul.f32 %v8722_v15, %v6073_v19 }
0x25e2   : > { %v11913_v18 = vadd.f32 %v8723_v16, %v6080_v17 }
0x25e4   : > { %9403 = vmatmul.mubr.msk.f32.vlgmr.msra.gmra.mrb[46].mxu1 %vm1754_vm7, %v11913_v18 }
0x25e5   : > { %9407 = vmatprep.mubr.msk.f32.mxu1 %vm10777_vm1, %v10778_v1 }
0x26b7   : > { %v6170_v22 = vpop.f32.mrb[46].mxu1 }
0x26b8   : > { %v11919_v23 = vadd.f32 %v8728_v21, %v6170_v22  ;;  %v9404_v25 = vpop.f32.mrb[47].mxu1 }
0x26b9   : > { %v8742_v25 = vld [vmem:[%s12358_s27 + $0x20] sm:$0xff] }
0x26ba   : > { %6341 = vrot.lane.b32.xlu1 %v11919_v23, %s12340_s4  ;;  %6175 = vrot.lane.b32.xlu0 %v11919_v23, %s12341_s6 }
0x26be   : > { %6339 = vrot.lane.b32.xlu1 %v11919_v23, %s12343_s14  ;;  %6507 = vrot.lane.b32.xlu0 %v11919_v23, %s12345_s17 }
0x26c2   : > { %6505 = vrot.lane.b32.xlu1 %v11919_v23, %s12342_s13  ;;  %6673 = vrot.lane.b32.xlu0 %v11919_v23, %s12346_s19 }
0x26c6   : > { %6671 = vrot.lane.b32.xlu1 %v11919_v23, %s12344_s16 }
0x272c   : > { %v6342_v26 = vpop.permute.xlu1 %6341  ;;  %v6176_v27 = vpop.permute.xlu0 %6175 }
0x272d   : > { %9406 = vmatpush3.xpose.msk.msra.mxu1 %vm1656_vm5, %v6176_v27  ;;  %9416 = vmatpush3.xpose.msk.msra.mxu0 %vm1656_vm5, %v6342_v26  ;;  %v8743_v26 = vld [vmem:[%s12358_s27 + $0x28] sm:$0xff] }
0x272e   : > { %9425 = vmatprep.subr.mxu0 %v10778_v1  ;;  %9410 = vmatprep.subr.mxu1 %v10778_v1  ;;  %v9693_v27 = vpack.c.bf16 %v8743_v26, %v8742_v25 }
0x2730   : > { %v6340_v48 = vpop.permute.xlu1 %6339  ;;  %9408 = vmatmul.mubr.msk.f32.vlgmr.msra.gmra.mrb[48].mxu1 %vm1656_vm5, %v11919_v23  ;;  %v6508_v28 = vpop.permute.xlu0 %6507 }
0x2731   : > { %9418 = vmatmul.mubr.msk.f32.vlgmr.msra.gmra.mrb[52].mxu0 %vm1656_vm5, %v6340_v48  ;;  %9412 = vmatprep.mubr.msk.f32.mxu1 %vm10777_vm1, %v10778_v1  ;;  %v8744_v48 = vld [vmem:[%s12358_s27 + $0x30] sm:$0xff] }
0x2732   : > { %9426 = vmatpush3.xpose.msk.msra.mxu0 %vm1656_vm5, %v6508_v28  ;;  %9427 = vmatprep.mubr.msk.f32.mxu0 %vm10777_vm1, %v10778_v1  ;;  %v8745_v28 = vld [vmem:[%s12358_s27 + $0x38] sm:$0xff] }
0x2733   : > { %9435 = vmatprep.subr.mxu0 %v10778_v1 }
0x2734   : > { %v6506_v29 = vpop.permute.xlu1 %6505  ;;  %v6674_v55 = vpop.permute.xlu0 %6673 }
0x2735   : > { %9428 = vmatmul.mubr.msk.f32.vlgmr.msra.gmra.mrb[54].mxu0 %vm1656_vm5, %v6506_v29  ;;  %v9696_v29 = vpack.c.bf16 %v8745_v28, %v8744_v48 }
0x2736   : > { %9436 = vmatpush3.xpose.msk.msra.mxu0 %vm1656_vm5, %v6674_v55  ;;  %9437 = vmatprep.mubr.msk.f32.mxu0 %vm10777_vm1, %v10778_v1 }
0x2737   : > { %9692 = vmatprep.subr.bf16.mxu0 %v10776_v0 }
0x2738   : > { %v6672_v30 = vpop.permute.xlu1 %6671 }
0x2739   : > { %9438 = vmatmul.mubr.msk.f32.vlgmr.msra.gmra.mrb[56].mxu0 %vm1656_vm5, %v6672_v30 }
0x273a   : > { %9453 = vmatprep.mubr.msk.f32.mxu0 %vm10777_vm1, %v10778_v1  ;;  %9694 = vmatpush3.bf16.msra.mxu0 %v9693_v27 }
0x273b   : > { %9695 = vmatprep.subr.bf16.mxu0 %v10776_v0 }
0x273e   : > { %9697 = vmatpush3.bf16.msra.mxu0 %v9696_v29 }
0x273f   : > { %9704 = vmatprep.subr.bf16.mxu0 %v10776_v0 }
0x2803   : > { %v6247_v31 = vpop.f32.mrb[48].mxu1 }
0x2804   : > { %v6251_v32 = vmul.f32 0.35355338, %v6247_v31  ;;  %v9409_v33 = vpop.f32.mrb[49].mxu1  ;;  %v6413_v34 = vpop.f32.mrb[52].mxu0 }
0x2805   : > { %v6417_v35 = vmul.f32 0.35355338, %v6413_v34  ;;  %v9419_v36 = vpop.f32.mrb[53].mxu0 }
0x2806   : > { %v6252_v37 = vsel %vm1656_vm5, %v6251_v32, -inf }
0x2807   : > { %6253 = vmax.xlane.f32.xlu0 %v6252_v37  ;;  %v6418_v38 = vsel %vm1656_vm5, %v6417_v35, -inf }
0x2808   : > { %6419 = vmax.xlane.f32.xlu1 %v6418_v38  ;;  %v6579_v39 = vpop.f32.mrb[54].mxu0  ;;  %v8756_v38 = vld [vmem:[%s12360_s1 + $0x20] sm:$0xff] }
0x2809   : > { %v6583_v40 = vmul.f32 0.35355338, %v6579_v39  ;;  %v9429_v41 = vpop.f32.mrb[55].mxu0  ;;  %v8757_v39 = vld [vmem:[%s12360_s1 + $0x28] sm:$0xff] }
0x280b   : > { %v6584_v42 = vsel %vm1656_vm5, %v6583_v40, -inf }
0x280c   : > { %v6745_v43 = vpop.f32.mrb[56].mxu0  ;;  %6585 = vmax.xlane.f32.xlu0 %v6584_v42  ;;  %v9705_v42 = vpack.c.bf16 %v8757_v39, %v8756_v38 }
0x280d   : > { %v6749_v44 = vmul.f32 0.35355338, %v6745_v43  ;;  %v9439_v46 = vpop.f32.mrb[57].mxu0 }
0x280e   : > { %v8758_v46 = vld [vmem:[%s12360_s1 + $0x30] sm:$0xff] }
0x280f   : > { %v6750_v47 = vsel %vm1656_vm5, %v6749_v44, -inf }
0x2810   : > { %6751 = vmax.xlane.f32.xlu0 %v6750_v47  ;;  %v8759_v47 = vld [vmem:[%s12360_s1 + $0x38] sm:$0xff] }
0x2819   : > { %6263 = vrot.lane.b32.xlu1 %v11919_v23, %s12348_s22 }
0x2894   : > { %v6254_v49 = vpop.xlane.xlu0 %6253 }
0x2895   : > { %v6255_v20 = vsub.f32 %v6251_v32, %v6254_v49  ;;  %v6420_v59 = vpop.xlane.xlu1 %6419 }
0x2896   : > { %v6421_v50 = vsub.f32 %v6417_v35, %v6420_v59  ;;  %v8746_v59 = vld [vmem:[#allocation7 + $0x1] ss:$0 sm:$0xff] }
0x2897   : > { %v6256_v51 = vmul.f32 1.442695, %v6255_v20  ;;  %v9708_v20 = vpack.c.bf16 %v8759_v47, %v8758_v46 }
0x2898   : > { %v6422_v52 = vmul.f32 1.442695, %v6421_v50 }
0x2899   : > { %10087 = vpow2.f32 %v6256_v51  ;;  %v6264_v53 = vpop.permute.xlu1 %6263  ;;  %v6586_v54 = vpop.xlane.xlu0 %6585 }
0x289a   : > { %10089 = vpow2.f32 %v6422_v52  ;;  %v6587_v56 = vsub.f32 %v6583_v40, %v6586_v54  ;;  %9411 = vmatpush3.msra.mxu1 %v6264_v53 }
0x289b   : > { %9420 = vmatprep.subr.mxu1 %v10778_v1 }
0x289c   : > { %v6588_v57 = vmul.f32 1.442695, %v6587_v56 }
0x289d   : > { %v6752_v58 = vpop.xlane.xlu0 %6751 }
0x289e   : > { %10091 = vpow2.f32 %v6588_v57  ;;  %v6753_v60 = vsub.f32 %v6749_v44, %v6752_v58 }
0x28a0   : > { %v6754_v61 = vmul.f32 1.442695, %v6753_v60 }
0x28a2   : > { %10093 = vpow2.f32 %v6754_v61 }
0x28a3   : > { %v10088_v24 = vpop.eup %10087 }
0x28a4   : > { %v10090_v62 = vpop.eup %10089  ;;  %v6258_v63 = vsel %vm1656_vm5, %v10088_v24, 0.0 }
0x28a5   : > { %6259 = vadd.xlane.f32.xlu1 %v6258_v63  ;;  %v6424_v3 = vsel %vm1656_vm5, %v10090_v62, 0.0 }
0x28a6   : > { %6425 = vadd.xlane.f32.xlu0 %v6424_v3  ;;  %v8750_v3 = vld [vmem:[%s12361_s2 + $0x20] sm:$0xff] }
0x28a8   : > { %v10092_v4 = vpop.eup %10091 }
0x28a9   : > { %v6590_v2 = vsel %vm1656_vm5, %v10092_v4, 0.0 }
0x28aa   : > { %6591 = vadd.xlane.f32.xlu1 %v6590_v2  ;;  %v8752_v2 = vld [vmem:[%s12361_s2 + $0x30] sm:$0xff] }
0x28ac   : > { %v10094_v5 = vpop.eup %10093 }
0x28ad   : > { %v6756_v6 = vsel %vm1656_vm5, %v10094_v5, 0.0 }
0x28ae   : > { %6757 = vadd.xlane.f32.xlu0 %v6756_v6 }
0x28bb   : > { %6595 = vrot.lane.b32.xlu1 %v11919_v23, %s12349_s23 }
0x28bf   : > { %6761 = vrot.lane.b32.xlu1 %v11919_v23, %s12350_s24 }
0x28c4   : > { %6429 = vrot.lane.b32.xlu0 %v11919_v23, %s12347_s21 }
0x2932   : > { %v6260_v7 = vpop.xlane.xlu1 %6259 }
0x2933   : > { %10095 = vrcp.f32 %v6260_v7  ;;  %v6426_v8 = vpop.xlane.xlu0 %6425 }
0x2934   : > { %10097 = vrcp.f32 %v6426_v8 }
0x2937   : > { %v6592_v9 = vpop.xlane.xlu1 %6591 }
0x2938   : > { %10099 = vrcp.f32 %v6592_v9 }
0x293b   : > { %v6758_v10 = vpop.xlane.xlu0 %6757  ;;  %v6596_v19 = vpop.permute.xlu1 %6595 }
0x293c   : > { %10101 = vrcp.f32 %v6758_v10 }
0x293d   : > { %v10096_v11 = vpop.eup %10095 }
0x293e   : > { %v6262_v12 = vmul.f32 %v10096_v11, %v10088_v24  ;;  %v10098_v13 = vpop.eup %10097 }
0x293f   : > { %v6430_v14 = vpop.permute.xlu0 %6429  ;;  %v6428_v15 = vmul.f32 %v10098_v13, %v10090_v62  ;;  %v6762_v22 = vpop.permute.xlu1 %6761  ;;  %v8760_v62 = vld [vmem:[#allocation13 + $0x1] ss:$0 sm:$0xff] }
0x2940   : > { %9413 = vmatmul.mubr.msk.f32.vlgmr.msra.gmra.mrb[50].mxu1 %vm1656_vm5, %v6262_v12  ;;  %v8748_v12 = vld [vmem:[#allocation9 + $0x1] ss:$0 sm:$0xff] }
0x2941   : > { %9421 = vmatpush3.msra.mxu1 %v6430_v14  ;;  %9422 = vmatprep.mubr.msk.f32.mxu1 %vm10777_vm1, %v10778_v1  ;;  %v8749_v14 = vld [vmem:[#allocation10 + $0x1] ss:$0 sm:$0xff] }
0x2942   : > { %9430 = vmatprep.subr.mxu1 %v10778_v1  ;;  %v10100_v16 = vpop.eup %10099 }
0x2943   : > { %v6594_v17 = vmul.f32 %v10100_v16, %v10092_v4  ;;  %v8751_v4 = vld [vmem:[%s12361_s2 + $0x28] sm:$0xff]  ;;  %v8754_v16 = vld [vmem:[#allocation12 + $0x1] ss:$0 sm:$0xff] }
0x2944   : > { %9423 = vmatmul.mubr.msk.f32.vlgmr.msra.gmra.mrb[52].mxu1 %vm1656_vm5, %v6428_v15 }
0x2945   : > { %9431 = vmatpush3.msra.mxu1 %v6596_v19  ;;  %9432 = vmatprep.mubr.msk.f32.mxu1 %vm10777_vm1, %v10778_v1 }
0x2946   : > { %9440 = vmatprep.subr.mxu1 %v10778_v1  ;;  %v10102_v21 = vpop.eup %10101 }
0x2947   : > { %v6760_v23 = vmul.f32 %v10102_v21, %v10094_v5  ;;  %v8753_v5 = vld [vmem:[%s12361_s2 + $0x38] sm:$0xff] }
0x2948   : > { %9433 = vmatmul.mubr.msk.f32.vlgmr.msra.gmra.mrb[54].mxu1 %vm1656_vm5, %v6594_v17  ;;  %v9702_v6 = vpack.c.bf16 %v8753_v5, %v8752_v2 }
0x2949   : > { %9441 = vmatpush3.msra.mxu1 %v6762_v22  ;;  %9442 = vmatprep.mubr.msk.f32.mxu1 %vm10777_vm1, %v10778_v1 }
0x294a   : > { %9698 = vmatprep.subr.bf16.mxu1 %v10776_v0 }
0x294c   : > { %9443 = vmatmul.mubr.msk.f32.vlgmr.msra.gmra.mrb[56].mxu1 %vm1656_vm5, %v6760_v23 }
0x294d   : > { %9464 = vmatprep.mubr.msk.f32.mxu1 %vm10777_vm1, %v10778_v1 }
0x2a13   : > { %v6335_v55 = vpop.f32.mrb[50].mxu1 }
0x2a14   : > { %v9414_v30 = vpop.f32.mrb[51].mxu1 }
0x2a17   : > { %v6501_v31 = vpop.f32.mrb[52].mxu1 }
0x2a18   : > { %6838 = vrot.lane.b32.xlu0 %v6501_v31, %s12351_s25  ;;  %v9424_v32 = vpop.f32.mrb[53].mxu1 }
0x2a1b   : > { %v6667_v33 = vpop.f32.mrb[54].mxu1 }
0x2a1c   : > { %6842 = vrot.lane.b32.xlu1 %v6667_v33, %s12352_s26  ;;  %v9434_v34 = vpop.f32.mrb[55].mxu1 }
0x2a1f   : > { %v6833_v35 = vpop.f32.mrb[56].mxu1 }
0x2a20   : > { %6846 = vrot.lane.b32.xlu0 %v6833_v35, %s12353_s29  ;;  %v9444_v36 = vpop.f32.mrb[57].mxu1 }
0x2a8a   : > { %v6839_v37 = vpop.permute.xlu0 %6838 }
0x2a8b   : > { %v6849_v41 = vsel %vm1656_vm5, %v6335_v55, %v6839_v37 }
0x2a8e   : > { %v6843_v40 = vpop.permute.xlu1 %6842 }
0x2a8f   : > { %v6850_v43 = vsel %vm2504_vm8, %v6849_v41, %v6843_v40 }
0x2a92   : > { %v6847_v44 = vpop.permute.xlu0 %6846 }
0x2a93   : > { %v6851_v49 = vsel %vm2506_vm9, %v6850_v43, %v6847_v44 }
0x2a94   : > { %9454 = vmatmul.mubr.msk.f32.vlgmr.msra.gmra.mrb[58].mxu0 %vm1754_vm7, %v6851_v49 }
0x2a95   : > { %9706 = vmatpush3.bf16.msra.mxu0 %v9705_v42  ;;  %9475 = vmatprep.mubr.msk.f32.mxu0 %vm10777_vm1, %v10778_v1 }
0x2a96   : > { %9707 = vmatprep.subr.bf16.mxu0 %v10776_v0 }
0x2a99   : > { %9709 = vmatpush3.bf16.msra.mxu0 %v9708_v20 }
0x2a9a   : > { %9488 = vmatprep.subr.mxu0 %v10778_v1 }
0x2a9c   : > { %9476 = vmatmul.mubr.msk.f32.vlgmr.msra.gmra.mrb[60].mxu0 %vm1754_vm7, %v11795_v45 }
0x2a9d   : > { %9490 = vmatprep.mubr.msk.f32.mxu0 %vm10777_vm1, %v10778_v1 }
0x2b67   : > { %v6934_v50 = vpop.f32.mrb[58].mxu0 }
0x2b68   : > { %v6935_v51 = vadd.f32 %v8746_v59, %v6934_v50  ;;  %v9455_v52 = vpop.f32.mrb[59].mxu0 }
0x2b6a   : > { %v6938_v53 = vadd.f32 %v6935_v51, %v11913_v18  ;;  %v9699_v18 = vpack.c.bf16 %v8751_v4, %v8750_v3 }
0x2b6c   : > { %v6943_v54 = vsel %vm1754_vm7, %v6938_v53, 0.0  ;;  %9700 = vmatpush3.bf16.msra.mxu1 %v9699_v18 }
0x2b6d   : > { %6944 = vadd.xlane.f32.xlu1 %v6943_v54  ;;  %9701 = vmatprep.subr.bf16.mxu1 %v10776_v0 }
0x2b6f   : > { %v7135_v56 = vpop.f32.mrb[60].mxu0 }
0x2b70   : > { %v9477_v57 = vpop.f32.mrb[61].mxu0  ;;  %v12016_v63 = vadd.f32 %v8760_v62, %v7135_v56  ;;  %9703 = vmatpush3.bf16.msra.mxu1 %v9702_v6 }
0x2b71   : > { %9478 = vmatprep.subr.mxu1 %v10778_v1 }
0x2bfa   : > { %v6945_v58 = vpop.xlane.xlu1 %6944 }
0x2bfb   : > { %v6946_v45 = vmul.f32 0.03125, %v6945_v58 }
0x2bfd   : > { %v6947_v60 = vsub.f32 %v6938_v53, %v6946_v45 }
0x2bff   : > { %v6948_v61 = vmul.f32 %v6947_v60, %v6947_v60 }
0x2c01   : > { %v6949_v24 = vsel %vm1754_vm7, %v6948_v61, 0.0 }
0x2c02   : > { %6950 = vadd.xlane.f32.xlu0 %v6949_v24 }
0x2c18   : > { %7305 = vrot.lane.b32.xlu0 %v12016_v63, %s12343_s14 }
0x2c8f   : > { %v6951_v7 = vpop.xlane.xlu0 %6950 }
0x2c90   : > { %v6952_v8 = vmul.f32 0.03125, %v6951_v7 }
0x2c92   : > { %v6953_v9 = vadd.f32 1e-05, %v6952_v8 }
0x2c93   : > { %v7306_v10 = vpop.permute.xlu0 %7305 }
0x2c94   : > { %10103 = vrsqrt.f32 %v6953_v9  ;;  %9489 = vmatpush3.xpose.msk.msra.mxu0 %vm1656_vm5, %v7306_v10 }
0x2c95   : > { %9498 = vmatprep.subr.mxu0 %v10778_v1 }
0x2c9e   : > { %v10104_v11 = vpop.eup %10103 }
0x2c9f   : > { %v6955_v13 = vmul.f32 %v10104_v11, %v6947_v60 }
0x2ca1   : > { %v6962_v15 = vmul.f32 %v8748_v12, %v6955_v13 }
0x2ca3   : > { %v12028_v19 = vadd.f32 %v8749_v14, %v6962_v15 }
0x2ca5   : > { %9465 = vmatmul.mubr.msk.f32.vlgmr.msra.gmra.mrb[58].mxu1 %vm1754_vm7, %v12028_v19 }
0x2ca6   : > { %9479 = vmatpush3.xpose.msk.msra.mxu1 %vm1656_vm5, %v12016_v63  ;;  %9480 = vmatprep.mubr.msk.f32.mxu1 %vm10777_vm1, %v10778_v1 }
0x2ca7   : > { %9483 = vmatprep.subr.mxu1 %v10778_v1 }
0x2d78   : > { %v7052_v17 = vpop.f32.mrb[58].mxu1 }
0x2d79   : > { %v7053_v21 = vadd.f32 %v8754_v16, %v7052_v17  ;;  %v9466_v22 = vpop.f32.mrb[59].mxu1 }
0x2d7a   : > { %v7818_v22 = vld [vmem:[#allocation15 + $0x28] sm:$0xff] }
0x2d7b   : > { %7469 = vrot.lane.b32.xlu0 %v7053_v21, %s12342_s13  ;;  %7303 = vrot.lane.b32.xlu1 %v7053_v21, %s12343_s14 }
0x2d7c   : > { %9481 = vmatmul.mubr.msk.f32.vlgmr.msra.gmra.mrb[60].mxu1 %vm1656_vm5, %v7053_v21 }
0x2d7d   : > { %9485 = vmatprep.mubr.msk.f32.mxu1 %vm10777_vm1, %v10778_v1 }
0x2d7f   : > { %7635 = vrot.lane.b32.xlu0 %v7053_v21, %s12344_s16  ;;  %7471 = vrot.lane.b32.xlu1 %v12016_v63, %s12342_s13  ;;  %v7817_v21 = vld [vmem:[#allocation15 + $0x20] sm:$0xff]  ;;  %s1632_s13 = scalar_lea.vmem %s11028_s20, %s11370_s0 }
0x2d83   : > { %7637 = vrot.lane.b32.xlu1 %v12016_v63, %s12344_s16 }
0x2ded   : > { %v7304_v23 = vpop.permute.xlu1 %7303  ;;  %v7470_v26 = vpop.permute.xlu0 %7469 }
0x2dee   : > { %9491 = vmatmul.mubr.msk.f32.vlgmr.msra.gmra.mrb[62].mxu0 %vm1656_vm5, %v7304_v23  ;;  %v9711_v23 = vpack.c.bf16 %v7818_v22, %v7817_v21 }
0x2def   : > { %9500 = vmatprep.mubr.msk.f32.mxu0 %vm10777_vm1, %v10778_v1 }
0x2df1   : > { %v7472_v25 = vpop.permute.xlu1 %7471  ;;  %v7636_v48 = vpop.permute.xlu0 %7635 }
0x2df2   : > { %9499 = vmatpush3.xpose.msk.msra.mxu0 %vm1656_vm5, %v7472_v25  ;;  %v7819_v25 = vld [vmem:[#allocation15 + $0x30] sm:$0xff] }
0x2df3   : > { %9508 = vmatprep.subr.mxu0 %v10778_v1 }
0x2df5   : > { %9501 = vmatmul.mubr.msk.f32.vlgmr.msra.gmra.mrb[64].mxu0 %vm1656_vm5, %v7470_v26  ;;  %v7638_v27 = vpop.permute.xlu1 %7637  ;;  %v7820_v26 = vld [vmem:[#allocation15 + $0x38] sm:$0xff] }
0x2df6   : > { %9509 = vmatpush3.xpose.msk.msra.mxu0 %vm1656_vm5, %v7638_v27  ;;  %9510 = vmatprep.mubr.msk.f32.mxu0 %vm10777_vm1, %v10778_v1  ;;  %v9714_v27 = vpack.c.bf16 %v7820_v26, %v7819_v25 }
0x2df7   : > { %9710 = vmatprep.subr.bf16.mxu0 %v10776_v0 }
0x2df9   : > { %9511 = vmatmul.mubr.msk.f32.vlgmr.msra.gmra.mrb[66].mxu0 %vm1656_vm5, %v7636_v48 }
0x2dfa   : > { %9526 = vmatprep.mubr.msk.f32.mxu0 %vm10777_vm1, %v10778_v1  ;;  %9712 = vmatpush3.bf16.msra.mxu0 %v9711_v23 }
0x2dfb   : > { %9713 = vmatprep.subr.bf16.mxu0 %v10776_v0 }
0x2dfe   : > { %9715 = vmatpush3.bf16.msra.mxu0 %v9714_v27 }
0x2dff   : > { %9722 = vmatprep.subr.bf16.mxu0 %v10776_v0 }
0x2e4f   : > { %v7211_v28 = vpop.f32.mrb[60].mxu1 }
0x2e50   : > { %v7215_v29 = vmul.f32 0.35355338, %v7211_v28  ;;  %v9482_v55 = vpop.f32.mrb[61].mxu1 }
0x2e52   : > { %v7216_v30 = vsel %vm1656_vm5, %v7215_v29, -inf }
0x2e53   : > { %7217 = vmax.xlane.f32.xlu1 %v7216_v30 }
0x2ec1   : > { %v7377_v31 = vpop.f32.mrb[62].mxu0 }
0x2ec2   : > { %v7381_v32 = vmul.f32 0.35355338, %v7377_v31  ;;  %v9492_v33 = vpop.f32.mrb[63].mxu0 }
0x2ec4   : > { %v7382_v34 = vsel %vm1656_vm5, %v7381_v32, -inf }
0x2ec5   : > { %7383 = vmax.xlane.f32.xlu0 %v7382_v34 }
0x2ec8   : > { %v7543_v35 = vpop.f32.mrb[64].mxu0 }
0x2ec9   : > { %v7547_v36 = vmul.f32 0.35355338, %v7543_v35  ;;  %v9502_v37 = vpop.f32.mrb[65].mxu0 }
0x2ecb   : > { %v7548_v38 = vsel %vm1656_vm5, %v7547_v36, -inf }
0x2ecc   : > { %7549 = vmax.xlane.f32.xlu0 %v7548_v38  ;;  %v7709_v39 = vpop.f32.mrb[66].mxu0  ;;  %v8774_v38 = vld [vmem:[#allocation16 + $0x1] ss:$0 sm:$0xff] }
0x2ecd   : > { %v7713_v40 = vmul.f32 0.35355338, %v7709_v39  ;;  %v9512_v41 = vpop.f32.mrb[67].mxu0 }
0x2ecf   : > { %v7714_v42 = vsel %vm1656_vm5, %v7713_v40, -inf }
0x2ed0   : > { %7715 = vmax.xlane.f32.xlu1 %v7714_v42 }
0x2ee0   : > { %v7218_v43 = vpop.xlane.xlu1 %7217 }
0x2ee1   : > { %v7219_v44 = vsub.f32 %v7215_v29, %v7218_v43  ;;  %7393 = vrot.lane.b32.xlu1 %v12016_v63, %s12340_s4 }
0x2ee3   : > { %v7220_v46 = vmul.f32 1.442695, %v7219_v44 }
0x2ee5   : > { %10105 = vpow2.f32 %v7220_v46 }
0x2eef   : > { %v10106_v47 = vpop.eup %10105 }
0x2ef0   : > { %v7222_v49 = vsel %vm1656_vm5, %v10106_v47, 0.0 }
0x2ef1   : > { %7223 = vadd.xlane.f32.xlu0 %v7222_v49 }
0x2f07   : > { %7227 = vrot.lane.b32.xlu0 %v12016_v63, %s12341_s6 }
0x2f52   : > { %v7384_v20 = vpop.xlane.xlu0 %7383 }
0x2f53   : > { %v7385_v59 = vsub.f32 %v7381_v32, %v7384_v20 }
0x2f55   : > { %v7386_v50 = vmul.f32 1.442695, %v7385_v59  ;;  %v7935_v59 = vld [vmem:[#allocation21 + $0x20] sm:$0xff] }
0x2f57   : > { %10107 = vpow2.f32 %v7386_v50  ;;  %v7936_v50 = vld [vmem:[#allocation21 + $0x28] sm:$0xff] }
0x2f59   : > { %v7550_v51 = vpop.xlane.xlu0 %7549 }
0x2f5a   : > { %v7551_v52 = vsub.f32 %v7547_v36, %v7550_v51  ;;  %v9717_v51 = vpack.c.bf16 %v7936_v50, %v7935_v59 }
0x2f5c   : > { %v7552_v53 = vmul.f32 1.442695, %v7551_v52  ;;  %v7937_v52 = vld [vmem:[#allocation21 + $0x30] sm:$0xff] }
0x2f5d   : > { %v7716_v54 = vpop.xlane.xlu1 %7715 }
0x2f5e   : > { %10109 = vpow2.f32 %v7552_v53  ;;  %v7717_v56 = vsub.f32 %v7713_v40, %v7716_v54  ;;  %v8780_v54 = vld [vmem:[%s12364_s3 + $0x40] sm:$0xff] }
0x2f60   : > { %v7718_v57 = vmul.f32 1.442695, %v7717_v56  ;;  %v8781_v56 = vld [vmem:[%s12364_s3 + $0x48] sm:$0xff] }
0x2f61   : > { %v10108_v58 = vpop.eup %10107  ;;  %v7394_v5 = vpop.permute.xlu1 %7393 }
0x2f62   : > { %10111 = vpow2.f32 %v7718_v57  ;;  %v7388_v45 = vsel %vm1656_vm5, %v10108_v58, 0.0  ;;  %v8782_v57 = vld [vmem:[%s12364_s3 + $0x50] sm:$0xff] }
0x2f63   : > { %7389 = vadd.xlane.f32.xlu1 %v7388_v45  ;;  %v8783_v45 = vld [vmem:[%s12364_s3 + $0x58] sm:$0xff] }
0x2f68   : > { %v10110_v60 = vpop.eup %10109 }
0x2f69   : > { %v7554_v61 = vsel %vm1656_vm5, %v10110_v60, 0.0 }
0x2f6a   : > { %7555 = vadd.xlane.f32.xlu0 %v7554_v61  ;;  %v8784_v61 = vld [vmem:[%s12364_s3 + $0x60] sm:$0xff] }
0x2f6c   : > { %v10112_v24 = vpop.eup %10111 }
0x2f6d   : > { %v7720_v62 = vsel %vm1656_vm5, %v10112_v24, 0.0 }
0x2f6e   : > { %7721 = vadd.xlane.f32.xlu1 %v7720_v62 }
0x2f7e   : > { %v7224_v3 = vpop.xlane.xlu0 %7223 }
0x2f7f   : > { %10113 = vrcp.f32 %v7224_v3  ;;  %7559 = vrot.lane.b32.xlu1 %v12016_v63, %s12345_s17 }
0x2f80   : > { %7725 = vrot.lane.b32.xlu0 %v12016_v63, %s12346_s19 }
0x2f82   : > { %v7228_v4 = vpop.permute.xlu0 %7227 }
0x2f83   : > { %9484 = vmatpush3.msra.mxu1 %v7228_v4 }
0x2f84   : > { %9493 = vmatprep.subr.mxu1 %v10778_v1 }
0x2f89   : > { %v10114_v18 = vpop.eup %10113 }
0x2f8a   : > { %v7226_v2 = vmul.f32 %v10114_v18, %v10106_v47 }
0x2f8c   : > { %9486 = vmatmul.mubr.msk.f32.vlgmr.msra.gmra.mrb[62].mxu1 %vm1656_vm5, %v7226_v2 }
0x2f8d   : > { %9494 = vmatpush3.msra.mxu1 %v7394_v5  ;;  %9495 = vmatprep.mubr.msk.f32.mxu1 %vm10777_vm1, %v10778_v1  ;;  %v8776_v5 = vld [vmem:[#allocation18 + $0x1] ss:$0 sm:$0xff] }
0x2f8e   : > { %9503 = vmatprep.subr.mxu1 %v10778_v1 }
0x2ff0   : > { %v7390_v6 = vpop.xlane.xlu1 %7389 }
0x2ff1   : > { %10115 = vrcp.f32 %v7390_v6 }
0x2ff7   : > { %v7556_v7 = vpop.xlane.xlu0 %7555 }
0x2ff8   : > { %10117 = vrcp.f32 %v7556_v7  ;;  %v8777_v7 = vld [vmem:[#allocation19 + $0x1] ss:$0 sm:$0xff] }
0x2ffb   : > { %v10116_v63 = vpop.eup %10115  ;;  %v7722_v8 = vpop.xlane.xlu1 %7721 }
0x2ffc   : > { %v7392_v9 = vmul.f32 %v10116_v63, %v10108_v58  ;;  %10119 = vrcp.f32 %v7722_v8  ;;  %v7726_v13 = vpop.permute.xlu0 %7725  ;;  %v9723_v58 = vpack.c.bf16 %v8781_v56, %v8780_v54  ;;  %v8793_v56 = vld [vmem:[#allocation30] ss:$0 sm:$0xff] }
0x2ffe   : > { %9496 = vmatmul.mubr.msk.f32.vlgmr.msra.gmra.mrb[64].mxu1 %vm1656_vm5, %v7392_v9  ;;  %v8786_v9 = vld [vmem:[%s12364_s3 + $0x70] sm:$0xff] }
0x2fff   : > { %v7560_v10 = vpop.permute.xlu1 %7559  ;;  %9505 = vmatprep.mubr.msk.f32.mxu1 %vm10777_vm1, %v10778_v1 }
0x3000   : > { %9504 = vmatpush3.msra.mxu1 %v7560_v10  ;;  %v8787_v10 = vld [vmem:[%s12364_s3 + $0x78] sm:$0xff] }
0x3001   : > { %9513 = vmatprep.subr.mxu1 %v10778_v1 }
0x3002   : > { %v10118_v11 = vpop.eup %10117 }
0x3003   : > { %v7558_v12 = vmul.f32 %v10118_v11, %v10110_v60  ;;  %v9726_v60 = vpack.c.bf16 %v8783_v45, %v8782_v57  ;;  %v9732_v11 = vpack.c.bf16 %v8787_v10, %v8786_v9 }
0x3005   : > { %9506 = vmatmul.mubr.msk.f32.vlgmr.msra.gmra.mrb[66].mxu1 %vm1656_vm5, %v7558_v12  ;;  %v8778_v12 = vld [vmem:[#allocation22 + $0x1] ss:$0 sm:$0xff] }
0x3006   : > { %v10120_v14 = vpop.eup %10119  ;;  %9514 = vmatpush3.msra.mxu1 %v7726_v13  ;;  %9515 = vmatprep.mubr.msk.f32.mxu1 %vm10777_vm1, %v10778_v1 }
0x3007   : > { %v7724_v15 = vmul.f32 %v10120_v14, %v10112_v24  ;;  %9716 = vmatprep.subr.bf16.mxu1 %v10776_v0  ;;  %v8785_v24 = vld [vmem:[%s12364_s3 + $0x68] sm:$0xff] }
0x3008   : > { %v9729_v62 = vpack.c.bf16 %v8785_v24, %v8784_v61 }
0x3009   : > { %9516 = vmatmul.mubr.msk.f32.vlgmr.msra.gmra.mrb[68].mxu1 %vm1656_vm5, %v7724_v15 }
0x300a   : > { %9537 = vmatprep.mubr.msk.f32.mxu1 %vm10777_vm1, %v10778_v1  ;;  %9718 = vmatpush3.bf16.msra.mxu1 %v9717_v51 }
0x300b   : > { %9719 = vmatprep.subr.bf16.mxu1 %v10776_v0 }
0x305f   : > { %v7299_v16 = vpop.f32.mrb[62].mxu1 }
0x3060   : > { %v9487_v17 = vpop.f32.mrb[63].mxu1 }
0x3061   : > { %v8788_v17 = vld [vmem:[#allocation24 + $0x1] ss:$0 sm:$0xff] }
0x30d1   : > { %v7465_v48 = vpop.f32.mrb[64].mxu1 }
0x30d2   : > { %7802 = vrot.lane.b32.xlu1 %v7465_v48, %s12351_s25  ;;  %v9497_v28 = vpop.f32.mrb[65].mxu1 }
0x30d8   : > { %v7631_v29 = vpop.f32.mrb[66].mxu1 }
0x30d9   : > { %7806 = vrot.lane.b32.xlu0 %v7631_v29, %s12352_s26  ;;  %v9507_v55 = vpop.f32.mrb[67].mxu1 }
0x30dc   : > { %v7797_v30 = vpop.f32.mrb[68].mxu1 }
0x30dd   : > { %7810 = vrot.lane.b32.xlu1 %v7797_v30, %s12353_s29  ;;  %v9517_v31 = vpop.f32.mrb[69].mxu1 }
0x3144   : > { %v7803_v32 = vpop.permute.xlu1 %7802 }
0x3145   : > { %v7813_v34 = vsel %vm1656_vm5, %v7299_v16, %v7803_v32 }
0x314b   : > { %v7807_v33 = vpop.permute.xlu0 %7806 }
0x314c   : > { %v7814_v35 = vsel %vm2504_vm8, %v7813_v34, %v7807_v33  ;;  %v8790_v33 = vld [vmem:[#allocation25 + $0x1] ss:$0 sm:$0xff] }
0x314f   : > { %v7811_v36 = vpop.permute.xlu1 %7810 }
0x3150   : > { %v7815_v37 = vsel %vm2506_vm9, %v7814_v35, %v7811_v36  ;;  %v8791_v35 = vld [vmem:[#allocation27 + $0x1] ss:$0 sm:$0xff] }
0x3151   : > { %9527 = vmatmul.mubr.msk.f32.vlgmr.msra.gmra.mrb[68].mxu0 %vm1754_vm7, %v7815_v37 }
0x3152   : > { %9556 = vmatprep.mubr.msk.f32.mxu0 %vm10777_vm1, %v10778_v1  ;;  %9724 = vmatpush3.bf16.msra.mxu0 %v9723_v58 }
0x3153   : > { %9725 = vmatprep.subr.bf16.mxu0 %v10776_v0 }
0x3156   : > { %9727 = vmatpush3.bf16.msra.mxu0 %v9726_v60 }
0x3157   : > { %9728 = vmatprep.subr.bf16.mxu0 %v10776_v0 }
0x315a   : > { %9730 = vmatpush3.bf16.msra.mxu0 %v9729_v62 }
0x315b   : > { %9731 = vmatprep.subr.bf16.mxu0 %v10776_v0 }
0x315e   : > { %9733 = vmatpush3.bf16.msra.mxu0 %v9732_v11 }
0x3224   : > { %v7898_v39 = vpop.f32.mrb[68].mxu0 }
0x3225   : > { %v7899_v40 = vadd.f32 %v8774_v38, %v7898_v39  ;;  %v9528_v41 = vpop.f32.mrb[69].mxu0 }
0x3227   : > { %v7902_v42 = vadd.f32 %v7899_v40, %v12028_v19  ;;  %v7938_v19 = vld [vmem:[#allocation21 + $0x38] sm:$0xff] }
0x3228   : > { %v9720_v53 = vpack.c.bf16 %v7938_v19, %v7937_v52 }
0x3229   : > { %v7907_v43 = vsel %vm1754_vm7, %v7902_v42, 0.0 }
0x322a   : > { %7908 = vadd.xlane.f32.xlu0 %v7907_v43  ;;  %9721 = vmatpush3.bf16.msra.mxu1 %v9720_v53  ;;  %v8792_v53 = vld [vmem:[#allocation28] ss:$0 sm:$0xff] }
0x322b   : > { %9734 = vmatprep.subr.bf16.mxu1 %v10776_v0 }
0x32b7   : > { %v7909_v44 = vpop.xlane.xlu0 %7908 }
0x32b8   : > { %v7910_v46 = vmul.f32 0.03125, %v7909_v44  ;;  %v8172_v44 = vld [vmem:[%s11018_s8] sm:$0xff] }
0x32ba   : > { %v7911_v47 = vsub.f32 %v7902_v42, %v7910_v46  ;;  %v8173_v46 = vld [vmem:[%s11018_s8 + $0x8] sm:$0xff] }
0x32bc   : > { %v7912_v49 = vmul.f32 %v7911_v47, %v7911_v47 }
0x32be   : > { %v7913_v20 = vsel %vm1754_vm7, %v7912_v49, 0.0  ;;  %v8174_v49 = vld [vmem:[%s11018_s8 + $0x10] sm:$0xff] }
0x32bf   : > { %7914 = vadd.xlane.f32.xlu1 %v7913_v20  ;;  %v8175_v20 = vld [vmem:[%s11018_s8 + $0x18] sm:$0xff] }
0x32c0   : > { %v9738_v59 = vpack.c.bf16 %v8175_v20, %v8174_v49 }
0x334c   : > { %v7915_v3 = vpop.xlane.xlu1 %7914 }
0x334d   : > { %v7916_v4 = vmul.f32 0.03125, %v7915_v3 }
0x334f   : > { %v7917_v18 = vadd.f32 1e-05, %v7916_v4 }
0x3351   : > { %10121 = vrsqrt.f32 %v7917_v18 }
0x335b   : > { %v10122_v2 = vpop.eup %10121 }
0x335c   : > { %v7919_v6 = vmul.f32 %v10122_v2, %v7911_v47  ;;  %v9735_v47 = vpack.c.bf16 %v8173_v46, %v8172_v44 }
0x335e   : > { %v7926_v63 = vmul.f32 %v8776_v5, %v7919_v6 }
0x3360   : > { %v7933_v8 = vadd.f32 %v8777_v7, %v7926_v63 }
0x3362   : > { %9538 = vmatmul.mubr.msk.f32.vlgmr.msra.gmra.mrb[70].mxu1 %vm1754_vm7, %v7933_v8 }
0x3363   : > { %9567 = vmatprep.mubr.msk.f32.mxu1 %vm10777_vm1, %v10778_v1  ;;  %9736 = vmatpush3.bf16.msra.mxu1 %v9735_v47 }
0x3364   : > { %9737 = vmatprep.subr.bf16.mxu1 %v10776_v0  ;;  %v8794_v0 = vld [vmem:[%s11023_s5] ss:$0 sm:$0xff] }
0x3367   : > { %9739 = vmatpush3.bf16.msra.mxu1 %v9738_v59 }
0x3435   : > { %v8016_v13 = vpop.f32.mrb[70].mxu1 }
0x3436   : > { %v8017_v14 = vadd.f32 %v8778_v12, %v8016_v13  ;;  %v9539_v15 = vpop.f32.mrb[71].mxu1 }
0x3438   : > { %v8020_v16 = vmax.f32 %v8017_v14, 0.0 }
0x343a   : > { %9557 = vmatmul.mubr.msk.f32.vlgmr.msra.gmra.mrb[70].mxu0 %vm2723_vm10, %v8020_v16 }
0x350d   : > { %v8107_v21 = vpop.f32.mrb[70].mxu0 }
0x350e   : > { %v8108_v22 = vadd.f32 %v8788_v17, %v8107_v21  ;;  %v9558_v23 = vpop.f32.mrb[71].mxu0 }
0x3510   : > { %v8111_v25 = vadd.f32 %v8108_v22, %v7933_v8 }
0x3512   : > { %v8116_v26 = vsel %vm1754_vm7, %v8111_v25, 0.0 }
0x3513   : > { %8117 = vadd.xlane.f32.xlu0 %v8116_v26 }
0x35a0   : > { %v8118_v1 = vpop.xlane.xlu0 %8117 }
0x35a1   : > { %v8119_v27 = vmul.f32 0.03125, %v8118_v1 }
0x35a3   : > { %v8120_v48 = vsub.f32 %v8111_v25, %v8119_v27 }
0x35a5   : > { %v8121_v28 = vmul.f32 %v8120_v48, %v8120_v48 }
0x35a7   : > { %v8122_v29 = vsel %vm1754_vm7, %v8121_v28, 0.0 }
0x35a8   : > { %8123 = vadd.xlane.f32.xlu0 %v8122_v29 }
0x3635   : > { %v8124_v55 = vpop.xlane.xlu0 %8123 }
0x3636   : > { %v8125_v30 = vmul.f32 0.03125, %v8124_v55 }
0x3638   : > { %v8126_v31 = vadd.f32 1e-05, %v8125_v30 }
0x363a   : > { %10123 = vrsqrt.f32 %v8126_v31 }
0x3644   : > { %v10124_v32 = vpop.eup %10123 }
0x3645   : > { %v8128_v34 = vmul.f32 %v10124_v32, %v8120_v48 }
0x3647   : > { %v8135_v36 = vmul.f32 %v8790_v33, %v8128_v34 }
0x3649   : > { %v8142_v37 = vadd.f32 %v8791_v35, %v8135_v36 }
0x364b   : > { %v8145_v38 = vsel %vm1754_vm7, %v8142_v37, 0.0 }
0x364c   : > { %8146 = vadd.xlane.f32.xlu1 %v8145_v38 }
0x36d9   : > { %v8147_v39 = vpop.xlane.xlu1 %8146 }
0x36da   : > { %v8148_v40 = vmul.f32 0.03125, %v8147_v39 }
0x36dc   : > { %v8149_v41 = vsub.f32 %v8142_v37, %v8148_v40 }
0x36de   : > { %v8150_v42 = vmul.f32 %v8149_v41, %v8149_v41 }
0x36e0   : > { %v8151_v43 = vsel %vm1754_vm7, %v8150_v42, 0.0 }
0x36e1   : > { %8152 = vadd.xlane.f32.xlu0 %v8151_v43 }
0x376e   : > { %v8153_v50 = vpop.xlane.xlu0 %8152 }
0x376f   : > { %v8154_v51 = vmul.f32 0.03125, %v8153_v50 }
0x3771   : > { %v8155_v52 = vadd.f32 1e-05, %v8154_v51 }
0x3773   : > { %10125 = vrsqrt.f32 %v8155_v52 }
0x377d   : > { %v10126_v19 = vpop.eup %10125 }
0x377e   : > { %v8157_v54 = vmul.f32 %v10126_v19, %v8149_v41 }
0x3780   : > { %v8164_v57 = vmul.f32 %v8792_v53, %v8157_v54 }
0x3782   : > { %v8171_v58 = vadd.f32 %v8793_v56, %v8164_v57 }
0x3784   : > { %9568 = vmatmul.mubr.msk.f32.vlgmr.msra.gmra.mrb[72].mxu1 %vm1754_vm7, %v8171_v58 }
0x3857   : > { %v8252_v45 = vpop.f32.mrb[72].mxu1 }
0x3858   : > { %v8253_v60 = vadd.f32 %v8794_v0, %v8252_v45  ;;  %v9569_v61 = vpop.f32.mrb[73].mxu1 }
0x385a   : > { %8256 = vst.msk [vmem:[%s1632_s13] sm:$0xff] %vm1654_vm4, %v8253_v60 }
0x385b PF: > { %s12365_s17 = sld [smem:[#allocation84_spill]] }
0x3861   : > { %s111_s7 = sadd.s32 1, %s12365_s17  }
0x3862   : > { %p108_p2 = scmp.ge.s32.totalorder %s111_s7, 4  }
0x3864   :  { %110 = sbr.rel (!%p108_p2) target bundleno = 102 (0x66), region = 387 }
0x386b   :  { %8276 = vsyncpa [#allocation3], 1 }
0x386c   :  { %8278 = vsyncpa [#allocation3 + $0x1], 1 }
0x386d   :  { %8279 = vsyncpa [#allocation5], 1 }
0x386e   :  { %8280 = vsyncpa [#allocation8], 1 }
0x386f   :  { %8281 = vsyncpa [#allocation11], 1 }
0x3870   :  { %8282 = vsyncpa [#allocation14], 1 }
0x3871   :  { %8283 = vsyncpa [#allocation17], 1 }
0x3872   :  { %8284 = vsyncpa [#allocation20], 1 }
0x3873   :  { %8285 = vsyncpa [#allocation23], 1 }
0x3874   :  { %8286 = vsyncpa [#allocation26], 1 }
0x3875   :  { %8287 = vsyncpa [#allocation29], 1 }

</bundles_post_ra>
